<compile_context>
chip_gen: v7x
topology: tpu7x:2x2x1
jax: 0.10.0
libtpu: 0.0.40
codegen_flags: <defaults>
</compile_context>

<pallas_src>
import functools

import jax
import jax.numpy as jnp
from jax import lax
from jax.experimental import pallas as pl
from jax.experimental.pallas import tpu as pltpu


# ---------------------------------------------------------------------------
# Kernel: one grid step == one timestep of one batch block.
# ---------------------------------------------------------------------------
def convlstm_step_kernel(xcol_ref, wx_ref, wh_ref, b_ref, mask_ref, out_ref,
                         h_scr, c_scr, col_scr, *, HID, K, W, NB, MARGIN):
    """grid = (batch_blocks, T).

    xcol_ref : (1, K*K*CIN, NB)   im2col'ed input frame (channels-major)
    wx_ref   : (4*HID, K*K*CIN)   input->gates weight
    wh_ref   : (4*HID, K*K*HID)   hidden->gates weight
    b_ref    : (4*HID, 1)         gate bias
    mask_ref : (K*K, NB)          0/1 boundary mask per conv tap
    out_ref  : (HID, NB)          final hidden state block (written at t == T-1)
    h_scr    : (HID, NB+2*MARGIN) h_{t-1}, lane-margined (margins stay zero)
    c_scr    : (HID, NB)          cell state
    col_scr  : (K*K*HID, NB)      stacked shifted copies of h_{t-1}
    """
    P = K // 2
    t = pl.program_id(1)

    @pl.when(t == 0)
    def _init():
        # h_{-1} = 0, c_{-1} = 0; the lane margins stay zero for every t
        # (only the interior [MARGIN, MARGIN+NB) is ever written below).
        h_scr[...] = jnp.zeros_like(h_scr)
        c_scr[...] = jnp.zeros_like(c_scr)

    # Recurrent "im2col": 9 lane-shifted, boundary-masked copies of h_{t-1},
    # stacked channels-major (lane-dense reads, sublane-aligned full-width stores).
    for ky in range(K):
        for kx in range(K):
            tap = ky * K + kx
            shift = (ky - P) * W + (kx - P)          # flattened spatial offset
            src = h_scr[:, MARGIN + shift: MARGIN + shift + NB]
            col_scr[tap * HID:(tap + 1) * HID, :] = src * mask_ref[tap:tap + 1, :]

    # Fused gate matmuls + LSTM epilogue, chunked over lanes to bound live vregs.
    CH = 128 if NB % 128 == 0 else NB
    for j in range(NB // CH):
        lo, hi = j * CH, (j + 1) * CH
        gates = (jnp.dot(wx_ref[...], xcol_ref[0, :, lo:hi],
                         preferred_element_type=jnp.float32)
                 + jnp.dot(wh_ref[...], col_scr[:, lo:hi],
                           preferred_element_type=jnp.float32)
                 + b_ref[...])
        # Gate order i, f, o, g -> free sublane slices at multiples of HID.
        i_g = jax.nn.sigmoid(gates[0 * HID:1 * HID, :])
        f_g = jax.nn.sigmoid(gates[1 * HID:2 * HID, :])
        o_g = jax.nn.sigmoid(gates[2 * HID:3 * HID, :])
        g_g = jnp.tanh(gates[3 * HID:4 * HID, :])
        c_new = f_g * c_scr[:, lo:hi] + i_g * g_g
        c_scr[:, lo:hi] = c_new
        h_scr[:, MARGIN + lo:MARGIN + hi] = o_g * jnp.tanh(c_new)

    @pl.when(t == pl.num_programs(1) - 1)
    def _emit():
        out_ref[...] = h_scr[:, MARGIN:MARGIN + NB]


# ---------------------------------------------------------------------------
# Wrapper (PyTorch layouts in / out)
# ---------------------------------------------------------------------------
def conv_lstm_forward(x_seq_btchw, weight, bias, *, batch_blocks=1):
    """ConvLSTM.forward equivalent.

    x_seq_btchw: (B, T, CIN, H, W)        PyTorch-layout input sequence
    weight     : (4*HID, CIN+HID, K, K)   PyTorch Conv2d weight (gate order i,f,o,g)
    bias       : (4*HID,)                 fused gate bias
    returns    : (B, HID, H, W)           final hidden state (PyTorch layout)

    batch_blocks: leading "parallel" grid axis.  1 (default) folds the whole
    batch into the lane dimension (best on single-TensorCore v5e/v6e); set 2 on
    v7x so the two batch blocks map onto its two TensorCores.
    """
    B, T, CIN, H, W = x_seq_btchw.shape
    OUT = weight.shape[0]
    HID = OUT // 4
    GATES = OUT
    K = weight.shape[-1]
    P = K // 2
    KK = K * K
    HW = H * W
    f32 = jnp.float32

    if T == 0:  # matches the reference: h stays at its zero init
        return jnp.zeros((B, HID, H, W), f32)

    assert B % batch_blocks == 0, "batch_blocks must divide B"
    BPB = B // batch_blocks          # batch elements per grid block
    NB = BPB * HW                    # lane width of one block
    if batch_blocks > 1:
        assert NB % 128 == 0, "per-block lane width must be a multiple of 128"
    MARGIN = ((P * (W + 1) + 127) // 128) * 128   # zero margin for tap shifts

    # ---- layout plumbing (pure XLA, tiny) ------------------------------------
    w = weight.astype(f32)
    # torch OIHW -> channels-major matmul weights, column order (ky, kx, cin).
    wx = jnp.transpose(w[:, :CIN], (0, 2, 3, 1)).reshape(GATES, KK * CIN)
    wh = jnp.transpose(w[:, CIN:], (0, 2, 3, 1)).reshape(GATES, KK * HID)
    b2 = bias.astype(f32).reshape(GATES, 1)

    # im2col of the input sequence: (T, K*K*CIN, B*HW), channels-major.
    xp = jnp.pad(x_seq_btchw.astype(f32),
                 ((0, 0), (0, 0), (0, 0), (P, P), (P, P)))
    taps = [xp[:, :, :, ky:ky + H, kx:kx + W]
            for ky in range(K) for kx in range(K)]       # each (B,T,CIN,H,W)
    xcol = jnp.stack(taps, axis=2).reshape(B, T, KK * CIN, HW)
    xcol = jnp.transpose(xcol, (1, 2, 0, 3)).reshape(T, KK * CIN, B * HW)

    # Per-tap 0/1 boundary masks (identical for every batch element).
    ys = jnp.arange(H).reshape(H, 1)
    xs = jnp.arange(W).reshape(1, W)
    rows = []
    for ky in range(K):
        for kx in range(K):
            dy, dx = ky - P, kx - P
            valid = ((ys + dy >= 0) & (ys + dy < H) &
                     (xs + dx >= 0) & (xs + dx < W)).astype(f32)
            rows.append(jnp.tile(valid.reshape(HW), BPB))
    masks = jnp.stack(rows, axis=0)                      # (K*K, NB)

    kernel = functools.partial(convlstm_step_kernel, HID=HID, K=K, W=W,
                               NB=NB, MARGIN=MARGIN)

    h_flat = pl.pallas_call(
        kernel,
        out_shape=jax.ShapeDtypeStruct((HID, B * HW), f32),
        grid_spec=pltpu.PrefetchScalarGridSpec(
            num_scalar_prefetch=0,
            grid=(batch_blocks, T),
            in_specs=[
                pl.BlockSpec((1, KK * CIN, NB), lambda bb, t: (t, 0, bb)),
                pl.BlockSpec((GATES, KK * CIN), lambda bb, t: (0, 0)),
                pl.BlockSpec((GATES, KK * HID), lambda bb, t: (0, 0)),
                pl.BlockSpec((GATES, 1), lambda bb, t: (0, 0)),
                pl.BlockSpec((KK, NB), lambda bb, t: (0, 0)),
            ],
            out_specs=pl.BlockSpec((HID, NB), lambda bb, t: (0, bb)),
            scratch_shapes=[
                pltpu.VMEM((HID, NB + 2 * MARGIN), f32),   # margined h state
                pltpu.VMEM((HID, NB), f32),                # c state
                pltpu.VMEM((KK * HID, NB), f32),           # stacked conv taps
            ],
        ),
        compiler_params=pltpu.CompilerParams(
            dimension_semantics=("parallel", "arbitrary")),
    )(xcol, wx, wh, b2, masks)

    # channels-major (HID, B*HW) -> PyTorch NCHW.
    return jnp.transpose(h_flat.reshape(HID, B, H, W), (1, 0, 2, 3))


# ---------------------------------------------------------------------------
# Pure-JAX reference (lax.conv) with identical semantics to the PyTorch module.
# ---------------------------------------------------------------------------
def conv_lstm_reference(x_seq_btchw, weight, bias):
    B, T, CIN, H, W = x_seq_btchw.shape
    OUT = weight.shape[0]
    HID = OUT // 4
    w_hwio = jnp.transpose(weight, (2, 3, 1, 0)).astype(jnp.float32)   # (K,K,IN,OUT)
    dn = ('NHWC', 'HWIO', 'NHWC')
    x_seq = jnp.transpose(x_seq_btchw, (1, 0, 3, 4, 2)).astype(jnp.float32)
    h = jnp.zeros((B, H, W, HID), jnp.float32)
    c = jnp.zeros((B, H, W, HID), jnp.float32)
    for t in range(T):
        combined = jnp.concatenate([x_seq[t], h], axis=-1)
        conv = lax.conv_general_dilated(
            combined, w_hwio, (1, 1), 'SAME', dimension_numbers=dn,
            precision=lax.Precision.HIGHEST) + bias.reshape(1, 1, 1, OUT)
        i = jax.nn.sigmoid(conv[..., 0 * HID:1 * HID])
        f = jax.nn.sigmoid(conv[..., 1 * HID:2 * HID])
        o = jax.nn.sigmoid(conv[..., 2 * HID:3 * HID])
        g = jnp.tanh(conv[..., 3 * HID:4 * HID])
        c = f * c + i * g
        h = o * jnp.tanh(c)
    return jnp.transpose(h, (0, 3, 1, 2))


if __name__ == "__main__":
    # ConvLSTM(input_dim=4, hidden_dim=32, kernel_size=3) on a small sequence.
    B, T, CIN, H, W = 2, 8, 4, 16, 16
    HID, K = 32, 3

    key = jax.random.PRNGKey(0)
    key_x, key_w, key_b = jax.random.split(key, 3)

    # Equivalent PyTorch parameters: Conv2d(CIN+HID, 4*HID, K, padding=K//2).
    x = jax.random.normal(key_x, (B, T, CIN, H, W), jnp.float32)
    weight = 0.1 * jax.random.normal(key_w, (4 * HID, CIN + HID, K, K), jnp.float32)
    bias = 0.1 * jax.random.normal(key_b, (4 * HID,), jnp.float32)

    fwd = jax.jit(conv_lstm_forward)
    h_pallas = jax.block_until_ready(fwd(x, weight, bias))
    h_ref = jax.block_until_ready(conv_lstm_reference(x, weight, bias))

    assert h_pallas.shape == (B, HID, H, W), h_pallas.shape
    max_err = float(jnp.max(jnp.abs(h_pallas - h_ref)))
    assert jnp.allclose(h_pallas, h_ref, atol=2e-3, rtol=2e-3), max_err
    print("KERNEL_OK")
</pallas_src>

<mosaic_0001>
module attributes {stable_mosaic.version = 11 : i64} {
  func.func @convlstm_step_kernel(%arg0: i32, %arg1: i32, %arg2: memref<1x36x512xf32, #tpu.memory_space<vmem>>, %arg3: memref<128x36xf32, #tpu.memory_space<vmem>>, %arg4: memref<128x288xf32, #tpu.memory_space<vmem>>, %arg5: memref<128x1xf32, #tpu.memory_space<vmem>>, %arg6: memref<9x512xf32, #tpu.memory_space<vmem>>, %arg7: memref<32x512xf32, #tpu.memory_space<vmem>>, %arg8: memref<32x768xf32, #tpu.memory_space<vmem>>, %arg9: memref<32x512xf32, #tpu.memory_space<vmem>>, %arg10: memref<288x512xf32, #tpu.memory_space<vmem>>) attributes {dimension_semantics = [#tpu.dimension_semantics<parallel>, #tpu.dimension_semantics<arbitrary>], iteration_bounds = array<i64: 1, 8>, scalar_prefetch = 0 : i64, scratch_operands = 3 : i64, tpu.core_type = #tpu.core_type<tc>, window_params = [{transform_indices = @transform_0, window_bounds = array<i64: 1, 36, 512>}, {pipeline_mode = #tpu.pipeline_mode<synchronous>, transform_indices = @transform_1, window_bounds = array<i64: 128, 36>}, {pipeline_mode = #tpu.pipeline_mode<synchronous>, transform_indices = @transform_2, window_bounds = array<i64: 128, 288>}, {pipeline_mode = #tpu.pipeline_mode<synchronous>, transform_indices = @transform_3, window_bounds = array<i64: 128, 1>}, {pipeline_mode = #tpu.pipeline_mode<synchronous>, transform_indices = @transform_4, window_bounds = array<i64: 9, 512>}, {transform_indices = @transform_5, window_bounds = array<i64: 32, 512>}]} {
    %c0_i32 = arith.constant 0 : i32
    %0 = arith.cmpi eq, %arg1, %c0_i32 : i32
    %1 = arith.extui %0 : i1 to i32
    %c0_i32_0 = arith.constant 0 : i32
    %2 = arith.cmpi ne, %1, %c0_i32_0 : i32
    scf.if %2 {
      %cst_116 = arith.constant 0.000000e+00 : f32
      %207 = vector.broadcast %cst_116 : f32 to vector<32x768xf32>
      %c0_117 = arith.constant 0 : index
      %c0_118 = arith.constant 0 : index
      %208 = vector.load %arg8[%c0_117, %c0_118] : memref<32x768xf32, #tpu.memory_space<vmem>>, vector<32x768xf32>
      tpu.vector_store %arg8[%c0_117, %c0_118], %207 {strides = array<i32>} : memref<32x768xf32, #tpu.memory_space<vmem>>, vector<32x768xf32>,
      %cst_119 = arith.constant 0.000000e+00 : f32
      %209 = vector.broadcast %cst_119 : f32 to vector<32x512xf32>
      %c0_120 = arith.constant 0 : index
      %c0_121 = arith.constant 0 : index
      %210 = vector.load %arg9[%c0_120, %c0_121] : memref<32x512xf32, #tpu.memory_space<vmem>>, vector<32x512xf32>
      tpu.vector_store %arg9[%c0_120, %c0_121], %209 {strides = array<i32>} : memref<32x512xf32, #tpu.memory_space<vmem>>, vector<32x512xf32>,
    } else {
    }
    %c0 = arith.constant 0 : index
    %c111 = arith.constant 111 : index
    %3 = vector.load %arg8[%c0, %c111] : memref<32x768xf32, #tpu.memory_space<vmem>>, vector<32x512xf32>
    %c0_1 = arith.constant 0 : index
    %c0_2 = arith.constant 0 : index
    %4 = vector.load %arg6[%c0_1, %c0_2] : memref<9x512xf32, #tpu.memory_space<vmem>>, vector<1x512xf32>
    %5 = vector.broadcast %4 : vector<1x512xf32> to vector<32x512xf32>
    %6 = arith.mulf %3, %5 : vector<32x512xf32>
    %c0_3 = arith.constant 0 : index
    %c0_4 = arith.constant 0 : index
    %7 = vector.load %arg10[%c0_3, %c0_4] : memref<288x512xf32, #tpu.memory_space<vmem>>, vector<32x512xf32>
    tpu.vector_store %arg10[%c0_3, %c0_4], %6 {strides = array<i32>} : memref<288x512xf32, #tpu.memory_space<vmem>>, vector<32x512xf32>,
    %c0_5 = arith.constant 0 : index
    %c112 = arith.constant 112 : index
    %8 = vector.load %arg8[%c0_5, %c112] : memref<32x768xf32, #tpu.memory_space<vmem>>, vector<32x512xf32>
    %c1 = arith.constant 1 : index
    %c0_6 = arith.constant 0 : index
    %9 = vector.load %arg6[%c1, %c0_6] : memref<9x512xf32, #tpu.memory_space<vmem>>, vector<1x512xf32>
    %10 = vector.broadcast %9 : vector<1x512xf32> to vector<32x512xf32>
    %11 = arith.mulf %8, %10 : vector<32x512xf32>
    %c32 = arith.constant 32 : index
    %c0_7 = arith.constant 0 : index
    %12 = vector.load %arg10[%c32, %c0_7] : memref<288x512xf32, #tpu.memory_space<vmem>>, vector<32x512xf32>
    tpu.vector_store %arg10[%c32, %c0_7], %11 {strides = array<i32>} : memref<288x512xf32, #tpu.memory_space<vmem>>, vector<32x512xf32>,
    %c0_8 = arith.constant 0 : index
    %c113 = arith.constant 113 : index
    %13 = vector.load %arg8[%c0_8, %c113] : memref<32x768xf32, #tpu.memory_space<vmem>>, vector<32x512xf32>
    %c2 = arith.constant 2 : index
    %c0_9 = arith.constant 0 : index
    %14 = vector.load %arg6[%c2, %c0_9] : memref<9x512xf32, #tpu.memory_space<vmem>>, vector<1x512xf32>
    %15 = vector.broadcast %14 : vector<1x512xf32> to vector<32x512xf32>
    %16 = arith.mulf %13, %15 : vector<32x512xf32>
    %c64 = arith.constant 64 : index
    %c0_10 = arith.constant 0 : index
    %17 = vector.load %arg10[%c64, %c0_10] : memref<288x512xf32, #tpu.memory_space<vmem>>, vector<32x512xf32>
    tpu.vector_store %arg10[%c64, %c0_10], %16 {strides = array<i32>} : memref<288x512xf32, #tpu.memory_space<vmem>>, vector<32x512xf32>,
    %c0_11 = arith.constant 0 : index
    %c127 = arith.constant 127 : index
    %18 = vector.load %arg8[%c0_11, %c127] : memref<32x768xf32, #tpu.memory_space<vmem>>, vector<32x512xf32>
    %c3 = arith.constant 3 : index
    %c0_12 = arith.constant 0 : index
    %19 = vector.load %arg6[%c3, %c0_12] : memref<9x512xf32, #tpu.memory_space<vmem>>, vector<1x512xf32>
    %20 = vector.broadcast %19 : vector<1x512xf32> to vector<32x512xf32>
    %21 = arith.mulf %18, %20 : vector<32x512xf32>
    %c96 = arith.constant 96 : index
    %c0_13 = arith.constant 0 : index
    %22 = vector.load %arg10[%c96, %c0_13] : memref<288x512xf32, #tpu.memory_space<vmem>>, vector<32x512xf32>
    tpu.vector_store %arg10[%c96, %c0_13], %21 {strides = array<i32>} : memref<288x512xf32, #tpu.memory_space<vmem>>, vector<32x512xf32>,
    %c0_14 = arith.constant 0 : index
    %c128 = arith.constant 128 : index
    %23 = vector.load %arg8[%c0_14, %c128] : memref<32x768xf32, #tpu.memory_space<vmem>>, vector<32x512xf32>
    %c4 = arith.constant 4 : index
    %c0_15 = arith.constant 0 : index
    %24 = vector.load %arg6[%c4, %c0_15] : memref<9x512xf32, #tpu.memory_space<vmem>>, vector<1x512xf32>
    %25 = vector.broadcast %24 : vector<1x512xf32> to vector<32x512xf32>
    %26 = arith.mulf %23, %25 : vector<32x512xf32>
    %c128_16 = arith.constant 128 : index
    %c0_17 = arith.constant 0 : index
    %27 = vector.load %arg10[%c128_16, %c0_17] : memref<288x512xf32, #tpu.memory_space<vmem>>, vector<32x512xf32>
    tpu.vector_store %arg10[%c128_16, %c0_17], %26 {strides = array<i32>} : memref<288x512xf32, #tpu.memory_space<vmem>>, vector<32x512xf32>,
    %c0_18 = arith.constant 0 : index
    %c129 = arith.constant 129 : index
    %28 = vector.load %arg8[%c0_18, %c129] : memref<32x768xf32, #tpu.memory_space<vmem>>, vector<32x512xf32>
    %c5 = arith.constant 5 : index
    %c0_19 = arith.constant 0 : index
    %29 = vector.load %arg6[%c5, %c0_19] : memref<9x512xf32, #tpu.memory_space<vmem>>, vector<1x512xf32>
    %30 = vector.broadcast %29 : vector<1x512xf32> to vector<32x512xf32>
    %31 = arith.mulf %28, %30 : vector<32x512xf32>
    %c160 = arith.constant 160 : index
    %c0_20 = arith.constant 0 : index
    %32 = vector.load %arg10[%c160, %c0_20] : memref<288x512xf32, #tpu.memory_space<vmem>>, vector<32x512xf32>
    tpu.vector_store %arg10[%c160, %c0_20], %31 {strides = array<i32>} : memref<288x512xf32, #tpu.memory_space<vmem>>, vector<32x512xf32>,
    %c0_21 = arith.constant 0 : index
    %c143 = arith.constant 143 : index
    %33 = vector.load %arg8[%c0_21, %c143] : memref<32x768xf32, #tpu.memory_space<vmem>>, vector<32x512xf32>
    %c6 = arith.constant 6 : index
    %c0_22 = arith.constant 0 : index
    %34 = vector.load %arg6[%c6, %c0_22] : memref<9x512xf32, #tpu.memory_space<vmem>>, vector<1x512xf32>
    %35 = vector.broadcast %34 : vector<1x512xf32> to vector<32x512xf32>
    %36 = arith.mulf %33, %35 : vector<32x512xf32>
    %c192 = arith.constant 192 : index
    %c0_23 = arith.constant 0 : index
    %37 = vector.load %arg10[%c192, %c0_23] : memref<288x512xf32, #tpu.memory_space<vmem>>, vector<32x512xf32>
    tpu.vector_store %arg10[%c192, %c0_23], %36 {strides = array<i32>} : memref<288x512xf32, #tpu.memory_space<vmem>>, vector<32x512xf32>,
    %c0_24 = arith.constant 0 : index
    %c144 = arith.constant 144 : index
    %38 = vector.load %arg8[%c0_24, %c144] : memref<32x768xf32, #tpu.memory_space<vmem>>, vector<32x512xf32>
    %c7 = arith.constant 7 : index
    %c0_25 = arith.constant 0 : index
    %39 = vector.load %arg6[%c7, %c0_25] : memref<9x512xf32, #tpu.memory_space<vmem>>, vector<1x512xf32>
    %40 = vector.broadcast %39 : vector<1x512xf32> to vector<32x512xf32>
    %41 = arith.mulf %38, %40 : vector<32x512xf32>
    %c224 = arith.constant 224 : index
    %c0_26 = arith.constant 0 : index
    %42 = vector.load %arg10[%c224, %c0_26] : memref<288x512xf32, #tpu.memory_space<vmem>>, vector<32x512xf32>
    tpu.vector_store %arg10[%c224, %c0_26], %41 {strides = array<i32>} : memref<288x512xf32, #tpu.memory_space<vmem>>, vector<32x512xf32>,
    %c0_27 = arith.constant 0 : index
    %c145 = arith.constant 145 : index
    %43 = vector.load %arg8[%c0_27, %c145] : memref<32x768xf32, #tpu.memory_space<vmem>>, vector<32x512xf32>
    %c8 = arith.constant 8 : index
    %c0_28 = arith.constant 0 : index
    %44 = vector.load %arg6[%c8, %c0_28] : memref<9x512xf32, #tpu.memory_space<vmem>>, vector<1x512xf32>
    %45 = vector.broadcast %44 : vector<1x512xf32> to vector<32x512xf32>
    %46 = arith.mulf %43, %45 : vector<32x512xf32>
    %c256 = arith.constant 256 : index
    %c0_29 = arith.constant 0 : index
    %47 = vector.load %arg10[%c256, %c0_29] : memref<288x512xf32, #tpu.memory_space<vmem>>, vector<32x512xf32>
    tpu.vector_store %arg10[%c256, %c0_29], %46 {strides = array<i32>} : memref<288x512xf32, #tpu.memory_space<vmem>>, vector<32x512xf32>,
    %c0_30 = arith.constant 0 : index
    %c0_31 = arith.constant 0 : index
    %48 = vector.load %arg3[%c0_30, %c0_31] : memref<128x36xf32, #tpu.memory_space<vmem>>, vector<128x36xf32>
    %c0_32 = arith.constant 0 : index
    %c0_33 = arith.constant 0 : index
    %c0_34 = arith.constant 0 : index
    %49 = vector.load %arg2[%c0_32, %c0_33, %c0_34] : memref<1x36x512xf32, #tpu.memory_space<vmem>>, vector<1x36x128xf32>
    %50 = vector.shape_cast %49 : vector<1x36x128xf32> to vector<36x128xf32>
    %cst = arith.constant dense<0.000000e+00> : vector<128x128xf32>
    %51 = tpu.matmul %48, %50, %cst {dimension_numbers = #tpu.dot_dimension_numbers<[1], [0], [0], [1], [0, 0, 1, 1], [], []>} : vector<128x36xf32>, vector<36x128xf32>, vector<128x128xf32> -> vector<128x128xf32>
    %c0_35 = arith.constant 0 : index
    %c0_36 = arith.constant 0 : index
    %52 = vector.load %arg4[%c0_35, %c0_36] : memref<128x288xf32, #tpu.memory_space<vmem>>, vector<128x288xf32>
    %c0_37 = arith.constant 0 : index
    %c0_38 = arith.constant 0 : index
    %53 = vector.load %arg10[%c0_37, %c0_38] : memref<288x512xf32, #tpu.memory_space<vmem>>, vector<288x128xf32>
    %cst_39 = arith.constant dense<0.000000e+00> : vector<128x128xf32>
    %54 = tpu.matmul %52, %53, %cst_39 {dimension_numbers = #tpu.dot_dimension_numbers<[1], [0], [0], [1], [0, 0, 1, 1], [], []>} : vector<128x288xf32>, vector<288x128xf32>, vector<128x128xf32> -> vector<128x128xf32>
    %55 = arith.addf %51, %54 : vector<128x128xf32>
    %c0_40 = arith.constant 0 : index
    %c0_41 = arith.constant 0 : index
    %56 = vector.load %arg5[%c0_40, %c0_41] : memref<128x1xf32, #tpu.memory_space<vmem>>, vector<128x1xf32>
    %57 = vector.broadcast %56 : vector<128x1xf32> to vector<128x128xf32>
    %58 = arith.addf %55, %57 : vector<128x128xf32>
    %59 = vector.extract_strided_slice %58 {offsets = [0, 0], sizes = [32, 128], strides = [1, 1]} : vector<128x128xf32> to vector<32x128xf32>
    %60 = arith.negf %59 : vector<32x128xf32>
    %61 = math.exp %60 : vector<32x128xf32>
    %cst_42 = arith.constant 1.000000e+00 : f32
    %62 = vector.broadcast %cst_42 : f32 to vector<32x128xf32>
    %63 = arith.addf %62, %61 : vector<32x128xf32>
    %64 = arith.divf %62, %63 : vector<32x128xf32>
    %65 = vector.extract_strided_slice %58 {offsets = [32, 0], sizes = [32, 128], strides = [1, 1]} : vector<128x128xf32> to vector<32x128xf32>
    %66 = arith.negf %65 : vector<32x128xf32>
    %67 = math.exp %66 : vector<32x128xf32>
    %cst_43 = arith.constant 1.000000e+00 : f32
    %68 = vector.broadcast %cst_43 : f32 to vector<32x128xf32>
    %69 = arith.addf %68, %67 : vector<32x128xf32>
    %70 = arith.divf %68, %69 : vector<32x128xf32>
    %71 = vector.extract_strided_slice %58 {offsets = [64, 0], sizes = [32, 128], strides = [1, 1]} : vector<128x128xf32> to vector<32x128xf32>
    %72 = arith.negf %71 : vector<32x128xf32>
    %73 = math.exp %72 : vector<32x128xf32>
    %cst_44 = arith.constant 1.000000e+00 : f32
    %74 = vector.broadcast %cst_44 : f32 to vector<32x128xf32>
    %75 = arith.addf %74, %73 : vector<32x128xf32>
    %76 = arith.divf %74, %75 : vector<32x128xf32>
    %77 = vector.extract_strided_slice %58 {offsets = [96, 0], sizes = [32, 128], strides = [1, 1]} : vector<128x128xf32> to vector<32x128xf32>
    %78 = math.tanh %77 : vector<32x128xf32>
    %c0_45 = arith.constant 0 : index
    %c0_46 = arith.constant 0 : index
    %79 = vector.load %arg9[%c0_45, %c0_46] : memref<32x512xf32, #tpu.memory_space<vmem>>, vector<32x128xf32>
    %80 = arith.mulf %70, %79 : vector<32x128xf32>
    %81 = arith.mulf %64, %78 : vector<32x128xf32>
    %82 = arith.addf %80, %81 : vector<32x128xf32>
    %c0_47 = arith.constant 0 : index
    %c0_48 = arith.constant 0 : index
    %83 = vector.load %arg9[%c0_47, %c0_48] : memref<32x512xf32, #tpu.memory_space<vmem>>, vector<32x128xf32>
    tpu.vector_store %arg9[%c0_47, %c0_48], %82 {strides = array<i32>} : memref<32x512xf32, #tpu.memory_space<vmem>>, vector<32x128xf32>,
    %84 = math.tanh %82 : vector<32x128xf32>
    %85 = arith.mulf %76, %84 : vector<32x128xf32>
    %c0_49 = arith.constant 0 : index
    %c128_50 = arith.constant 128 : index
    %86 = vector.load %arg8[%c0_49, %c128_50] : memref<32x768xf32, #tpu.memory_space<vmem>>, vector<32x128xf32>
    tpu.vector_store %arg8[%c0_49, %c128_50], %85 {strides = array<i32>} : memref<32x768xf32, #tpu.memory_space<vmem>>, vector<32x128xf32>,
    %c0_51 = arith.constant 0 : index
    %c0_52 = arith.constant 0 : index
    %87 = vector.load %arg3[%c0_51, %c0_52] : memref<128x36xf32, #tpu.memory_space<vmem>>, vector<128x36xf32>
    %c0_53 = arith.constant 0 : index
    %c0_54 = arith.constant 0 : index
    %c128_55 = arith.constant 128 : index
    %88 = vector.load %arg2[%c0_53, %c0_54, %c128_55] : memref<1x36x512xf32, #tpu.memory_space<vmem>>, vector<1x36x128xf32>
    %89 = vector.shape_cast %88 : vector<1x36x128xf32> to vector<36x128xf32>
    %cst_56 = arith.constant dense<0.000000e+00> : vector<128x128xf32>
    %90 = tpu.matmul %87, %89, %cst_56 {dimension_numbers = #tpu.dot_dimension_numbers<[1], [0], [0], [1], [0, 0, 1, 1], [], []>} : vector<128x36xf32>, vector<36x128xf32>, vector<128x128xf32> -> vector<128x128xf32>
    %c0_57 = arith.constant 0 : index
    %c0_58 = arith.constant 0 : index
    %91 = vector.load %arg4[%c0_57, %c0_58] : memref<128x288xf32, #tpu.memory_space<vmem>>, vector<128x288xf32>
    %c0_59 = arith.constant 0 : index
    %c128_60 = arith.constant 128 : index
    %92 = vector.load %arg10[%c0_59, %c128_60] : memref<288x512xf32, #tpu.memory_space<vmem>>, vector<288x128xf32>
    %cst_61 = arith.constant dense<0.000000e+00> : vector<128x128xf32>
    %93 = tpu.matmul %91, %92, %cst_61 {dimension_numbers = #tpu.dot_dimension_numbers<[1], [0], [0], [1], [0, 0, 1, 1], [], []>} : vector<128x288xf32>, vector<288x128xf32>, vector<128x128xf32> -> vector<128x128xf32>
    %94 = arith.addf %90, %93 : vector<128x128xf32>
    %c0_62 = arith.constant 0 : index
    %c0_63 = arith.constant 0 : index
    %95 = vector.load %arg5[%c0_62, %c0_63] : memref<128x1xf32, #tpu.memory_space<vmem>>, vector<128x1xf32>
    %96 = vector.broadcast %95 : vector<128x1xf32> to vector<128x128xf32>
    %97 = arith.addf %94, %96 : vector<128x128xf32>
    %98 = vector.extract_strided_slice %97 {offsets = [0, 0], sizes = [32, 128], strides = [1, 1]} : vector<128x128xf32> to vector<32x128xf32>
    %99 = arith.negf %98 : vector<32x128xf32>
    %100 = math.exp %99 : vector<32x128xf32>
    %cst_64 = arith.constant 1.000000e+00 : f32
    %101 = vector.broadcast %cst_64 : f32 to vector<32x128xf32>
    %102 = arith.addf %101, %100 : vector<32x128xf32>
    %103 = arith.divf %101, %102 : vector<32x128xf32>
    %104 = vector.extract_strided_slice %97 {offsets = [32, 0], sizes = [32, 128], strides = [1, 1]} : vector<128x128xf32> to vector<32x128xf32>
    %105 = arith.negf %104 : vector<32x128xf32>
    %106 = math.exp %105 : vector<32x128xf32>
    %cst_65 = arith.constant 1.000000e+00 : f32
    %107 = vector.broadcast %cst_65 : f32 to vector<32x128xf32>
    %108 = arith.addf %107, %106 : vector<32x128xf32>
    %109 = arith.divf %107, %108 : vector<32x128xf32>
    %110 = vector.extract_strided_slice %97 {offsets = [64, 0], sizes = [32, 128], strides = [1, 1]} : vector<128x128xf32> to vector<32x128xf32>
    %111 = arith.negf %110 : vector<32x128xf32>
    %112 = math.exp %111 : vector<32x128xf32>
    %cst_66 = arith.constant 1.000000e+00 : f32
    %113 = vector.broadcast %cst_66 : f32 to vector<32x128xf32>
    %114 = arith.addf %113, %112 : vector<32x128xf32>
    %115 = arith.divf %113, %114 : vector<32x128xf32>
    %116 = vector.extract_strided_slice %97 {offsets = [96, 0], sizes = [32, 128], strides = [1, 1]} : vector<128x128xf32> to vector<32x128xf32>
    %117 = math.tanh %116 : vector<32x128xf32>
    %c0_67 = arith.constant 0 : index
    %c128_68 = arith.constant 128 : index
    %118 = vector.load %arg9[%c0_67, %c128_68] : memref<32x512xf32, #tpu.memory_space<vmem>>, vector<32x128xf32>
    %119 = arith.mulf %109, %118 : vector<32x128xf32>
    %120 = arith.mulf %103, %117 : vector<32x128xf32>
    %121 = arith.addf %119, %120 : vector<32x128xf32>
    %c0_69 = arith.constant 0 : index
    %c128_70 = arith.constant 128 : index
    %122 = vector.load %arg9[%c0_69, %c128_70] : memref<32x512xf32, #tpu.memory_space<vmem>>, vector<32x128xf32>
    tpu.vector_store %arg9[%c0_69, %c128_70], %121 {strides = array<i32>} : memref<32x512xf32, #tpu.memory_space<vmem>>, vector<32x128xf32>,
    %123 = math.tanh %121 : vector<32x128xf32>
    %124 = arith.mulf %115, %123 : vector<32x128xf32>
    %c0_71 = arith.constant 0 : index
    %c256_72 = arith.constant 256 : index
    %125 = vector.load %arg8[%c0_71, %c256_72] : memref<32x768xf32, #tpu.memory_space<vmem>>, vector<32x128xf32>
    tpu.vector_store %arg8[%c0_71, %c256_72], %124 {strides = array<i32>} : memref<32x768xf32, #tpu.memory_space<vmem>>, vector<32x128xf32>,
    %c0_73 = arith.constant 0 : index
    %c0_74 = arith.constant 0 : index
    %126 = vector.load %arg3[%c0_73, %c0_74] : memref<128x36xf32, #tpu.memory_space<vmem>>, vector<128x36xf32>
    %c0_75 = arith.constant 0 : index
    %c0_76 = arith.constant 0 : index
    %c256_77 = arith.constant 256 : index
    %127 = vector.load %arg2[%c0_75, %c0_76, %c256_77] : memref<1x36x512xf32, #tpu.memory_space<vmem>>, vector<1x36x128xf32>
    %128 = vector.shape_cast %127 : vector<1x36x128xf32> to vector<36x128xf32>
    %cst_78 = arith.constant dense<0.000000e+00> : vector<128x128xf32>
    %129 = tpu.matmul %126, %128, %cst_78 {dimension_numbers = #tpu.dot_dimension_numbers<[1], [0], [0], [1], [0, 0, 1, 1], [], []>} : vector<128x36xf32>, vector<36x128xf32>, vector<128x128xf32> -> vector<128x128xf32>
    %c0_79 = arith.constant 0 : index
    %c0_80 = arith.constant 0 : index
    %130 = vector.load %arg4[%c0_79, %c0_80] : memref<128x288xf32, #tpu.memory_space<vmem>>, vector<128x288xf32>
    %c0_81 = arith.constant 0 : index
    %c256_82 = arith.constant 256 : index
    %131 = vector.load %arg10[%c0_81, %c256_82] : memref<288x512xf32, #tpu.memory_space<vmem>>, vector<288x128xf32>
    %cst_83 = arith.constant dense<0.000000e+00> : vector<128x128xf32>
    %132 = tpu.matmul %130, %131, %cst_83 {dimension_numbers = #tpu.dot_dimension_numbers<[1], [0], [0], [1], [0, 0, 1, 1], [], []>} : vector<128x288xf32>, vector<288x128xf32>, vector<128x128xf32> -> vector<128x128xf32>
    %133 = arith.addf %129, %132 : vector<128x128xf32>
    %c0_84 = arith.constant 0 : index
    %c0_85 = arith.constant 0 : index
    %134 = vector.load %arg5[%c0_84, %c0_85] : memref<128x1xf32, #tpu.memory_space<vmem>>, vector<128x1xf32>
    %135 = vector.broadcast %134 : vector<128x1xf32> to vector<128x128xf32>
    %136 = arith.addf %133, %135 : vector<128x128xf32>
    %137 = vector.extract_strided_slice %136 {offsets = [0, 0], sizes = [32, 128], strides = [1, 1]} : vector<128x128xf32> to vector<32x128xf32>
    %138 = arith.negf %137 : vector<32x128xf32>
    %139 = math.exp %138 : vector<32x128xf32>
    %cst_86 = arith.constant 1.000000e+00 : f32
    %140 = vector.broadcast %cst_86 : f32 to vector<32x128xf32>
    %141 = arith.addf %140, %139 : vector<32x128xf32>
    %142 = arith.divf %140, %141 : vector<32x128xf32>
    %143 = vector.extract_strided_slice %136 {offsets = [32, 0], sizes = [32, 128], strides = [1, 1]} : vector<128x128xf32> to vector<32x128xf32>
    %144 = arith.negf %143 : vector<32x128xf32>
    %145 = math.exp %144 : vector<32x128xf32>
    %cst_87 = arith.constant 1.000000e+00 : f32
    %146 = vector.broadcast %cst_87 : f32 to vector<32x128xf32>
    %147 = arith.addf %146, %145 : vector<32x128xf32>
    %148 = arith.divf %146, %147 : vector<32x128xf32>
    %149 = vector.extract_strided_slice %136 {offsets = [64, 0], sizes = [32, 128], strides = [1, 1]} : vector<128x128xf32> to vector<32x128xf32>
    %150 = arith.negf %149 : vector<32x128xf32>
    %151 = math.exp %150 : vector<32x128xf32>
    %cst_88 = arith.constant 1.000000e+00 : f32
    %152 = vector.broadcast %cst_88 : f32 to vector<32x128xf32>
    %153 = arith.addf %152, %151 : vector<32x128xf32>
    %154 = arith.divf %152, %153 : vector<32x128xf32>
    %155 = vector.extract_strided_slice %136 {offsets = [96, 0], sizes = [32, 128], strides = [1, 1]} : vector<128x128xf32> to vector<32x128xf32>
    %156 = math.tanh %155 : vector<32x128xf32>
    %c0_89 = arith.constant 0 : index
    %c256_90 = arith.constant 256 : index
    %157 = vector.load %arg9[%c0_89, %c256_90] : memref<32x512xf32, #tpu.memory_space<vmem>>, vector<32x128xf32>
    %158 = arith.mulf %148, %157 : vector<32x128xf32>
    %159 = arith.mulf %142, %156 : vector<32x128xf32>
    %160 = arith.addf %158, %159 : vector<32x128xf32>
    %c0_91 = arith.constant 0 : index
    %c256_92 = arith.constant 256 : index
    %161 = vector.load %arg9[%c0_91, %c256_92] : memref<32x512xf32, #tpu.memory_space<vmem>>, vector<32x128xf32>
    tpu.vector_store %arg9[%c0_91, %c256_92], %160 {strides = array<i32>} : memref<32x512xf32, #tpu.memory_space<vmem>>, vector<32x128xf32>,
    %162 = math.tanh %160 : vector<32x128xf32>
    %163 = arith.mulf %154, %162 : vector<32x128xf32>
    %c0_93 = arith.constant 0 : index
    %c384 = arith.constant 384 : index
    %164 = vector.load %arg8[%c0_93, %c384] : memref<32x768xf32, #tpu.memory_space<vmem>>, vector<32x128xf32>
    tpu.vector_store %arg8[%c0_93, %c384], %163 {strides = array<i32>} : memref<32x768xf32, #tpu.memory_space<vmem>>, vector<32x128xf32>,
    %c0_94 = arith.constant 0 : index
    %c0_95 = arith.constant 0 : index
    %165 = vector.load %arg3[%c0_94, %c0_95] : memref<128x36xf32, #tpu.memory_space<vmem>>, vector<128x36xf32>
    %c0_96 = arith.constant 0 : index
    %c0_97 = arith.constant 0 : index
    %c384_98 = arith.constant 384 : index
    %166 = vector.load %arg2[%c0_96, %c0_97, %c384_98] : memref<1x36x512xf32, #tpu.memory_space<vmem>>, vector<1x36x128xf32>
    %167 = vector.shape_cast %166 : vector<1x36x128xf32> to vector<36x128xf32>
    %cst_99 = arith.constant dense<0.000000e+00> : vector<128x128xf32>
    %168 = tpu.matmul %165, %167, %cst_99 {dimension_numbers = #tpu.dot_dimension_numbers<[1], [0], [0], [1], [0, 0, 1, 1], [], []>} : vector<128x36xf32>, vector<36x128xf32>, vector<128x128xf32> -> vector<128x128xf32>
    %c0_100 = arith.constant 0 : index
    %c0_101 = arith.constant 0 : index
    %169 = vector.load %arg4[%c0_100, %c0_101] : memref<128x288xf32, #tpu.memory_space<vmem>>, vector<128x288xf32>
    %c0_102 = arith.constant 0 : index
    %c384_103 = arith.constant 384 : index
    %170 = vector.load %arg10[%c0_102, %c384_103] : memref<288x512xf32, #tpu.memory_space<vmem>>, vector<288x128xf32>
    %cst_104 = arith.constant dense<0.000000e+00> : vector<128x128xf32>
    %171 = tpu.matmul %169, %170, %cst_104 {dimension_numbers = #tpu.dot_dimension_numbers<[1], [0], [0], [1], [0, 0, 1, 1], [], []>} : vector<128x288xf32>, vector<288x128xf32>, vector<128x128xf32> -> vector<128x128xf32>
    %172 = arith.addf %168, %171 : vector<128x128xf32>
    %c0_105 = arith.constant 0 : index
    %c0_106 = arith.constant 0 : index
    %173 = vector.load %arg5[%c0_105, %c0_106] : memref<128x1xf32, #tpu.memory_space<vmem>>, vector<128x1xf32>
    %174 = vector.broadcast %173 : vector<128x1xf32> to vector<128x128xf32>
    %175 = arith.addf %172, %174 : vector<128x128xf32>
    %176 = vector.extract_strided_slice %175 {offsets = [0, 0], sizes = [32, 128], strides = [1, 1]} : vector<128x128xf32> to vector<32x128xf32>
    %177 = arith.negf %176 : vector<32x128xf32>
    %178 = math.exp %177 : vector<32x128xf32>
    %cst_107 = arith.constant 1.000000e+00 : f32
    %179 = vector.broadcast %cst_107 : f32 to vector<32x128xf32>
    %180 = arith.addf %179, %178 : vector<32x128xf32>
    %181 = arith.divf %179, %180 : vector<32x128xf32>
    %182 = vector.extract_strided_slice %175 {offsets = [32, 0], sizes = [32, 128], strides = [1, 1]} : vector<128x128xf32> to vector<32x128xf32>
    %183 = arith.negf %182 : vector<32x128xf32>
    %184 = math.exp %183 : vector<32x128xf32>
    %cst_108 = arith.constant 1.000000e+00 : f32
    %185 = vector.broadcast %cst_108 : f32 to vector<32x128xf32>
    %186 = arith.addf %185, %184 : vector<32x128xf32>
    %187 = arith.divf %185, %186 : vector<32x128xf32>
    %188 = vector.extract_strided_slice %175 {offsets = [64, 0], sizes = [32, 128], strides = [1, 1]} : vector<128x128xf32> to vector<32x128xf32>
    %189 = arith.negf %188 : vector<32x128xf32>
    %190 = math.exp %189 : vector<32x128xf32>
    %cst_109 = arith.constant 1.000000e+00 : f32
    %191 = vector.broadcast %cst_109 : f32 to vector<32x128xf32>
    %192 = arith.addf %191, %190 : vector<32x128xf32>
    %193 = arith.divf %191, %192 : vector<32x128xf32>
    %194 = vector.extract_strided_slice %175 {offsets = [96, 0], sizes = [32, 128], strides = [1, 1]} : vector<128x128xf32> to vector<32x128xf32>
    %195 = math.tanh %194 : vector<32x128xf32>
    %c0_110 = arith.constant 0 : index
    %c384_111 = arith.constant 384 : index
    %196 = vector.load %arg9[%c0_110, %c384_111] : memref<32x512xf32, #tpu.memory_space<vmem>>, vector<32x128xf32>
    %197 = arith.mulf %187, %196 : vector<32x128xf32>
    %198 = arith.mulf %181, %195 : vector<32x128xf32>
    %199 = arith.addf %197, %198 : vector<32x128xf32>
    %c0_112 = arith.constant 0 : index
    %c384_113 = arith.constant 384 : index
    %200 = vector.load %arg9[%c0_112, %c384_113] : memref<32x512xf32, #tpu.memory_space<vmem>>, vector<32x128xf32>
    tpu.vector_store %arg9[%c0_112, %c384_113], %199 {strides = array<i32>} : memref<32x512xf32, #tpu.memory_space<vmem>>, vector<32x128xf32>,
    %201 = math.tanh %199 : vector<32x128xf32>
    %202 = arith.mulf %193, %201 : vector<32x128xf32>
    %c0_114 = arith.constant 0 : index
    %c512 = arith.constant 512 : index
    %203 = vector.load %arg8[%c0_114, %c512] : memref<32x768xf32, #tpu.memory_space<vmem>>, vector<32x128xf32>
    tpu.vector_store %arg8[%c0_114, %c512], %202 {strides = array<i32>} : memref<32x768xf32, #tpu.memory_space<vmem>>, vector<32x128xf32>,
    %c7_i32 = arith.constant 7 : i32
    %204 = arith.cmpi eq, %arg1, %c7_i32 : i32
    %205 = arith.extui %204 : i1 to i32
    %c0_i32_115 = arith.constant 0 : i32
    %206 = arith.cmpi ne, %205, %c0_i32_115 : i32
    scf.if %206 {
      %c0_116 = arith.constant 0 : index
      %c128_117 = arith.constant 128 : index
      %207 = vector.load %arg8[%c0_116, %c128_117] : memref<32x768xf32, #tpu.memory_space<vmem>>, vector<32x512xf32>
      %c0_118 = arith.constant 0 : index
      %c0_119 = arith.constant 0 : index
      %208 = vector.load %arg7[%c0_118, %c0_119] : memref<32x512xf32, #tpu.memory_space<vmem>>, vector<32x512xf32>
      tpu.vector_store %arg7[%c0_118, %c0_119], %207 {strides = array<i32>} : memref<32x512xf32, #tpu.memory_space<vmem>>, vector<32x512xf32>,
    } else {
    }
    return
  }
  func.func @transform_0(%arg0: i32, %arg1: i32) -> (i32, i32, i32) {
    %c0_i32 = arith.constant 0 : i32
    %c0_i32_0 = arith.constant 0 : i32
    return %arg1, %c0_i32, %arg0 : i32, i32, i32
  }
  func.func @transform_1(%arg0: i32, %arg1: i32) -> (i32, i32) {
    %c0_i32 = arith.constant 0 : i32
    %c0_i32_0 = arith.constant 0 : i32
    %c0_i32_1 = arith.constant 0 : i32
    return %c0_i32, %c0_i32_0 : i32, i32
  }
  func.func @transform_2(%arg0: i32, %arg1: i32) -> (i32, i32) {
    %c0_i32 = arith.constant 0 : i32
    %c0_i32_0 = arith.constant 0 : i32
    %c0_i32_1 = arith.constant 0 : i32
    return %c0_i32, %c0_i32_0 : i32, i32
  }
  func.func @transform_3(%arg0: i32, %arg1: i32) -> (i32, i32) {
    %c0_i32 = arith.constant 0 : i32
    %c0_i32_0 = arith.constant 0 : i32
    %c0_i32_1 = arith.constant 0 : i32
    return %c0_i32, %c0_i32_0 : i32, i32
  }
  func.func @transform_4(%arg0: i32, %arg1: i32) -> (i32, i32) {
    %c0_i32 = arith.constant 0 : i32
    %c0_i32_0 = arith.constant 0 : i32
    %c0_i32_1 = arith.constant 0 : i32
    return %c0_i32, %c0_i32_0 : i32, i32
  }
  func.func @transform_5(%arg0: i32, %arg1: i32) -> (i32, i32) {
    %c0_i32 = arith.constant 0 : i32
    %c0_i32_0 = arith.constant 0 : i32
    return %c0_i32, %arg0 : i32, i32
  }
}

</mosaic_0001>

<bundles_post_ra>
// kernel: conv_lstm_forward.1
= control target key start
LH: loop header
LB: loop body
LE: loop exit
PB: predicated region body
PF: predicated region fallthrough
CT: control target
= control target key end

     0   :  { %s7407_s18 = smov 0   ;;  %s7409_s19 = smov 0   ;;  %s10344_s0 = inlined_call_operand.vmem [shape: f32[8,36,512], index: 0, kind: input, shape index: {}]   ;;  %s10345_s1 = inlined_call_operand.vmem [shape: f32[128,36], index: 1, kind: input, shape index: {}]   ;;  %s10346_s2 = inlined_call_operand.vmem [shape: f32[128,288], index: 2, kind: input, shape index: {}]   ;;  %s10347_s3 = inlined_call_operand.vmem [shape: f32[128,1], index: 3, kind: input, shape index: {}]   ;;  %s10348_s4 = inlined_call_operand.vmem [shape: f32[9,512], index: 4, kind: input, shape index: {}]   ;;  %s10349_s5 = inlined_call_operand.vmem [shape: f32[32,512], index: 5, kind: output, shape index: {}]  }
   0x1   :  { %s7411_s20 = smov 0  }
   0x2 LB: > { %s24_s21 = sadd.s32 1, %s7361_s19  ;;  %p5386_p0 = scmp.ge.s32.totalorder %s7365_s20, 1  ;;  %s7365_s20 = sphi %s7411_s20, %s15_s20   ;;  %s7361_s19 = sphi %s7409_s19, %s10687_s19   ;;  %s7357_s18 = sphi %s7407_s18, %s10686_s18  }
   0x3   : > { %p25_p1 = scmp.ge.s32.totalorder %s24_s21, 8  ;;  %p206_p2 = scmp.lt.s32.totalorder %s7365_s20, 9 }
   0x5   : > { %s10689_s21 = smov (%p25_p1, %s24_s21), 0  ;;  %p207_p3 = pnand %p5386_p0, %p206_p2 }
   0x7   : > { %210 = sbr.rel (%p207_p3) target bundleno = 939 (0x3ab), region = 40 }
   0xe   : > { %p239_p4 = scmp.lt.s32.totalorder %s7357_s18, 7  ;;  %p5388_p5 = scmp.ne.s32.totalorder %s7357_s18, 0 }
   0xf   : > { %v7367_v0 = vmov (!%p5388_p5), 0.0  }
  0x10   : > { %s240_s22 = scalar_select %p239_p4, %s7357_s18, 7 }
  0x11   : > { %257 = sbr.rel (%p5388_p5) target bundleno = 37 (0x25), region = 44  ;;  %258 = vst [vmem:[#allocation2] sm:$0xff] (!%p5388_p5), %v7367_v0  ;;  %259 = vst [vmem:[#allocation2 + $0x8] sm:$0xff] (!%p5388_p5), %v7367_v0 }
  0x12   : > { %s6654_s23 = smul.u32 160, %s240_s22  ;;  %260 = vst [vmem:[#allocation2 + $0x10] sm:$0xff] (!%p5388_p5), %v7367_v0  ;;  %261 = vst [vmem:[#allocation2 + $0x18] sm:$0xff] (!%p5388_p5), %v7367_v0 }
  0x13   : > { %262 = vst [vmem:[#allocation2 + $0x20] sm:$0xff] (!%p5388_p5), %v7367_v0  ;;  %263 = vst [vmem:[#allocation2 + $0x28] sm:$0xff] (!%p5388_p5), %v7367_v0 }
  0x14   : > { %s7432_s26 = scalar_lea.vmem %s10344_s0, %s6654_s23  ;;  %264 = vst [vmem:[#allocation2 + $0x30] sm:$0xff] (!%p5388_p5), %v7367_v0  ;;  %265 = vst [vmem:[#allocation2 + $0x38] sm:$0xff] (!%p5388_p5), %v7367_v0 }
  0x15   : > { %266 = vst [vmem:[#allocation2 + $0x40] sm:$0xff] (!%p5388_p5), %v7367_v0  ;;  %267 = vst [vmem:[#allocation2 + $0x48] sm:$0xff] (!%p5388_p5), %v7367_v0 }
  0x16   : > { %268 = vst [vmem:[#allocation2 + $0x50] sm:$0xff] (!%p5388_p5), %v7367_v0  ;;  %269 = vst [vmem:[#allocation2 + $0x58] sm:$0xff] (!%p5388_p5), %v7367_v0 }
  0x17   : > { %270 = vst [vmem:[#allocation2 + $0x60] sm:$0xff] (!%p5388_p5), %v7367_v0  ;;  %271 = vst [vmem:[#allocation2 + $0x68] sm:$0xff] (!%p5388_p5), %v7367_v0 }
  0x18   : > { %272 = vst [vmem:[#allocation2 + $0x70] sm:$0xff] %v7367_v0  ;;  %273 = vst [vmem:[#allocation2 + $0x78] sm:$0xff] %v7367_v0 }
  0x19   : > { %274 = vst [vmem:[#allocation2 + $0x80] sm:$0xff] %v7367_v0  ;;  %275 = vst [vmem:[#allocation2 + $0x88] sm:$0xff] %v7367_v0 }
  0x1a   : > { %276 = vst [vmem:[#allocation2 + $0x90] sm:$0xff] %v7367_v0  ;;  %277 = vst [vmem:[#allocation2 + $0x98] sm:$0xff] %v7367_v0 }
  0x1b   : > { %278 = vst [vmem:[#allocation2 + $0xa0] sm:$0xff] %v7367_v0  ;;  %279 = vst [vmem:[#allocation2 + $0xa8] sm:$0xff] %v7367_v0 }
  0x1c   : > { %280 = vst [vmem:[#allocation2 + $0xb0] sm:$0xff] %v7367_v0  ;;  %281 = vst [vmem:[#allocation2 + $0xb8] sm:$0xff] %v7367_v0 }
  0x1d   : > { %282 = vst [vmem:[#allocation3] sm:$0xff] %v7367_v0  ;;  %283 = vst [vmem:[#allocation3 + $0x8] sm:$0xff] %v7367_v0 }
  0x1e   : > { %284 = vst [vmem:[#allocation3 + $0x10] sm:$0xff] %v7367_v0  ;;  %285 = vst [vmem:[#allocation3 + $0x18] sm:$0xff] %v7367_v0 }
  0x1f   : > { %286 = vst [vmem:[#allocation3 + $0x20] sm:$0xff] %v7367_v0  ;;  %287 = vst [vmem:[#allocation3 + $0x28] sm:$0xff] %v7367_v0 }
  0x20   : > { %288 = vst [vmem:[#allocation3 + $0x30] sm:$0xff] %v7367_v0  ;;  %289 = vst [vmem:[#allocation3 + $0x38] sm:$0xff] %v7367_v0 }
  0x21   : > { %290 = vst [vmem:[#allocation3 + $0x40] sm:$0xff] %v7367_v0  ;;  %291 = vst [vmem:[#allocation3 + $0x48] sm:$0xff] %v7367_v0 }
  0x22   : > { %292 = vst [vmem:[#allocation3 + $0x50] sm:$0xff] %v7367_v0  ;;  %293 = vst [vmem:[#allocation3 + $0x58] sm:$0xff] %v7367_v0 }
  0x23   : > { %294 = vst [vmem:[#allocation3 + $0x60] sm:$0xff] %v7367_v0  ;;  %295 = vst [vmem:[#allocation3 + $0x68] sm:$0xff] %v7367_v0 }
  0x24   : > { %296 = vst [vmem:[#allocation3 + $0x70] sm:$0xff] %v7367_v0  ;;  %297 = vst [vmem:[#allocation3 + $0x78] sm:$0xff] %v7367_v0 }
  0x25 PF: > { %v320_v1 = vlaneseq  ;;  %v7438_v3 = vld [vmem:[%s10348_s4 + $0x20] ss:$8 sm:$0xf]  ;;  %s7368_s6 = smov 17   ;;  %s7369_s7 = smov 111   ;;  %vm344_vm0 = vcmask 908288  }
  0x26   : > { %v318_v4 = vld [vmem:[%s10348_s4] ss:$8 sm:$0xf]  ;;  %v7460_v12 = vld [vmem:[%s10348_s4 + $0x5] ss:$8 sm:$0xf] }
  0x27   : > { %v321_v2 = vshrl.u32 %v320_v1, 7  ;;  %v7470_v15 = vld [vmem:[%s10348_s4 + $0x1] ss:$8 sm:$0xf]  ;;  %s7370_s12 = smov 1   ;;  %s7371_s15 = smov 112  }
  0x28   : > { %v7481_v18 = vld [vmem:[%s10348_s4 + $0x6] ss:$8 sm:$0xf]  ;;  %v7492_v21 = vld [vmem:[%s10348_s4 + $0x2] ss:$8 sm:$0xf] }
  0x29   : > { %v7443_v5 = vsub.s32 0, %v321_v2  ;;  %v7445_v6 = vsub.s32 1, %v321_v2  ;;  %v7455_v11 = vsub.s32 2, %v321_v2  ;;  %s7372_s22 = smov 15   ;;  %s7373_s25 = smov 113   ;;  %v7522_v30 = vsub.s32 3, %v321_v2 }
  0x2a   : > { %v7503_v24 = vld [vmem:[%s10348_s4 + $0x7] ss:$8 sm:$0xf]  ;;  %v7514_v27 = vld [vmem:[%s10348_s4 + $0x3] ss:$8 sm:$0xf] }
  0x2b   : > { %v1683_v7 = vrot.slane %v7438_v3, %v7443_v5  ;;  %v323_v8 = vrot.slane %v318_v4, %v7443_v5  ;;  %v1687_v9 = vrot.slane %v7438_v3, %v7445_v6  ;;  %v327_v10 = vrot.slane %v318_v4, %v7445_v6  ;;  %s7374_s29 = smov 16   ;;  %10495 = vst [vmem:[#allocation5_spill] sm:$0xff] %v7522_v30  ;;  %s7375_s30 = smov 127   ;;  %v302_v51 = vld [vmem:[#allocation2 + $0x20] sm:$0xff]  ;;  %v7568_v52 = vld [vmem:[#allocation2 + $0x30] sm:$0xff]  ;;  %v7575_v55 = vld [vmem:[#allocation2 + $0x18] sm:$0xff] }
  0x2c   : > { %v331_v13 = vrot.slane %v318_v4, %v7455_v11  ;;  %v1134_v14 = vrot.slane %v7460_v12, %v7443_v5  ;;  %v1138_v16 = vrot.slane %v7460_v12, %v7445_v6  ;;  %v508_v17 = vrot.slane %v7470_v15, %v7443_v5  ;;  %v7573_v54 = vld [vmem:[#allocation2 + $0x10] sm:$0xff]  ;;  %v7581_v58 = vld [vmem:[#allocation2 + $0x8] sm:$0xff]  ;;  %v7590_v62 = vld [vmem:[#allocation2 + $0x40] sm:$0xff]  ;;  %p5577_p6 = scmp.ne.s32.totalorder %s7357_s18, 7 }
  0x2d   : > { %1696 = vrot.lane.b32.xlu0 %v1683_v7, %s7368_s6  ;;  %336 = vrot.lane.b32.xlu1 %v323_v8, %s7369_s7  ;;  %v512_v19 = vrot.slane %v7470_v15, %v7445_v6  ;;  %v1317_v20 = vrot.slane %v7481_v18, %v7443_v5  ;;  %v1321_v22 = vrot.slane %v7481_v18, %v7445_v6  ;;  %vm433_vm1 = vcmask 138240   ;;  %v7595_v63 = vld [vmem:[%s10348_s4 + $0x4] ss:$8 sm:$0xf] }
  0x2e   : > { %v693_v23 = vrot.slane %v7492_v21, %v7443_v5  ;;  %v697_v25 = vrot.slane %v7492_v21, %v7445_v6  ;;  %v1500_v26 = vrot.slane %v7503_v24, %v7443_v5  ;;  %v1504_v28 = vrot.slane %v7503_v24, %v7445_v6  ;;  %v7601_v2 = vld [vmem:[#allocation2] sm:$0xff]  ;;  %v7604_v8 = vld [vmem:[#allocation2 + $0x38] sm:$0xff] }
  0x2f   : > { %v878_v29 = vrot.slane %v7514_v27, %v7443_v5  ;;  %v882_v31 = vrot.slane %v7514_v27, %v7445_v6  ;;  %v335_v32 = vrot.slane %v318_v4, %v7522_v30  ;;  %v516_v33 = vrot.slane %v7470_v15, %v7455_v11 }
  0x30   : > { %v1142_v34 = vrot.slane %v7460_v12, %v7455_v11  ;;  %v1325_v35 = vrot.slane %v7481_v18, %v7455_v11  ;;  %v701_v36 = vrot.slane %v7492_v21, %v7455_v11  ;;  %v1508_v37 = vrot.slane %v7503_v24, %v7455_v11 }
  0x31   : > { %1698 = vrot.lane.b32.xlu0 %v1687_v9, %s7368_s6  ;;  %338 = vrot.lane.b32.xlu1 %v327_v10, %s7369_s7  ;;  %v886_v38 = vrot.slane %v7514_v27, %v7455_v11  ;;  %v1691_v39 = vrot.slane %v7438_v3, %v7455_v11  ;;  %vm988_vm2 = vcmask 7168   ;;  %vm529_vm3 = vcmask 916480  }
  0x32   : > { %vm1945_vm4 = vcmask 261120   ;;  %vm803_vm5 = vcmask 121856   ;;  %vm714_vm6 = vcmask 924672   ;;  %vm618_vm7 = vcmask 130048  }
  0x33   : > { %vm899_vm8 = vcmask 1039360   ;;  %vm2333_vm9 = vcmask 1043456   ;;  %vm2284_vm10 = vcmask 293888  }
  0x35   : > { %340 = vrot.lane.b32.xlu0 %v331_v13, %s7369_s7  ;;  %1147 = vrot.lane.b32.xlu1 %v1134_v14, %s7370_s12  ;;  %v7612_v14 = vrot.slane %v7595_v63, %v7443_v5 }
  0x39   : > { %1149 = vrot.lane.b32.xlu0 %v1138_v16, %s7370_s12  ;;  %521 = vrot.lane.b32.xlu1 %v508_v17, %s7371_s15 }
  0x3d   : > { %523 = vrot.lane.b32.xlu0 %v512_v19, %s7371_s15  ;;  %1330 = vrot.lane.b32.xlu1 %v1317_v20, %s7372_s22 }
  0x41   : > { %1332 = vrot.lane.b32.xlu0 %v1321_v22, %s7372_s22  ;;  %706 = vrot.lane.b32.xlu1 %v693_v23, %s7373_s25 }
  0x45   : > { %708 = vrot.lane.b32.xlu0 %v697_v25, %s7373_s25  ;;  %1513 = vrot.lane.b32.xlu1 %v1500_v26, %s7374_s29  ;;  %v1076_v26 = vmul.f32 %v7612_v14, %v7581_v58 }
  0x49   : > { %1515 = vrot.lane.b32.xlu0 %v1504_v28, %s7374_s29  ;;  %891 = vrot.lane.b32.xlu1 %v878_v29, %s7375_s30  ;;  %v1080_v28 = vmul.f32 %v7612_v14, %v7604_v8  ;;  %v7629_v29 = vld [vmem:[#allocation2 + $0x68] sm:$0xff] }
  0x4d   : > { %893 = vrot.lane.b32.xlu0 %v882_v31, %s7375_s30  ;;  %342 = vrot.lane.b32.xlu1 %v335_v32, %s7369_s7  ;;  %v7631_v31 = vld [vmem:[#allocation2 + $0x70] sm:$0xff] }
  0x51   : > { %525 = vrot.lane.b32.xlu0 %v516_v33, %s7371_s15  ;;  %1151 = vrot.lane.b32.xlu1 %v1142_v34, %s7370_s12 }
  0x55   : > { %1334 = vrot.lane.b32.xlu0 %v1325_v35, %s7372_s22  ;;  %710 = vrot.lane.b32.xlu1 %v701_v36, %s7373_s25  ;;  %v7637_v36 = vld [vmem:[#allocation2 + $0x98] sm:$0xff] }
  0x59   : > { %1517 = vrot.lane.b32.xlu0 %v1508_v37, %s7374_s29  ;;  %895 = vrot.lane.b32.xlu1 %v886_v38, %s7375_s30  ;;  %v7639_v37 = vld [vmem:[#allocation2 + $0xa0] sm:$0xff] }
  0x5d   : > { %1700 = vrot.lane.b32.xlu0 %v1691_v39, %s7368_s6 }
  0x9f   : > { %v7552_v40 = vpop.permute.xlu1 %336  ;;  %v1697_v44 = vpop.permute.xlu0 %1696 }
  0xa0   : > { %v358_v60 = vmul.f32 %v7552_v40, %v7568_v52  ;;  %v353_v16 = vmul.f32 %v7552_v40, %v7601_v2  ;;  %v1712_v20 = vmul.f32 %v1697_v44, %v7581_v58  ;;  %v1717_v23 = vmul.f32 %v1697_v44, %v7604_v8 }
  0xa1   : > { %v1722_v34 = vmul.f32 %v1697_v44, %v7629_v29  ;;  %v1727_v39 = vmul.f32 %v1697_v44, %v7637_v36 }
  0xa3   : > { %v339_v41 = vpop.permute.xlu1 %338  ;;  %v7562_v47 = vpop.permute.xlu0 %1698 }
  0xa4   : > { %v345_v56 = vsel %vm344_vm0, %v7552_v40, %v339_v41  ;;  %v1704_v9 = vsel %vm433_vm1, %v1697_v44, %v7562_v47 }
  0xa5   : > { %v354_v7 = vmul.f32 %v345_v56, %v7581_v58  ;;  %v359_v17 = vmul.f32 %v345_v56, %v7604_v8  ;;  %v1713_v22 = vmul.f32 %v1704_v9, %v7573_v54  ;;  %v1718_v5 = vmul.f32 %v1704_v9, %v7590_v62 }
  0xa6   : > { %v1723_v35 = vmul.f32 %v1704_v9, %v7631_v31 }
  0xa7   : > { %v7554_v42 = vpop.permute.xlu1 %1147  ;;  %v341_v49 = vpop.permute.xlu0 %340  ;;  %v6694_v19 = vpack.i.bf16 %v354_v7, %v353_v16  ;;  %v6709_v33 = vpack.i.bf16 %v1713_v22, %v1712_v20  ;;  %v6714_v38 = vpack.i.bf16 %v1718_v5, %v1717_v23  ;;  %v1863_v7 = vld [vmem:[%s10346_s2 + $0x10] sm:$0xff] }
  0xa8   : > { %v7571_v53 = vsel %vm344_vm0, %v339_v41, %v341_v49  ;;  %v1728_v41 = vmul.f32 %v1704_v9, %v7639_v37  ;;  %6074 = vmatprep.mubr.msk.f32.mxu1 %vm1945_vm4, %v1863_v7  ;;  %v1163_v22 = vmul.f32 %v7554_v42, %v7581_v58 }
  0xa9   : > { %v355_v0 = vmul.f32 %v7571_v53, %v7573_v54  ;;  %v360_v13 = vmul.f32 %v7571_v53, %v7590_v62 }
  0xab   : > { %v7556_v43 = vpop.permute.xlu1 %521  ;;  %v6704_v25 = vpack.i.bf16 %v360_v13, %v359_v17  ;;  %v7633_v32 = vpop.permute.xlu0 %1149 }
  0xac   : > { %v1155_v44 = vsel %vm988_vm2, %v7554_v42, %v7633_v32 }
  0xad   : > { %v1169_v20 = vmul.f32 %v1155_v44, %v7590_v62 }
  0xaf   : > { %v7558_v45 = vpop.permute.xlu1 %1330  ;;  %v7657_v9 = vpop.permute.xlu0 %523 }
  0xb0   : > { %v530_v17 = vsel %vm529_vm3, %v7556_v43, %v7657_v9 }
  0xb3   : > { %v7560_v46 = vpop.permute.xlu1 %706 }
  0xb7   : > { %v7564_v48 = vpop.permute.xlu1 %1513 }
  0xbb   : > { %v7566_v50 = vpop.permute.xlu1 %891 }
  0xbf   : > { %v7579_v57 = vpop.permute.xlu1 %342 }
  0xc0   : > { %10496 = vst [vmem:[#allocation6_spill] sm:$0xff] %v7579_v57  ;;  %v357_v59 = vmul.f32 %v7579_v57, %v302_v51  ;;  %v7588_v61 = vsel %vm344_vm0, %v341_v49, %v7579_v57  ;;  %v6330_v49 = vpack.c.bf16 %v1080_v28, %v1076_v26  ;;  %v7645_v51 = vld [vmem:[#allocation2 + $0x60] sm:$0xff]  ;;  %v544_v26 = vmul.f32 %v530_v17, %v7604_v8 }
  0xc1   : > { %v356_v1 = vmul.f32 %v7588_v61, %v7575_v55  ;;  %v538_v28 = vmul.f32 %v7556_v43, %v7601_v2 }
  0xc2   : > { %v6689_v4 = vpack.i.bf16 %v358_v60, %v357_v59  ;;  %v6719_v59 = vpack.i.bf16 %v1723_v35, %v1722_v34  ;;  %v364_v60 = vmul.f32 %v7629_v29, %v345_v56  ;;  %6331 = vmatprep.subr.bf16.mxu0 %v6330_v49  ;;  %v7685_v34 = vpop.permute.xlu0 %1332  ;;  %v1173_v49 = vmul.f32 %v7629_v29, %v7554_v42 }
  0xc3   : > { %v6699_v10 = vpack.i.bf16 %v356_v1, %v355_v0  ;;  %v7648_v0 = vld [vmem:[#allocation2 + $0x90] sm:$0xff]  ;;  %v6724_v1 = vpack.i.bf16 %v1728_v41, %v1727_v39  ;;  %v1179_v41 = vmul.f32 %v7639_v37, %v1155_v44 }
  0xc4   : > { %6690 = vrot.lane.b32.xlu0 %v6689_v4, %s7368_s6  ;;  %v369_v4 = vmul.f32 %v7637_v36, %v345_v56  ;;  %v368_v13 = vmul.f32 %v7552_v40, %v7648_v0  ;;  %v1164_v56 = vmul.f32 %v1155_v44, %v7573_v54 }
  0xc5   : > { %6700 = vrot.lane.b32.xlu1 %v6699_v10, %s7368_s6  ;;  %v363_v10 = vmul.f32 %v7552_v40, %v7645_v51  ;;  %v1168_v40 = vmul.f32 %v7554_v42, %v7604_v8 }
  0xc6   : > { %v6739_v23 = vpack.i.bf16 %v1164_v56, %v1163_v22  ;;  %v1346_v22 = vmul.f32 %v7558_v45, %v7581_v58 }
  0xc7   : > { %v6729_v16 = vpack.i.bf16 %v364_v60, %v363_v10  ;;  %v6744_v5 = vpack.i.bf16 %v1169_v20, %v1168_v40  ;;  %v7700_v10 = vpop.permute.xlu0 %708 }
  0xc8   : > { %6695 = vrot.lane.b32.xlu0 %v6694_v19, %s7368_s6  ;;  %v6734_v19 = vpack.i.bf16 %v369_v4, %v368_v13  ;;  %v1338_v4 = vsel %vm803_vm5, %v7558_v45, %v7685_v34  ;;  %v548_v13 = vmul.f32 %v7556_v43, %v7645_v51 }
  0xc9   : > { %6705 = vrot.lane.b32.xlu1 %v6704_v25, %s7368_s6  ;;  %v539_v25 = vmul.f32 %v530_v17, %v7581_v58  ;;  %v1347_v56 = vmul.f32 %v1338_v4, %v7573_v54  ;;  %v1352_v20 = vmul.f32 %v1338_v4, %v7590_v62 }
  0xcb   : > { %v6749_v35 = vpack.i.bf16 %v539_v25, %v538_v28  ;;  %v6779_v40 = vpack.i.bf16 %v1347_v56, %v1346_v22  ;;  %v728_v28 = vmul.f32 %v7560_v46, %v7568_v52  ;;  %v1529_v22 = vmul.f32 %v7564_v48, %v7581_v58 }
  0xcc   : > { %6710 = vrot.lane.b32.xlu0 %v6709_v33, %s7369_s7  ;;  %v543_v33 = vmul.f32 %v7556_v43, %v7568_v52 }
  0xcd   : > { %6715 = vrot.lane.b32.xlu1 %v6714_v38, %s7369_s7  ;;  %v1174_v38 = vmul.f32 %v7631_v31, %v1155_v44  ;;  %v554_v44 = vmul.f32 %v7637_v36, %v530_v17 }
  0xce   : > { %v6754_v39 = vpack.i.bf16 %v544_v26, %v543_v33  ;;  %v723_v26 = vmul.f32 %v7560_v46, %v7601_v2  ;;  %v7727_v33 = vpop.permute.xlu0 %1515 }
  0xcf   : > { %v6759_v60 = vpack.i.bf16 %v1174_v38, %v1173_v49  ;;  %v1357_v38 = vmul.f32 %v7631_v31, %v1338_v4  ;;  %v1356_v49 = vmul.f32 %v7629_v29, %v7558_v45 }
  0xd0   : > { %6720 = vrot.lane.b32.xlu0 %v6719_v59, %s7369_s7  ;;  %v1178_v59 = vmul.f32 %v7637_v36, %v7554_v42  ;;  %v553_v42 = vmul.f32 %v7556_v43, %v7648_v0  ;;  %v1351_v43 = vmul.f32 %v7558_v45, %v7604_v8 }
  0xd1   : > { %6725 = vrot.lane.b32.xlu1 %v6724_v1, %s7369_s7  ;;  %v549_v1 = vmul.f32 %v7629_v29, %v530_v17  ;;  %v715_v17 = vsel %vm714_vm6, %v7560_v46, %v7700_v10 }
  0xd2   : > { %v6764_v7 = vpack.i.bf16 %v1179_v41, %v1178_v59  ;;  %v6784_v25 = vpack.i.bf16 %v1352_v20, %v1351_v43  ;;  %v1362_v41 = vmul.f32 %v7639_v37, %v1338_v4  ;;  %v1361_v59 = vmul.f32 %v7637_v36, %v7558_v45 }
  0xd3   : > { %v739_v4 = vmul.f32 %v7637_v36, %v715_v17  ;;  %v738_v45 = vmul.f32 %v7560_v46, %v7648_v0 }
  0xd4   : > { %6730 = vrot.lane.b32.xlu0 %v6729_v16, %s7368_s6  ;;  %v6769_v16 = vpack.i.bf16 %v549_v1, %v548_v13  ;;  %v734_v1 = vmul.f32 %v7629_v29, %v715_v17  ;;  %v7742_v13 = vpop.permute.xlu0 %893 }
  0xd5   : > { %6735 = vrot.lane.b32.xlu1 %v6734_v19, %s7368_s6  ;;  %v6774_v19 = vpack.i.bf16 %v554_v44, %v553_v42  ;;  %v6804_v44 = vpack.i.bf16 %v1362_v41, %v1361_v59  ;;  %v733_v42 = vmul.f32 %v7560_v46, %v7645_v51  ;;  %v1534_v46 = vmul.f32 %v7564_v48, %v7604_v8  ;;  %v7779_v59 = vpop.permute.xlu1 %1151 }
  0xd8   : > { %6740 = vrot.lane.b32.xlu0 %v6739_v23, %s7375_s30  ;;  %v724_v23 = vmul.f32 %v715_v17, %v7581_v58 }
  0xd9   : > { %6745 = vrot.lane.b32.xlu1 %v6744_v5, %s7375_s30  ;;  %v729_v5 = vmul.f32 %v715_v17, %v7604_v8  ;;  %v900_v17 = vsel %vm899_vm8, %v7566_v50, %v7742_v13 }
  0xda   : > { %v924_v41 = vmul.f32 %v7637_v36, %v900_v17 }
  0xdc   : > { %6750 = vrot.lane.b32.xlu0 %v6749_v35, %s7374_s29  ;;  %v6789_v35 = vpack.i.bf16 %v724_v23, %v723_v26  ;;  %v913_v26 = vmul.f32 %v7566_v50, %v7568_v52 }
  0xdd   : > { %6755 = vrot.lane.b32.xlu1 %v6754_v39, %s7374_s29  ;;  %v6794_v39 = vpack.i.bf16 %v729_v5, %v728_v28  ;;  %v908_v5 = vmul.f32 %v7566_v50, %v7601_v2  ;;  %v1539_v2 = vmul.f32 %v7629_v29, %v7564_v48 }
  0xe0   : > { %6760 = vrot.lane.b32.xlu0 %v6759_v60, %s7375_s30  ;;  %v6799_v60 = vpack.i.bf16 %v1357_v38, %v1356_v49  ;;  %v919_v49 = vmul.f32 %v7629_v29, %v900_v17 }
  0xe1   : > { %6765 = vrot.lane.b32.xlu1 %v6764_v7, %s7375_s30  ;;  %v1521_v7 = vsel %vm618_vm7, %v7564_v48, %v7727_v33 }
  0xe2   : > { %v1530_v56 = vmul.f32 %v1521_v7, %v7573_v54  ;;  %v1535_v20 = vmul.f32 %v1521_v7, %v7590_v62 }
  0xe4   : > { %6770 = vrot.lane.b32.xlu0 %v6769_v16, %s7374_s29  ;;  %v6809_v16 = vpack.i.bf16 %v734_v1, %v733_v42  ;;  %v6819_v43 = vpack.i.bf16 %v1530_v56, %v1529_v22  ;;  %v6824_v23 = vpack.i.bf16 %v1535_v20, %v1534_v46  ;;  %v918_v1 = vmul.f32 %v7566_v50, %v7645_v51  ;;  %v7796_v42 = vpop.permute.xlu0 %525 }
  0xe5   : > { %6775 = vrot.lane.b32.xlu1 %v6774_v19, %s7374_s29  ;;  %v6814_v19 = vpack.i.bf16 %v739_v4, %v738_v45  ;;  %v520_v51 = vrot.slane %v7470_v15, %v7522_v30  ;;  %v370_v56 = vmul.f32 %v7639_v37, %v7571_v53  ;;  %v7817_v15 = vld [vmem:[#allocation2 + $0x78] sm:$0xff] }
  0xe6   : > { %v6849_v4 = vpack.i.bf16 %v919_v49, %v918_v1 }
  0xe8   : > { %6780 = vrot.lane.b32.xlu0 %v6779_v40, %s7373_s25  ;;  %v909_v40 = vmul.f32 %v900_v17, %v7581_v58  ;;  %v1544_v58 = vmul.f32 %v7637_v36, %v7564_v48  ;;  %v7790_v48 = vld [vmem:[%s10346_s2 + $0x8] sm:$0xff] }
  0xe9   : > { %6785 = vrot.lane.b32.xlu1 %v6784_v25, %s7373_s25  ;;  %v914_v25 = vmul.f32 %v900_v17, %v7604_v8  ;;  %2058 = vmatprep.mubr.f32.mxu0 %v7790_v48  ;;  %v7819_v17 = vld [vmem:[#allocation2 + $0xa8] sm:$0xff] }
  0xea   : > { %v6829_v28 = vpack.i.bf16 %v909_v40, %v908_v5 }
  0xeb   : > { %v6834_v38 = vpack.i.bf16 %v914_v25, %v913_v26 }
  0xec   : > { %6790 = vrot.lane.b32.xlu0 %v6789_v35, %s7372_s22  ;;  %v1545_v35 = vmul.f32 %v7639_v37, %v1521_v7 }
  0xed   : > { %6795 = vrot.lane.b32.xlu1 %v6794_v39, %s7372_s22  ;;  %v1540_v39 = vmul.f32 %v7631_v31, %v1521_v7 }
  0xee   : > { %v6844_v8 = vpack.i.bf16 %v1545_v35, %v1544_v58 }
  0xef   : > { %v6839_v52 = vpack.i.bf16 %v1540_v39, %v1539_v2 }
  0xf0   : > { %6800 = vrot.lane.b32.xlu0 %v6799_v60, %s7373_s25  ;;  %v923_v60 = vmul.f32 %v7566_v50, %v7648_v0  ;;  %v1146_v50 = vrot.slane %v7460_v12, %v7522_v30  ;;  %v7804_v0 = vld [vmem:[#allocation2 + $0x48] sm:$0xff]  ;;  %v531_v12 = vsel %vm529_vm3, %v7657_v9, %v7796_v42 }
  0xf1   : > { %6805 = vrot.lane.b32.xlu1 %v6804_v44, %s7373_s25  ;;  %v1156_v44 = vsel %vm988_vm2, %v7633_v32, %v7779_v59  ;;  %v545_v40 = vmul.f32 %v531_v12, %v7590_v62  ;;  %v550_v35 = vmul.f32 %v7631_v31, %v531_v12 }
  0xf2   : > { %v6854_v7 = vpack.i.bf16 %v924_v41, %v923_v60  ;;  %v1165_v45 = vmul.f32 %v1156_v44, %v7575_v55  ;;  %v1170_v32 = vmul.f32 %v1156_v44, %v7804_v0  ;;  %v1175_v22 = vmul.f32 %v1156_v44, %v7817_v15 }
  0xf3   : > { %v1180_v46 = vmul.f32 %v1156_v44, %v7819_v17  ;;  %v1329_v41 = vrot.slane %v7481_v18, %v7522_v30  ;;  %v705_v18 = vrot.slane %v7492_v21, %v7522_v30 }
  0xf4   : > { %6810 = vrot.lane.b32.xlu0 %v6809_v16, %s7372_s22  ;;  %v365_v16 = vmul.f32 %v7631_v31, %v7571_v53  ;;  %v6864_v20 = vpack.i.bf16 %v1170_v32, %v1165_v45 }
  0xf5   : > { %6815 = vrot.lane.b32.xlu1 %v6814_v19, %s7372_s22  ;;  %v7821_v19 = vpop.permute.xlu0 %1334  ;;  %v6874_v25 = vpack.i.bf16 %v1180_v46, %v1175_v22 }
  0xf6   : > { %v1339_v53 = vsel %vm803_vm5, %v7685_v34, %v7821_v19  ;;  %v6859_v9 = vpack.i.bf16 %v370_v56, %v365_v16  ;;  %v555_v34 = vmul.f32 %v7639_v37, %v531_v12 }
  0xf7   : > { %v1348_v5 = vmul.f32 %v1339_v53, %v7575_v55  ;;  %v1353_v26 = vmul.f32 %v1339_v53, %v7804_v0  ;;  %v1363_v49 = vmul.f32 %v1339_v53, %v7819_v17 }
  0xf8   : > { %6820 = vrot.lane.b32.xlu0 %v6819_v43, %s7371_s15  ;;  %v540_v43 = vmul.f32 %v531_v12, %v7573_v54  ;;  %v6879_v58 = vpack.i.bf16 %v555_v34, %v550_v35  ;;  %v371_v35 = vmul.f32 %v7819_v17, %v7588_v61 }
  0xf9   : > { %6825 = vrot.lane.b32.xlu1 %v6824_v23, %s7371_s15  ;;  %v7831_v23 = vpop.permute.xlu1 %710  ;;  %v6884_v39 = vpack.i.bf16 %v1353_v26, %v1348_v5 }
  0xfc   : > { %6830 = vrot.lane.b32.xlu0 %v6829_v28, %s7370_s12  ;;  %v6869_v28 = vpack.i.bf16 %v545_v40, %v540_v43 }
  0xfd   : > { %6835 = vrot.lane.b32.xlu1 %v6834_v38, %s7370_s12  ;;  %v716_v38 = vsel %vm714_vm6, %v7700_v10, %v7831_v23  ;;  %v1358_v10 = vmul.f32 %v1339_v53, %v7817_v15  ;;  %v890_v53 = vrot.slane %v7514_v27, %v7522_v30  ;;  %v1695_v27 = vrot.slane %v7438_v3, %v7522_v30 }
  0xfe   : > { %v725_v2 = vmul.f32 %v716_v38, %v7573_v54  ;;  %v740_v45 = vmul.f32 %v7639_v37, %v716_v38 }
  0xff   : > { %v6894_v44 = vpack.i.bf16 %v1363_v49, %v1358_v10 }
 0x100   : > { %6845 = vrot.lane.b32.xlu0 %v6844_v8, %s7371_s15  ;;  %v730_v8 = vmul.f32 %v716_v38, %v7590_v62 }
 0x101   : > { %6840 = vrot.lane.b32.xlu1 %v6839_v52, %s7371_s15  ;;  %v7849_v52 = vpop.permute.xlu0 %1517 }
 0x102   : > { %v1522_v60 = vsel %vm618_vm7, %v7727_v33, %v7849_v52  ;;  %v6889_v1 = vpack.i.bf16 %v730_v8, %v725_v2  ;;  %v1088_v2 = vmul.f32 %v7637_v36, %v7612_v14 }
 0x103   : > { %v1546_v22 = vmul.f32 %v1522_v60, %v7819_v17 }
 0x104   : > { %6855 = vrot.lane.b32.xlu0 %v6854_v7, %s7370_s12  ;;  %v7857_v7 = vpop.permute.xlu1 %895 }
 0x105   : > { %6850 = vrot.lane.b32.xlu1 %v6849_v4, %s7370_s12  ;;  %v1531_v4 = vmul.f32 %v1522_v60, %v7575_v55  ;;  %v901_v33 = vsel %vm899_vm8, %v7742_v13, %v7857_v7  ;;  %v7873_v12 = vpop.permute.xlu0 %1700  ;;  %v1541_v13 = vmul.f32 %v1522_v60, %v7817_v15 }
 0x106   : > { %v910_v21 = vmul.f32 %v901_v33, %v7573_v54  ;;  %v915_v56 = vmul.f32 %v901_v33, %v7590_v62  ;;  %v1705_v46 = vsel %vm433_vm1, %v7562_v47, %v7873_v12  ;;  %v920_v40 = vmul.f32 %v7631_v31, %v901_v33 }
 0x107   : > { %v1719_v43 = vmul.f32 %v1705_v46, %v7804_v0  ;;  %v1724_v5 = vmul.f32 %v1705_v46, %v7817_v15  ;;  %v1729_v26 = vmul.f32 %v1705_v46, %v7819_v17 }
 0x108   : > { %1153 = vrot.lane.b32.xlu0 %v1146_v50, %s7370_s12  ;;  %v1536_v50 = vmul.f32 %v1522_v60, %v7804_v0  ;;  %v6909_v54 = vpack.i.bf16 %v915_v56, %v910_v21 }
 0x109   : > { %527 = vrot.lane.b32.xlu1 %v520_v51, %s7371_s15  ;;  %v735_v51 = vmul.f32 %v7631_v31, %v716_v38  ;;  %v361_v31 = vmul.f32 %v7804_v0, %v7588_v61 }
 0x10a   : > { %v6904_v32 = vpack.i.bf16 %v1536_v50, %v1531_v4 }
 0x10b   : > { %v6899_v16 = vpack.i.bf16 %v740_v45, %v735_v51 }
 0x10c   : > { %6865 = vrot.lane.b32.xlu0 %v6864_v20, %s7375_s30  ;;  %v1512_v20 = vrot.slane %v7503_v24, %v7522_v30  ;;  %v1714_v24 = vmul.f32 %v1705_v46, %v7575_v55  ;;  %v6929_v55 = vpack.i.bf16 %v1729_v26, %v1724_v5  ;;  %v1856_v46 = vld [vmem:[%s7432_s26] sm:$0xff]  ;;  %v8303_v30 = vld [vmem:[%s10345_s1 + $0x48] sm:$0xff] }
 0x10d   : > { %6860 = vrot.lane.b32.xlu1 %v6859_v9, %s7368_s6  ;;  %v6914_v9 = vpack.i.bf16 %v1546_v22, %v1541_v13  ;;  %10511 = vst [vmem:[#allocation21_spill] sm:$0xff] %v8303_v30 }
 0x10e   : > { %v6924_v47 = vpack.i.bf16 %v1719_v43, %v1714_v24 }
 0x110   : > { %6875 = vrot.lane.b32.xlu0 %v6874_v25, %s7375_s30  ;;  %v925_v25 = vmul.f32 %v7639_v37, %v901_v33  ;;  %v366_v37 = vmul.f32 %v7817_v15, %v7588_v61 }
 0x111   : > { %6870 = vrot.lane.b32.xlu1 %v6869_v28, %s7374_s29 }
 0x112   : > { %v6919_v28 = vpack.i.bf16 %v925_v25, %v920_v40  ;;  %v6934_v34 = vpack.i.bf16 %v366_v37, %v361_v31 }
 0x114   : > { %6885 = vrot.lane.b32.xlu0 %v6884_v39, %s7373_s25 }
 0x115   : > { %6880 = vrot.lane.b32.xlu1 %v6879_v58, %s7374_s29  ;;  %v1084_v58 = vmul.f32 %v7629_v29, %v7612_v14 }
 0x117   : > { %v6334_v29 = vpack.c.bf16 %v1088_v2, %v1084_v58  ;;  %v7985_v58 = vrot.slane %v7595_v63, %v7445_v6 }
 0x118   : > { %1336 = vrot.lane.b32.xlu0 %v1329_v41, %s7372_s22 }
 0x119   : > { %6890 = vrot.lane.b32.xlu1 %v6889_v1, %s7372_s22 }
 0x11c   : > { %6895 = vrot.lane.b32.xlu0 %v6894_v44, %s7373_s25 }
 0x11d   : > { %712 = vrot.lane.b32.xlu1 %v705_v18, %s7373_s25 }
 0x120   : > { %6905 = vrot.lane.b32.xlu0 %v6904_v32, %s7371_s15 }
 0x121   : > { %6900 = vrot.lane.b32.xlu1 %v6899_v16, %s7372_s22 }
 0x124   : > { %1519 = vrot.lane.b32.xlu0 %v1512_v20, %s7374_s29 }
 0x125   : > { %6910 = vrot.lane.b32.xlu1 %v6909_v54, %s7370_s12  ;;  %v1857_v54 = vld [vmem:[%s7432_s26 + $0x20] sm:$0xff] }
 0x126   : > { %v6370_v5 = vpack.c.bf16 %v1857_v54, %v1856_v46 }
 0x128   : > { %6915 = vrot.lane.b32.xlu0 %v6914_v9, %s7371_s15 }
 0x129   : > { %897 = vrot.lane.b32.xlu1 %v890_v53, %s7375_s30 }
 0x12c   : > { %6925 = vrot.lane.b32.xlu0 %v6924_v47, %s7369_s7 }
 0x12d   : > { %6920 = vrot.lane.b32.xlu1 %v6919_v28, %s7370_s12 }
 0x130   : > { %6930 = vrot.lane.b32.xlu0 %v6929_v55, %s7369_s7  ;;  %v1859_v55 = vld [vmem:[%s7432_s26 + $0x60] sm:$0xff] }
 0x131   : > { %1702 = vrot.lane.b32.xlu1 %v1695_v27, %s7368_s6  ;;  %v1858_v27 = vld [vmem:[%s7432_s26 + $0x40] sm:$0xff] }
 0x134   : > { %429 = vrot.lane.b32.xlu0 %v371_v35, %s7368_s6 }
 0x135   : > { %6935 = vrot.lane.b32.xlu1 %v6934_v34, %s7368_s6  ;;  %v1866_v34 = vld [vmem:[%s10346_s2 + $0x28] sm:$0xff] }
 0x136   : > { %v7910_v3 = vpop.permute.xlu0 %6690 }
 0x137   : > { %10497 = vst [vmem:[#allocation7_spill] sm:$0xff] %v7910_v3  ;;  %v7912_v38 = vpop.permute.xlu1 %6700  ;;  %v6693_v10 = vunpack.i.h.bf16 %v7910_v3  ;;  %v8289_v3 = vld [vmem:[#allocation2 + $0x18] sm:$0xff] }
 0x138   : > { %10498 = vst [vmem:[#allocation8_spill] sm:$0xff] %v7912_v38 }
 0x13a   : > { %v7914_v39 = vpop.permute.xlu0 %6695 }
 0x13b   : > { %v6698_v8 = vunpack.i.h.bf16 %v7914_v39  ;;  %v6697_v61 = vunpack.i.l.bf16 %v7914_v39  ;;  %v7922_v41 = vpop.permute.xlu1 %6705 }
 0x13c   : > { %10499 = vst [vmem:[#allocation9_spill] sm:$0xff] %v7922_v41  ;;  %v6707_v49 = vunpack.i.l.bf16 %v7922_v41 }
 0x13d   : > { %v434_v60 = vsel %vm433_vm1, %v6697_v61, %v6698_v8 }
 0x13e   : > { %v7929_v1 = vpop.permute.xlu0 %6710  ;;  %v438_v14 = vsel %vm433_vm1, %v6693_v10, %v6707_v49 }
 0x13f   : > { %v10353_v36 = vunpack.i.h.bf16 %v7929_v1  ;;  %v6712_v18 = vunpack.i.l.bf16 %v7929_v1  ;;  %v7936_v44 = vpop.permute.xlu1 %6715  ;;  %v6332_v4 = vpack.c.bf16 %v438_v14, %v434_v60  ;;  %v1869_v14 = vld [vmem:[%s10346_s2 + $0x40] sm:$0xff] }
 0x140   : > { %v10352_v50 = vunpack.i.h.bf16 %v7936_v44  ;;  %v6717_v51 = vunpack.i.l.bf16 %v7936_v44 }
 0x141   : > { %6333 = vmatpush3.bf16.msra.mxu0 %v6332_v4  ;;  %v1792_v45 = vsel %vm344_vm0, %v6712_v18, %v10353_v36  ;;  %v1038_v18 = vld [vmem:[#allocation2 + $0x10] sm:$0xff] }
 0x142   : > { %v7943_v33 = vpop.permute.xlu0 %6720  ;;  %v1796_v32 = vsel %vm344_vm0, %v6717_v51, %v10352_v50  ;;  %6335 = vmatprep.subr.bf16.mxu0 %v6334_v29  ;;  %v6374_v29 = vpack.c.bf16 %v1859_v55, %v1858_v27  ;;  %v1878_v55 = vld [vmem:[%s10346_s2 + $0x88] sm:$0xff] }
 0x143   : > { %10500 = vst [vmem:[#allocation10_spill] sm:$0xff] %v7943_v33  ;;  %v10351_v16 = vunpack.i.h.bf16 %v7943_v33  ;;  %v6722_v21 = vunpack.i.l.bf16 %v7943_v33  ;;  %v7950_v56 = vpop.permute.xlu1 %6725  ;;  %v6362_v20 = vpack.c.bf16 %v1796_v32, %v1792_v45  ;;  %v1872_v32 = vld [vmem:[%s10346_s2 + $0x58] sm:$0xff] }
 0x144   : > { %10501 = vst [vmem:[#allocation11_spill] sm:$0xff] %v7950_v56  ;;  %v10350_v13 = vunpack.i.h.bf16 %v7950_v56  ;;  %v6727_v22 = vunpack.i.l.bf16 %v7950_v56 }
 0x145   : > { %6363 = vmatprep.subr.bf16.mxu1 %v6362_v20  ;;  %v1800_v53 = vsel %vm344_vm0, %v6722_v21, %v10351_v16  ;;  %v1077_v21 = vmul.f32 %v7985_v58, %v1038_v18 }
 0x146   : > { %v7959_v9 = vpop.permute.xlu0 %6730  ;;  %6365 = vmatpush3.bf16.msra.mxu1 %v6362_v20  ;;  %v1804_v24 = vsel %vm344_vm0, %v6727_v22, %v10350_v13 }
 0x147   : > { %v10377_v43 = vunpack.i.h.bf16 %v7959_v9  ;;  %v6732_v40 = vunpack.i.l.bf16 %v7959_v9  ;;  %v7966_v25 = vpop.permute.xlu1 %6735  ;;  %v6366_v47 = vpack.c.bf16 %v1804_v24, %v1800_v53  ;;  %v1875_v53 = vld [vmem:[%s10346_s2 + $0x70] sm:$0xff]  ;;  %v1081_v24 = vmul.f32 %v7985_v58, %v7590_v62 }
 0x148   : > { %v10375_v26 = vunpack.i.h.bf16 %v7966_v25  ;;  %v6737_v28 = vunpack.i.l.bf16 %v7966_v25  ;;  %v10520_v56 = vunpack.i.h.bf16 %v7966_v25  ;;  %v8397_v25 = vld [vmem:[%s10346_s2 + $0x38] sm:$0xff] }
 0x149   : > { %6367 = vmatprep.subr.bf16.mxu1 %v6366_v47  ;;  %v442_v31 = vsel %vm433_vm1, %v6732_v40, %v10377_v43  ;;  %v7376_v43 = vmov 0  }
 0x14a   : > { %v7975_v37 = vpop.permute.xlu0 %6740  ;;  %6369 = vmatpush3.bf16.msra.mxu1 %v6366_v47  ;;  %v446_v35 = vsel %vm433_vm1, %v6737_v28, %v10375_v26  ;;  %v8273_v26 = vld [vmem:[%s10345_s1 + $0x40] sm:$0xff]  ;;  %7084 = vset.pattern.permute.xlu1 %v7376_v43 }
 0x14b   : > { %v10379_v2 = vunpack.i.h.bf16 %v7975_v37  ;;  %v6742_v61 = vunpack.i.l.bf16 %v7975_v37  ;;  %v7989_v10 = vpop.permute.xlu1 %6745  ;;  %v6336_v60 = vpack.c.bf16 %v446_v35, %v442_v31  ;;  %6371 = vmatprep.subr.bf16.mxu1 %v6370_v5  ;;  %10508 = vst [vmem:[#allocation18_spill] sm:$0xff] %v8273_v26  ;;  %7085 = vset.pattern.permute.xlu0 %v7376_v43 }
 0x14c   : > { %v10378_v4 = vunpack.i.h.bf16 %v7989_v10  ;;  %v6747_v51 = vunpack.i.l.bf16 %v7989_v10 }
 0x14d   : > { %6337 = vmatpush3.bf16.msra.mxu0 %v6336_v60  ;;  %6075 = vmatmul.mubr.msk.f32.vlgmr.msra.gmra.mrb[0].mxu1 %vm1945_vm4, %v1866_v34  ;;  %v1243_v6 = vsel %vm899_vm8, %v6742_v61, %v10379_v2  ;;  %v1881_v60 = vld [vmem:[%s10346_s2 + $0xa0] sm:$0xff] }
 0x14e   : > { %v8000_v63 = vpop.permute.xlu0 %6750  ;;  %6077 = vmatprep.mubr.msk.f32.mxu1 %vm1945_vm4, %v1869_v14  ;;  %v1247_v45 = vsel %vm899_vm8, %v6747_v51, %v10378_v4  ;;  %6373 = vmatpush3.bf16.msra.mxu1 %v6370_v5  ;;  %v1860_v5 = vld [vmem:[%s7432_s26 + $0x80] sm:$0xf]  ;;  %v6378_v14 = vpack.c.bf16 %v1081_v24, %v1077_v21  ;;  %v1887_v24 = vld [vmem:[%s10346_s2 + $0xd0] sm:$0xff] }
 0x14f   : > { %v10363_v20 = vunpack.i.h.bf16 %v8000_v63  ;;  %v6752_v22 = vunpack.i.l.bf16 %v8000_v63  ;;  %v8012_v46 = vpop.permute.xlu1 %6755  ;;  %v6338_v54 = vpack.c.bf16 %v1247_v45, %v1243_v6  ;;  %6375 = vmatprep.subr.bf16.mxu1 %v6374_v29  ;;  %v8280_v2 = vld [vmem:[#allocation2 + $0x20] sm:$0xff] }
 0x150   : > { %v10361_v40 = vunpack.i.h.bf16 %v8012_v46  ;;  %v6757_v47 = vunpack.i.l.bf16 %v8012_v46 }
 0x151   : > { %6339 = vmatprep.subr.bf16.mxu0 %v6338_v54  ;;  %6078 = vmatmul.mubr.msk.f32.gmra.mrb[2].mxu1 %vm1945_vm4, %v1872_v32  ;;  %v619_v28 = vsel %vm618_vm7, %v6752_v22, %v10363_v20  ;;  %v1884_v32 = vld [vmem:[%s10346_s2 + $0xb8] sm:$0xff] }
 0x152   : > { %v8026_v27 = vpop.permute.xlu0 %6760  ;;  %6080 = vmatprep.mubr.msk.f32.mxu1 %vm1945_vm4, %v1875_v53  ;;  %v623_v62 = vsel %vm618_vm7, %v6757_v47, %v10361_v40  ;;  %6377 = vmatpush3.bf16.msra.mxu1 %v6374_v29 }
 0x153   : > { %v10374_v31 = vunpack.i.h.bf16 %v8026_v27  ;;  %v6762_v35 = vunpack.i.l.bf16 %v8026_v27  ;;  %v8037_v34 = vpop.permute.xlu1 %6765  ;;  %v6340_v61 = vpack.c.bf16 %v623_v62, %v619_v28  ;;  %6106 = vmatprep.subr.msk.mxu1 %vm2333_vm9, %v1860_v5 }
 0x154   : > { %v10372_v18 = vunpack.i.h.bf16 %v8037_v34  ;;  %v6767_v51 = vunpack.i.l.bf16 %v8037_v34 }
 0x155   : > { %6341 = vmatpush3.bf16.msra.mxu0 %v6340_v61  ;;  %6081 = vmatmul.mubr.msk.f32.gmra.mrb[4].mxu1 %vm1945_vm4, %v1878_v55  ;;  %v1251_v29 = vsel %vm899_vm8, %v6762_v35, %v10374_v31  ;;  %v1890_v35 = vld [vmem:[%s10346_s2 + $0xe8] sm:$0xff] }
 0x156   : > { %v8049_v6 = vpop.permute.xlu0 %6770  ;;  %6083 = vmatprep.mubr.msk.f32.mxu1 %vm1945_vm4, %v1881_v60  ;;  %v1255_v45 = vsel %vm899_vm8, %v6767_v51, %v10372_v18  ;;  %6107 = vmatpush3.msk.msra.mxu1 %vm2333_vm9, %v1860_v5 }
 0x157   : > { %v10357_v21 = vunpack.i.h.bf16 %v8049_v6  ;;  %v6772_v22 = vunpack.i.l.bf16 %v8049_v6  ;;  %v8061_v54 = vpop.permute.xlu1 %6775  ;;  %v6342_v53 = vpack.c.bf16 %v1255_v45, %v1251_v29  ;;  %6379 = vmatprep.subr.bf16.mxu1 %v6378_v14  ;;  %v1893_v29 = vld [vmem:[%s10346_s2 + $0x100] sm:$0xff] }
 0x158   : > { %v10355_v47 = vunpack.i.h.bf16 %v8061_v54  ;;  %v6777_v28 = vunpack.i.l.bf16 %v8061_v54 }
 0x159   : > { %6343 = vmatprep.subr.bf16.mxu0 %v6342_v53  ;;  %6084 = vmatmul.mubr.msk.f32.gmra.mrb[6].mxu1 %vm1945_vm4, %v1884_v32  ;;  %v627_v5 = vsel %vm618_vm7, %v6772_v22, %v10357_v21 }
 0x15a   : > { %v8072_v62 = vpop.permute.xlu0 %6780  ;;  %6086 = vmatprep.mubr.msk.f32.mxu1 %vm1945_vm4, %v1887_v24  ;;  %v631_v55 = vsel %vm618_vm7, %v6777_v28, %v10355_v47  ;;  %v1896_v28 = vld [vmem:[%s10346_s2 + $0x118] sm:$0xff] }
 0x15b   : > { %v10359_v61 = vunpack.i.h.bf16 %v8072_v62  ;;  %v6782_v60 = vunpack.i.l.bf16 %v8072_v62  ;;  %v8083_v14 = vpop.permute.xlu1 %6785  ;;  %v6344_v51 = vpack.c.bf16 %v631_v55, %v627_v5 }
 0x15c   : > { %v10358_v45 = vunpack.i.h.bf16 %v8083_v14  ;;  %v6787_v32 = vunpack.i.l.bf16 %v8083_v14 }
 0x15d   : > { %6345 = vmatpush3.bf16.msra.mxu0 %v6344_v51  ;;  %6087 = vmatmul.mubr.msk.f32.gmra.mrb[8].mxu1 %vm1945_vm4, %v1890_v35  ;;  %v1426_v22 = vsel %vm714_vm6, %v6782_v60, %v10359_v61  ;;  %v1899_v60 = vld [vmem:[%s10346_s2 + $0x130] sm:$0xff]  ;;  %v10365_v61 = vunpack.i.l.bf16 %v7912_v38  ;;  %v10516_v38 = vunpack.i.h.bf16 %v7989_v10 }
 0x15e   : > { %v8094_v53 = vpop.permute.xlu0 %6790  ;;  %6089 = vmatprep.mubr.msk.f32.mxu1 %vm1945_vm4, %v1893_v29  ;;  %v1430_v24 = vsel %vm714_vm6, %v6787_v32, %v10358_v45  ;;  %v1908_v45 = vld [vmem:[%s10346_s2 + $0x178] sm:$0xff] }
 0x15f   : > { %v10354_v5 = vunpack.i.h.bf16 %v8094_v53  ;;  %v6792_v55 = vunpack.i.l.bf16 %v8094_v53  ;;  %v8105_v35 = vpop.permute.xlu1 %6795  ;;  %v6346_v51 = vpack.c.bf16 %v1430_v24, %v1426_v22  ;;  %v1902_v24 = vld [vmem:[%s10346_s2 + $0x148] sm:$0xff] }
 0x160   : > { %v10356_v29 = vunpack.i.h.bf16 %v8105_v35  ;;  %v6797_v13 = vunpack.i.l.bf16 %v8105_v35 }
 0x161   : > { %6347 = vmatprep.subr.bf16.mxu0 %v6346_v51  ;;  %6090 = vmatmul.mubr.msk.f32.gmra.mrb[10].mxu1 %vm1945_vm4, %v1896_v28  ;;  %v804_v32 = vsel %vm803_vm5, %v6792_v55, %v10354_v5  ;;  %v1905_v55 = vld [vmem:[%s10346_s2 + $0x160] sm:$0xff] }
 0x162   : > { %v8116_v16 = vpop.permute.xlu0 %6800  ;;  %6092 = vmatprep.mubr.msk.f32.mxu1 %vm1945_vm4, %v1899_v60  ;;  %v808_v22 = vsel %vm803_vm5, %v6797_v13, %v10356_v29  ;;  %v1046_v60 = vld [vmem:[#allocation2 + $0x70] sm:$0xff]  ;;  %v1050_v5 = vld [vmem:[#allocation2 + $0xa0] sm:$0xff]  ;;  %v10364_v29 = vunpack.i.h.bf16 %v7922_v41 }
 0x163   : > { %v10360_v51 = vunpack.i.h.bf16 %v8116_v16  ;;  %v6802_v28 = vunpack.i.l.bf16 %v8116_v16  ;;  %v8127_v50 = vpop.permute.xlu1 %6805  ;;  %v6348_v36 = vpack.c.bf16 %v808_v22, %v804_v32 }
 0x164   : > { %v10362_v47 = vunpack.i.h.bf16 %v8127_v50  ;;  %v6807_v13 = vunpack.i.l.bf16 %v8127_v50 }
 0x165   : > { %6349 = vmatpush3.bf16.msra.mxu0 %v6348_v36  ;;  %6093 = vmatmul.mubr.msk.f32.gmra.mrb[12].mxu1 %vm1945_vm4, %v1902_v24  ;;  %v1434_v21 = vsel %vm714_vm6, %v6802_v28, %v10360_v51  ;;  %v1085_v36 = vmul.f32 %v7985_v58, %v1046_v60  ;;  %v1089_v24 = vmul.f32 %v7985_v58, %v1050_v5 }
 0x166   : > { %v8139_v32 = vpop.permute.xlu0 %6810  ;;  %6095 = vmatprep.mubr.msk.f32.mxu1 %vm1945_vm4, %v1905_v55  ;;  %v1438_v22 = vsel %vm714_vm6, %v6807_v13, %v10362_v47  ;;  %v1840_v13 = vld [vmem:[%s10345_s1] sm:$0xff]  ;;  %v435_v58 = vsel %vm433_vm1, %v6698_v8, %v10365_v61  ;;  %v1841_v8 = vld [vmem:[%s10345_s1 + $0x8] sm:$0xff] }
 0x167   : > { %v10367_v28 = vunpack.i.h.bf16 %v8139_v32  ;;  %v6812_v51 = vunpack.i.l.bf16 %v8139_v32  ;;  %v8153_v55 = vpop.permute.xlu1 %6815  ;;  %v6350_v40 = vpack.c.bf16 %v1438_v22, %v1434_v21  ;;  %v439_v21 = vsel %vm433_vm1, %v6707_v49, %v10364_v29 }
 0x168   : > { %v10366_v47 = vunpack.i.h.bf16 %v8153_v55  ;;  %v6817_v20 = vunpack.i.l.bf16 %v8153_v55  ;;  %v6380_v61 = vpack.c.bf16 %v439_v21, %v435_v58 }
 0x169   : > { %6351 = vmatprep.subr.bf16.mxu0 %v6350_v40  ;;  %6096 = vmatmul.mubr.msk.f32.gmra.mrb[14].mxu1 %vm1945_vm4, %v1908_v45  ;;  %v812_v5 = vsel %vm803_vm5, %v6812_v51, %v10367_v28  ;;  %v6382_v51 = vpack.c.bf16 %v1089_v24, %v1085_v36  ;;  %v8208_v24 = vld [vmem:[%s10345_s1 + $0x18] sm:$0xff] }
 0x16a   : > { %v8174_v60 = vpop.permute.xlu0 %6820  ;;  %6108 = vmatprep.mubr.msk.f32.mxu1 %vm2284_vm10, %v1840_v13  ;;  %v816_v39 = vsel %vm803_vm5, %v6817_v20, %v10366_v47  ;;  %v8190_v13 = vld [vmem:[%s10345_s1 + $0x10] sm:$0xff]  ;;  %10503 = vst [vmem:[#allocation13_spill] sm:$0xff] %v8208_v24 }
 0x16b   : > { %v10371_v49 = vunpack.i.h.bf16 %v8174_v60  ;;  %v6822_v40 = vunpack.i.l.bf16 %v8174_v60  ;;  %v8185_v45 = vpop.permute.xlu1 %6825  ;;  %v6352_v22 = vpack.c.bf16 %v816_v39, %v812_v5  ;;  %10502 = vst [vmem:[#allocation12_spill] sm:$0xff] %v8190_v13 }
 0x16c   : > { %v10369_v29 = vunpack.i.h.bf16 %v8185_v45  ;;  %v6827_v20 = vunpack.i.l.bf16 %v8185_v45 }
 0x16d   : > { %6353 = vmatpush3.bf16.msra.mxu0 %v6352_v22  ;;  %6109 = vmatmul.mubr.msk.f32.vlgmr.msra.gmra.mrb[0].mxu1 %vm2284_vm10, %v1841_v8  ;;  %v1609_v47 = vsel %vm529_vm3, %v6822_v40, %v10371_v49  ;;  %v8217_v8 = vld [vmem:[%s10345_s1 + $0x20] sm:$0xff] }
 0x16e   : > { %6381 = vmatpush3.bf16.msra.mxu1 %v6380_v61  ;;  %v8198_v5 = vpop.permute.xlu0 %6830  ;;  %v1613_v36 = vsel %vm529_vm3, %v6827_v20, %v10369_v29  ;;  %6111 = vmatprep.mubr.msk.f32.mxu1 %vm2284_vm10, %v8190_v13  ;;  %10504 = vst [vmem:[#allocation14_spill] sm:$0xff] %v8217_v8  ;;  %v8245_v29 = vld [vmem:[%s10345_s1 + $0x30] sm:$0xff]  ;;  %v8333_v13 = vld [vmem:[%s10346_s2 + $0x20] sm:$0xff] }
 0x16f   : > { %v10368_v58 = vunpack.i.h.bf16 %v8198_v5  ;;  %v6832_v21 = vunpack.i.l.bf16 %v8198_v5  ;;  %v8212_v39 = vpop.permute.xlu1 %6835  ;;  %v6354_v61 = vpack.c.bf16 %v1613_v36, %v1609_v47  ;;  %6383 = vmatprep.subr.bf16.mxu1 %v6382_v51  ;;  %v8236_v51 = vld [vmem:[%s10345_s1 + $0x28] sm:$0xff]  ;;  %10506 = vst [vmem:[#allocation16_spill] sm:$0xff] %v8245_v29  ;;  %10514 = vst [vmem:[#allocation24_spill] sm:$0xff] %v8333_v13 }
 0x170   : > { %v10370_v40 = vunpack.i.h.bf16 %v8212_v39  ;;  %v6837_v22 = vunpack.i.l.bf16 %v8212_v39  ;;  %10505 = vst [vmem:[#allocation15_spill] sm:$0xff] %v8236_v51 }
 0x171   : > { %6355 = vmatprep.subr.bf16.mxu0 %v6354_v61  ;;  %v989_v20 = vsel %vm988_vm2, %v6832_v21, %v10368_v58  ;;  %6112 = vmatmul.mubr.msk.f32.gmra.mrb[2].mxu1 %vm2284_vm10, %v8208_v24 }
 0x172   : > { %v8226_v28 = vpop.permute.xlu0 %6845  ;;  %v993_v47 = vsel %vm988_vm2, %v6837_v22, %v10370_v40  ;;  %6114 = vmatprep.mubr.msk.f32.mxu1 %vm2284_vm10, %v8217_v8 }
 0x173   : > { %v10373_v36 = vunpack.i.h.bf16 %v8226_v28  ;;  %v6847_v21 = vunpack.i.l.bf16 %v8226_v28  ;;  %v8240_v61 = vpop.permute.xlu1 %6840  ;;  %v6356_v58 = vpack.c.bf16 %v993_v47, %v989_v20 }
 0x174   : > { %v10376_v22 = vunpack.i.h.bf16 %v8240_v61  ;;  %v6842_v40 = vunpack.i.l.bf16 %v8240_v61 }
 0x175   : > { %6357 = vmatpush3.bf16.msra.mxu0 %v6356_v58  ;;  %v1621_v49 = vsel %vm529_vm3, %v6847_v21, %v10373_v36  ;;  %6115 = vmatmul.mubr.msk.f32.gmra.mrb[4].mxu1 %vm2284_vm10, %v8236_v51  ;;  %v8264_v58 = vld [vmem:[%s10345_s1 + $0x38] sm:$0xff]  ;;  %v8324_v51 = vld [vmem:[#allocation2 + $0xb0] sm:$0xff] }
 0x176   : > { %v8254_v18 = vpop.permute.xlu0 %6855  ;;  %v1617_v20 = vsel %vm529_vm3, %v6842_v40, %v10376_v22  ;;  %6117 = vmatprep.mubr.msk.f32.mxu1 %vm2284_vm10, %v8245_v29  ;;  %10507 = vst [vmem:[#allocation17_spill] sm:$0xff] %v8264_v58  ;;  %v8322_v29 = vld [vmem:[#allocation2 + $0x80] sm:$0xff] }
 0x177   : > { %v10381_v47 = vunpack.i.h.bf16 %v8254_v18  ;;  %v6857_v21 = vunpack.i.l.bf16 %v8254_v18  ;;  %v8268_v36 = vpop.permute.xlu1 %6850  ;;  %v6358_v31 = vpack.c.bf16 %v1621_v49, %v1617_v20 }
 0x178   : > { %v10383_v40 = vunpack.i.h.bf16 %v8268_v36  ;;  %v6852_v22 = vunpack.i.l.bf16 %v8268_v36 }
 0x179   : > { %6359 = vmatprep.subr.bf16.mxu0 %v6358_v31  ;;  %v1001_v4 = vsel %vm988_vm2, %v6857_v21, %v10381_v47  ;;  %6118 = vmatmul.mubr.msk.f32.gmra.mrb[6].mxu1 %vm2284_vm10, %v8264_v58  ;;  %v8295_v21 = vld [vmem:[#allocation2 + $0x50] sm:$0xff]  ;;  %v8320_v58 = vld [vmem:[%s10346_s2] sm:$0xff] }
 0x17a   : > { %v8284_v49 = vpop.permute.xlu0 %1153  ;;  %v997_v20 = vsel %vm988_vm2, %v6852_v22, %v10383_v40  ;;  %6120 = vmatprep.mubr.msk.f32.mxu1 %vm2284_vm10, %v8273_v26  ;;  %10513 = vst [vmem:[#allocation23_spill] sm:$0xff] %v8320_v58 }
 0x17b   : > { %10509 = vst [vmem:[#allocation19_spill] sm:$0xff] %v8284_v49  ;;  %v8293_v43 = vpop.permute.xlu1 %527  ;;  %v6360_v31 = vpack.c.bf16 %v1001_v4, %v997_v20  ;;  %v1157_v47 = vsel %vm988_vm2, %v7779_v59, %v8284_v49  ;;  %v8313_v4 = vld [vmem:[%s10345_s1 + $0x50] sm:$0xff] }
 0x17c   : > { %10510 = vst [vmem:[#allocation20_spill] sm:$0xff] %v8293_v43  ;;  %v1166_v22 = vmul.f32 %v1157_v47, %v8280_v2  ;;  %v1171_v40 = vmul.f32 %v1157_v47, %v8295_v21  ;;  %v532_v26 = vsel %vm529_vm3, %v7796_v42, %v8293_v43  ;;  %10512 = vst [vmem:[#allocation22_spill] sm:$0xff] %v8313_v4 }
 0x17d   : > { %6361 = vmatpush3.bf16.msra.mxu0 %v6360_v31  ;;  %v541_v59 = vmul.f32 %v532_v26, %v8289_v3  ;;  %v546_v20 = vmul.f32 %v7804_v0, %v532_v26  ;;  %v1176_v24 = vmul.f32 %v1157_v47, %v8322_v29  ;;  %v1181_v31 = vmul.f32 %v1157_v47, %v8324_v51  ;;  %v8348_v47 = vld [vmem:[%s10345_s1 + $0x58] sm:$0xff] }
 0x17e   : > { %v8326_v42 = vpop.permute.xlu0 %6865  ;;  %v6939_v8 = vpack.i.bf16 %v1171_v40, %v1166_v22  ;;  %v551_v49 = vmul.f32 %v7817_v15, %v532_v26  ;;  %6121 = vmatmul.mubr.msk.f32.gmra.mrb[8].mxu1 %vm2284_vm10, %v8303_v30  ;;  %v556_v22 = vmul.f32 %v7819_v17, %v532_v26  ;;  %v8357_v26 = vld [vmem:[%s10345_s1 + $0x60] sm:$0xff] }
 0x17f   : > { %v10406_v43 = vunpack.i.h.bf16 %v8326_v42  ;;  %v10411_v41 = vunpack.i.l.bf16 %v8326_v42  ;;  %v8340_v57 = vpop.permute.xlu1 %6860  ;;  %v6944_v40 = vpack.i.bf16 %v546_v20, %v541_v59  ;;  %6123 = vmatprep.mubr.msk.f32.mxu1 %vm2284_vm10, %v8313_v4  ;;  %v8364_v59 = vld [vmem:[%s10346_s2 + $0x18] sm:$0xff]  ;;  %v10518_v4 = vunpack.i.h.bf16 %v7959_v9 }
 0x180   : > { %6940 = vrot.lane.b32.xlu1 %v6939_v8, %s7375_s30  ;;  %2059 = vmatmul.mubr.f32.vlgmr.msra.gmra.mrb[0].mxu0 %v8320_v58  ;;  %v10515_v8 = vunpack.i.h.bf16 %v7975_v37  ;;  %v10519_v58 = vunpack.i.h.bf16 %v8340_v57  ;;  %v6954_v9 = vpack.i.bf16 %v556_v22, %v551_v49  ;;  %v8414_v49 = vld [vmem:[%s10346_s2 + $0x30] sm:$0xff] }
 0x181   : > { %6945 = vrot.lane.b32.xlu0 %v6944_v40, %s7374_s29  ;;  %2063 = vmatprep.mubr.f32.mxu0 %v8333_v13  ;;  %v1248_v30 = vsel %vm899_vm8, %v10516_v38, %v10406_v43  ;;  %v10517_v40 = vunpack.i.l.bf16 %v8340_v57 }
 0x182   : > { %v1244_v20 = vsel %vm899_vm8, %v10515_v8, %v10411_v41  ;;  %v447_v37 = vsel %vm433_vm1, %v10520_v56, %v10519_v58  ;;  %v8386_v33 = vpop.permute.xlu0 %6875  ;;  %v6949_v8 = vpack.i.bf16 %v1181_v31, %v1176_v24  ;;  %6124 = vmatmul.mubr.msk.f32.gmra.mrb[10].mxu1 %vm2284_vm10, %v8348_v47  ;;  %v10521_v31 = vunpack.i.h.bf16 %v8026_v27 }
 0x183   : > { %v443_v13 = vsel %vm433_vm1, %v10518_v4, %v10517_v40  ;;  %v10407_v38 = vunpack.i.h.bf16 %v8386_v33  ;;  %v10408_v10 = vunpack.i.l.bf16 %v8386_v33  ;;  %v8392_v43 = vpop.permute.xlu1 %6870  ;;  %6126 = vmatprep.mubr.msk.f32.mxu1 %vm2284_vm10, %v8357_v26  ;;  %v6386_v58 = vpack.c.bf16 %v1248_v30, %v1244_v20  ;;  %v8429_v40 = vld [vmem:[%s10345_s1 + $0x70] sm:$0xff] }
 0x184   : > { %v6384_v4 = vpack.c.bf16 %v447_v37, %v443_v13  ;;  %v10410_v56 = vunpack.i.h.bf16 %v8392_v43  ;;  %v10409_v24 = vunpack.i.l.bf16 %v8392_v43  ;;  %6950 = vrot.lane.b32.xlu1 %v6949_v8, %s7375_s30  ;;  %2064 = vmatmul.mubr.f32.gmra.mrb[2].mxu0 %v8364_v59  ;;  %v8408_v13 = vld [vmem:[%s10345_s1 + $0x68] sm:$0xff]  ;;  %v10522_v30 = vunpack.i.h.bf16 %v8037_v34 }
 0x185   : > { %6955 = vrot.lane.b32.xlu0 %v6954_v9, %s7374_s29  ;;  %v1252_v22 = vsel %vm899_vm8, %v10521_v31, %v10408_v10  ;;  %v10523_v37 = vunpack.i.h.bf16 %v8000_v63  ;;  %v10524_v27 = vunpack.i.h.bf16 %v8012_v46  ;;  %2068 = vmatprep.mubr.f32.mxu0 %v8397_v25 }
 0x186   : > { %6385 = vmatpush3.bf16.msra.mxu1 %v6384_v4  ;;  %v1256_v20 = vsel %vm899_vm8, %v10522_v30, %v10407_v38  ;;  %v8441_v34 = vpop.permute.xlu0 %6885  ;;  %v8447_v4 = vld [vmem:[%s10346_s2 + $0x50] sm:$0xff]  ;;  %v8463_v38 = vld [vmem:[%s10345_s1 + $0x78] sm:$0xff] }
 0x187   : > { %v620_v8 = vsel %vm618_vm7, %v10523_v37, %v10409_v24  ;;  %v624_v9 = vsel %vm618_vm7, %v10524_v27, %v10410_v56  ;;  %6387 = vmatprep.subr.bf16.mxu1 %v6386_v58  ;;  %v10412_v63 = vunpack.i.h.bf16 %v8441_v34  ;;  %v10413_v31 = vunpack.i.l.bf16 %v8441_v34  ;;  %v8451_v30 = vpop.permute.xlu1 %6880  ;;  %6127 = vmatmul.mubr.msk.f32.gmra.mrb[12].mxu1 %vm2284_vm10, %v8408_v13 }
 0x188   : > { %v6388_v37 = vpack.c.bf16 %v624_v9, %v620_v8  ;;  %v10415_v46 = vunpack.i.h.bf16 %v8451_v30  ;;  %v10414_v58 = vunpack.i.l.bf16 %v8451_v30  ;;  %2069 = vmatmul.mubr.f32.gmra.mrb[4].mxu0 %v8414_v49  ;;  %v6390_v27 = vpack.c.bf16 %v1256_v20, %v1252_v22  ;;  %6129 = vmatprep.mubr.msk.f32.mxu1 %vm2284_vm10, %v8429_v40  ;;  %v8469_v8 = vld [vmem:[%s10346_s2 + $0x48] sm:$0xff] }
 0x189   : > { %2073 = vmatprep.mubr.f32.mxu0 %v8447_v4  ;;  %v10525_v22 = vunpack.i.h.bf16 %v8072_v62  ;;  %v10526_v9 = vunpack.i.h.bf16 %v8083_v14  ;;  %v10528_v56 = vunpack.i.h.bf16 %v8061_v54  ;;  %v8496_v14 = vld [vmem:[%s10346_s2 + $0x68] sm:$0xff] }
 0x18a   : > { %6389 = vmatpush3.bf16.msra.mxu1 %v6388_v37  ;;  %v10527_v37 = vunpack.i.h.bf16 %v8049_v6  ;;  %v8491_v41 = vpop.permute.xlu0 %1336 }
 0x18b   : > { %v1427_v20 = vsel %vm714_vm6, %v10525_v22, %v10413_v31  ;;  %v1431_v10 = vsel %vm714_vm6, %v10526_v9, %v10412_v63  ;;  %v632_v62 = vsel %vm618_vm7, %v10528_v56, %v10415_v46  ;;  %6391 = vmatprep.subr.bf16.mxu1 %v6390_v27  ;;  %v8498_v22 = vpop.permute.xlu1 %6890  ;;  %6130 = vmatmul.mubr.msk.f32.gmra.mrb[14].mxu1 %vm2284_vm10, %v8463_v38  ;;  %v8534_v46 = vld [vmem:[%s10346_s2 + $0x80] sm:$0xff] }
 0x18c   : > { %v628_v24 = vsel %vm618_vm7, %v10527_v37, %v10414_v58  ;;  %v6394_v6 = vpack.c.bf16 %v1431_v10, %v1427_v20  ;;  %v1340_v37 = vsel %vm803_vm5, %v7821_v19, %v8491_v41  ;;  %v10417_v54 = vunpack.i.h.bf16 %v8498_v22  ;;  %2074 = vmatmul.mubr.f32.gmra.mrb[6].mxu0 %v8469_v8  ;;  %2919 = vmatprep.mubr.f32.mxu1 %v7790_v48  ;;  %v8515_v19 = vld [vmem:[%s10346_s2 + $0x60] sm:$0xff] }
 0x18d   : > { %v6392_v9 = vpack.c.bf16 %v632_v62, %v628_v24  ;;  %v10416_v56 = vunpack.i.l.bf16 %v8498_v22  ;;  %v1349_v27 = vmul.f32 %v1340_v37, %v8280_v2  ;;  %v1354_v63 = vmul.f32 %v1340_v37, %v8295_v21  ;;  %2078 = vmatprep.mubr.f32.mxu0 %v8496_v14 }
 0x18e   : > { %v1359_v10 = vmul.f32 %v1340_v37, %v8322_v29  ;;  %v10529_v24 = vunpack.i.h.bf16 %v8094_v53  ;;  %v10530_v48 = vunpack.i.h.bf16 %v8105_v35  ;;  %v1364_v58 = vmul.f32 %v1340_v37, %v8324_v51 }
 0x18f   : > { %6393 = vmatpush3.bf16.msra.mxu1 %v6392_v9  ;;  %v8528_v9 = vpop.permute.xlu0 %6895  ;;  %v6959_v31 = vpack.i.bf16 %v1354_v63, %v1349_v27  ;;  %v10532_v27 = vunpack.i.h.bf16 %v8127_v50 }
 0x190   : > { %v805_v20 = vsel %vm803_vm5, %v10529_v24, %v10416_v56  ;;  %v809_v62 = vsel %vm803_vm5, %v10530_v48, %v10417_v54  ;;  %6395 = vmatprep.subr.bf16.mxu1 %v6394_v6  ;;  %v10418_v53 = vunpack.i.h.bf16 %v8528_v9  ;;  %v10419_v24 = vunpack.i.l.bf16 %v8528_v9  ;;  %v8538_v56 = vpop.permute.xlu1 %712  ;;  %2079 = vmatmul.mubr.f32.gmra.mrb[8].mxu0 %v8515_v19 }
 0x191   : > { %v6396_v35 = vpack.c.bf16 %v809_v62, %v805_v20  ;;  %6960 = vrot.lane.b32.xlu1 %v6959_v31, %s7373_s25  ;;  %v717_v63 = vsel %vm714_vm6, %v7831_v23, %v8538_v56  ;;  %2083 = vmatprep.mubr.f32.mxu0 %v8534_v46  ;;  %v10531_v6 = vunpack.i.h.bf16 %v8116_v16  ;;  %v6969_v23 = vpack.i.bf16 %v1364_v58, %v1359_v10  ;;  %v8563_v16 = vld [vmem:[%s10346_s2 + $0x78] sm:$0xff] }
 0x192   : > { %v1439_v31 = vsel %vm714_vm6, %v10532_v27, %v10418_v53  ;;  %v726_v20 = vmul.f32 %v717_v63, %v8289_v3  ;;  %v8572_v27 = vld [vmem:[%s10346_s2 + $0x98] sm:$0xff]  ;;  %v736_v58 = vmul.f32 %v7817_v15, %v717_v63  ;;  %v10535_v53 = vunpack.i.h.bf16 %v8174_v60 }
 0x193   : > { %6397 = vmatpush3.bf16.msra.mxu1 %v6396_v35  ;;  %v1435_v37 = vsel %vm714_vm6, %v10531_v6, %v10419_v24  ;;  %v8557_v48 = vpop.permute.xlu0 %6905  ;;  %v731_v35 = vmul.f32 %v7804_v0, %v717_v63  ;;  %v741_v0 = vmul.f32 %v7819_v17, %v717_v63  ;;  %v10536_v15 = vunpack.i.h.bf16 %v8185_v45  ;;  %v8607_v45 = vld [vmem:[%s10346_s2 + $0x90] sm:$0xff] }
 0x194   : > { %10533 = vst [vmem:[#allocation25_spill] sm:$0xff] %v8557_v48  ;;  %v6398_v62 = vpack.c.bf16 %v1439_v31, %v1435_v37  ;;  %v10420_v6 = vunpack.i.h.bf16 %v8557_v48  ;;  %v10421_v54 = vunpack.i.l.bf16 %v8557_v48  ;;  %v8567_v50 = vpop.permute.xlu1 %6900  ;;  %2084 = vmatmul.mubr.f32.gmra.mrb[10].mxu0 %v8563_v16  ;;  %v10537_v63 = vunpack.i.h.bf16 %v8139_v32 }
 0x195   : > { %10534 = vst [vmem:[#allocation26_spill] sm:$0xff] %v8567_v50  ;;  %v10425_v10 = vunpack.i.h.bf16 %v8567_v50  ;;  %v10422_v37 = vunpack.i.l.bf16 %v8567_v50  ;;  %6970 = vrot.lane.b32.xlu1 %v6969_v23, %s7373_s25  ;;  %v6964_v31 = vpack.i.bf16 %v731_v35, %v726_v20  ;;  %v10538_v23 = vunpack.i.h.bf16 %v8153_v55  ;;  %2088 = vmatprep.mubr.f32.mxu0 %v8572_v27 }
 0x196   : > { %6399 = vmatprep.subr.bf16.mxu1 %v6398_v62  ;;  %v1610_v24 = vsel %vm529_vm3, %v10535_v53, %v10421_v54  ;;  %v1614_v17 = vsel %vm529_vm3, %v10536_v15, %v10420_v6  ;;  %v6974_v62 = vpack.i.bf16 %v741_v0, %v736_v58  ;;  %v8621_v54 = vld [vmem:[%s10346_s2 + $0xb0] sm:$0xff] }
 0x197   : > { %v813_v20 = vsel %vm803_vm5, %v10537_v63, %v10422_v37  ;;  %v817_v60 = vsel %vm803_vm5, %v10538_v23, %v10425_v10  ;;  %6965 = vrot.lane.b32.xlu0 %v6964_v31, %s7372_s22  ;;  %v8601_v53 = vpop.permute.xlu0 %1519  ;;  %v6402_v15 = vpack.c.bf16 %v1614_v17, %v1610_v24  ;;  %v8629_v58 = vld [vmem:[%s10348_s4 + $0x4] ss:$8 sm:$0xf]  ;;  %v10541_v17 = vunpack.i.h.bf16 %v8198_v5 }
 0x198   : > { %v8609_v32 = vpop.permute.xlu1 %6910  ;;  %v6400_v35 = vpack.c.bf16 %v817_v60, %v813_v20  ;;  %v1523_v55 = vsel %vm618_vm7, %v7849_v52, %v8601_v53  ;;  %2089 = vmatmul.mubr.f32.gmra.mrb[12].mxu0 %v8607_v45  ;;  %10540 = vst [vmem:[#allocation28_spill] sm:$0xff] %v8629_v58  ;;  %v8633_v0 = vrot.slane %v8629_v58, %v7455_v11  ;;  %v10542_v60 = vunpack.i.h.bf16 %v8212_v39  ;;  %v8651_v11 = vld [vmem:[%s10346_s2 + $0xa8] sm:$0xff] }
 0x199   : > { %10539 = vst [vmem:[#allocation27_spill] sm:$0xff] %v8609_v32  ;;  %v10424_v31 = vunpack.i.h.bf16 %v8609_v32  ;;  %v10423_v63 = vunpack.i.l.bf16 %v8609_v32  ;;  %v1532_v23 = vmul.f32 %v1523_v55, %v8280_v2  ;;  %v1537_v6 = vmul.f32 %v1523_v55, %v8295_v21  ;;  %2093 = vmatprep.mubr.f32.mxu0 %v8621_v54 }
 0x19a   : > { %6401 = vmatpush3.bf16.msra.mxu1 %v6400_v35  ;;  %v1542_v24 = vmul.f32 %v1523_v55, %v8322_v29  ;;  %v1547_v52 = vmul.f32 %v1523_v55, %v8324_v51 }
 0x19b   : > { %v990_v20 = vsel %vm988_vm2, %v10541_v17, %v10423_v63  ;;  %v994_v35 = vsel %vm988_vm2, %v10542_v60, %v10424_v31  ;;  %6975 = vrot.lane.b32.xlu0 %v6974_v62, %s7372_s22  ;;  %v8646_v55 = vpop.permute.xlu0 %6915  ;;  %6403 = vmatprep.subr.bf16.mxu1 %v6402_v15  ;;  %v6979_v37 = vpack.i.bf16 %v1537_v6, %v1532_v23  ;;  %v8661_v62 = vld [vmem:[%s10346_s2 + $0xc8] sm:$0xff]  ;;  %v8667_v23 = vld [vmem:[#allocation2 + $0x78] sm:$0xff] }
 0x19c   : > { %10543 = vst [vmem:[#allocation29_spill] sm:$0xff] %v8646_v55  ;;  %v10429_v5 = vunpack.i.h.bf16 %v8646_v55  ;;  %v10430_v17 = vunpack.i.l.bf16 %v8646_v55  ;;  %v8655_v63 = vpop.permute.xlu1 %897  ;;  %v6404_v39 = vpack.c.bf16 %v994_v35, %v990_v20  ;;  %v860_v6 = vld [vmem:[#allocation2 + $0x48] sm:$0xff]  ;;  %2094 = vmatmul.mubr.f32.gmra.mrb[14].mxu0 %v8651_v11  ;;  %v10544_v20 = vunpack.i.h.bf16 %v8240_v61  ;;  %v8687_v61 = vld [vmem:[%s10346_s2 + $0xc0] sm:$0xff] }
 0x19d   : > { %6980 = vrot.lane.b32.xlu1 %v6979_v37, %s7371_s15  ;;  %v902_v15 = vsel %vm899_vm8, %v7857_v7, %v8655_v63  ;;  %v10545_v35 = vunpack.i.h.bf16 %v8226_v28  ;;  %v870_v7 = vld [vmem:[#allocation2 + $0xa8] sm:$0xff]  ;;  %v6989_v32 = vpack.i.bf16 %v1547_v52, %v1542_v24  ;;  %2098 = vmatprep.mubr.f32.mxu0 %v8661_v62  ;;  %v1078_v28 = vmul.f32 %v8633_v0, %v8289_v3  ;;  %v8698_v24 = vld [vmem:[%s10346_s2 + $0xe0] sm:$0xff] }
 0x19e   : > { %6405 = vmatpush3.bf16.msra.mxu1 %v6404_v39  ;;  %v1618_v60 = vsel %vm529_vm3, %v10544_v20, %v10430_v17  ;;  %v911_v31 = vmul.f32 %v902_v15, %v8289_v3  ;;  %v916_v58 = vmul.f32 %v902_v15, %v860_v6  ;;  %v921_v52 = vmul.f32 %v902_v15, %v8667_v23 }
 0x19f   : > { %v1622_v37 = vsel %vm529_vm3, %v10545_v35, %v10429_v5  ;;  %v8681_v10 = vpop.permute.xlu0 %6925  ;;  %v926_v20 = vmul.f32 %v902_v15, %v870_v7  ;;  %v10548_v55 = vunpack.i.h.bf16 %v7929_v1  ;;  %v10553_v15 = vunpack.i.h.bf16 %v8254_v18 }
 0x1a0   : > { %10546 = vst [vmem:[#allocation30_spill] sm:$0xff] %v8681_v10  ;;  %v6406_v39 = vpack.c.bf16 %v1622_v37, %v1618_v60  ;;  %v10437_v35 = vunpack.i.l.bf16 %v8681_v10  ;;  %v8693_v5 = vpop.permute.xlu1 %6920  ;;  %v1082_v60 = vmul.f32 %v8633_v0, %v860_v6  ;;  %v6984_v3 = vpack.i.bf16 %v916_v58, %v911_v31  ;;  %2099 = vmatmul.mubr.f32.gmra.mrb[16].mxu0 %v8687_v61 }
 0x1a1   : > { %10547 = vst [vmem:[#allocation31_spill] sm:$0xff] %v8693_v5  ;;  %v10438_v17 = vunpack.i.l.bf16 %v8693_v5  ;;  %6990 = vrot.lane.b32.xlu1 %v6989_v32, %s7371_s15  ;;  %v10549_v50 = vunpack.i.h.bf16 %v8681_v10  ;;  %v10550_v6 = vunpack.i.h.bf16 %v7936_v44  ;;  %v10551_v32 = vunpack.i.h.bf16 %v8268_v36  ;;  %2103 = vmatprep.mubr.f32.mxu0 %v8698_v24  ;;  %v8733_v36 = vld [vmem:[%s10346_s2 + $0xd8] sm:$0xff] }
 0x1a2   : > { %6407 = vmatprep.subr.bf16.mxu1 %v6406_v39  ;;  %v1793_v48 = vsel %vm344_vm0, %v10548_v55, %v10437_v35  ;;  %v10552_v58 = vunpack.i.h.bf16 %v8693_v5  ;;  %6985 = vrot.lane.b32.xlu0 %v6984_v3, %s7370_s12  ;;  %v6426_v3 = vpack.c.bf16 %v1082_v60, %v1078_v28  ;;  %v2719_v35 = vld [vmem:[%s7432_s26 + $0x28] sm:$0xff]  ;;  %v8811_v10 = vld [vmem:[#allocation2 + $0x58] sm:$0xff] }
 0x1a3   : > { %v1797_v37 = vsel %vm344_vm0, %v10550_v6, %v10549_v50  ;;  %v998_v31 = vsel %vm988_vm2, %v10551_v32, %v10438_v17  ;;  %v8727_v55 = vpop.permute.xlu0 %6930  ;;  %v6994_v32 = vpack.i.bf16 %v926_v20, %v921_v52  ;;  %v10557_v20 = vld [vmem:[#allocation11_spill] sm:$0xff] }
 0x1a4   : > { %v1002_v1 = vsel %vm988_vm2, %v10553_v15, %v10552_v58  ;;  %10554 = vst [vmem:[#allocation32_spill] sm:$0xff] %v8727_v55  ;;  %v6410_v44 = vpack.c.bf16 %v1797_v37, %v1793_v48  ;;  %v10439_v50 = vunpack.i.h.bf16 %v8727_v55  ;;  %v10440_v18 = vunpack.i.l.bf16 %v8727_v55  ;;  %v8737_v39 = vpop.permute.xlu1 %1702  ;;  %v8742_v48 = vld [vmem:[%s10346_s2 + $0xf8] sm:$0xff]  ;;  %2104 = vmatmul.mubr.f32.gmra.mrb[18].mxu0 %v8733_v36  ;;  %v10555_v58 = vld [vmem:[#allocation10_spill] sm:$0xff]  ;;  %v8782_v17 = vld [vmem:[%s10346_s2 + $0x110] sm:$0xff] }
 0x1a5   : > { %v6408_v6 = vpack.c.bf16 %v1002_v1, %v998_v31  ;;  %v1706_v37 = vsel %vm433_vm1, %v7873_v12, %v8737_v39  ;;  %v10556_v15 = vunpack.i.h.bf16 %v10555_v58  ;;  %v10558_v52 = vunpack.i.h.bf16 %v10557_v20  ;;  %v2718_v1 = vld [vmem:[%s7432_s26 + $0x8] sm:$0xff]  ;;  %v10559_v12 = vld [vmem:[#allocation8_spill] sm:$0xff]  ;;  %v8768_v20 = vld [vmem:[%s10346_s2 + $0xf0] sm:$0xff]  ;;  %2108 = vmatprep.mubr.f32.mxu0 %v8742_v48 }
 0x1a6   : > { %6411 = vmatprep.subr.bf16.mxu0 %v6410_v44  ;;  %v1725_v31 = vmul.f32 %v1706_v37, %v8322_v29  ;;  %6995 = vrot.lane.b32.xlu0 %v6994_v32, %s7370_s12  ;;  %v1730_v58 = vmul.f32 %v1706_v37, %v8324_v51  ;;  %v1090_v32 = vmul.f32 %v8633_v0, %v870_v7  ;;  %v10561_v55 = vld [vmem:[#allocation23_spill] sm:$0xff] }
 0x1a7   : > { %6409 = vmatpush3.bf16.msra.mxu1 %v6408_v6  ;;  %v1801_v28 = vsel %vm344_vm0, %v10556_v15, %v10440_v18  ;;  %v1805_v60 = vsel %vm344_vm0, %v10558_v52, %v10439_v50  ;;  %6413 = vmatpush3.bf16.msra.mxu0 %v6410_v44  ;;  %v1715_v15 = vmul.f32 %v1706_v37, %v8280_v2 }
 0x1a8   : > { %v6414_v6 = vpack.c.bf16 %v1805_v60, %v1801_v28  ;;  %v8770_v52 = vpop.permute.xlu1 %6935  ;;  %v1720_v50 = vmul.f32 %v1706_v37, %v8295_v21  ;;  %6427 = vmatprep.subr.bf16.mxu1 %v6426_v3  ;;  %v1086_v44 = vmul.f32 %v8633_v0, %v8667_v23  ;;  %v7004_v18 = vpack.i.bf16 %v1730_v58, %v1725_v31  ;;  %v10562_v23 = vld [vmem:[#allocation6_spill] sm:$0xff]  ;;  %v10563_v28 = vld [vmem:[#allocation24_spill] sm:$0xff] }
 0x1a9   : > { %10560 = vst [vmem:[#allocation10_spill] sm:$0xff] %v8770_v52  ;;  %v8785_v37 = vpack.c.bf16 %v2719_v35, %v2718_v1  ;;  %2109 = vmatmul.mubr.f32.gmra.mrb[20].mxu0 %v8768_v20  ;;  %v362_v0 = vmul.f32 %v8295_v21, %v10562_v23  ;;  %v367_v7 = vmul.f32 %v8322_v29, %v10562_v23  ;;  %v10564_v31 = vunpack.i.h.bf16 %v10559_v12 }
 0x1aa   : > { %6415 = vmatprep.subr.bf16.mxu0 %v6414_v6  ;;  %2920 = vmatmul.mubr.f32.vlgmr.msra.gmra.mrb[16].mxu1 %v10561_v55  ;;  %v6999_v3 = vpack.i.bf16 %v1720_v50, %v1715_v15  ;;  %v10565_v58 = vunpack.i.l.bf16 %v10559_v12  ;;  %v10566_v35 = vunpack.i.l.bf16 %v8770_v52  ;;  %v10567_v55 = vld [vmem:[#allocation9_spill] sm:$0xff]  ;;  %v8807_v15 = vld [vmem:[%s10346_s2 + $0x108] sm:$0xff]  ;;  %v8813_v12 = vpop.permute.xlu0 %429 }
 0x1ab   : > { %2924 = vmatprep.mubr.f32.mxu1 %v10563_v28  ;;  %v10568_v50 = vunpack.i.h.bf16 %v10567_v55  ;;  %7005 = vrot.lane.b32.xlu0 %v7004_v18, %s7369_s7  ;;  %v8809_v28 = vld [vmem:[#allocation2 + $0x28] sm:$0xff]  ;;  %10569 = vst [vmem:[#allocation11_spill] sm:$0xff] %v8813_v12  ;;  %v372_v18 = vmul.f32 %v8324_v51, %v10562_v23  ;;  %v10571_v55 = vunpack.i.l.bf16 %v8340_v57  ;;  %v7009_v23 = vpack.i.bf16 %v367_v7, %v362_v0  ;;  %v8853_v7 = vld [vmem:[#allocation2 + $0xb8] sm:$0xff] }
 0x1ac   : > { %v436_v60 = vsel %vm433_vm1, %v10565_v58, %v10564_v31  ;;  %6417 = vmatpush3.bf16.msra.mxu0 %v6414_v6  ;;  %7000 = vrot.lane.b32.xlu1 %v6999_v3, %s7369_s7  ;;  %v8822_v6 = vld [vmem:[%s10346_s2 + $0x128] sm:$0xff]  ;;  %v6430_v58 = vpack.c.bf16 %v1090_v32, %v1086_v44  ;;  %v10573_v44 = vld [vmem:[#allocation19_spill] sm:$0xff] }
 0x1ad   : > { %v440_v1 = vsel %vm433_vm1, %v10568_v50, %v10566_v35  ;;  %2113 = vmatprep.mubr.f32.mxu0 %v8782_v17  ;;  %v10570_v35 = vunpack.i.h.bf16 %v8770_v52  ;;  %6419 = vmatprep.subr.bf16.mxu0 %v8785_v37  ;;  %v1167_v32 = vmul.f32 %v10573_v44, %v8809_v28  ;;  %v8851_v0 = vld [vmem:[#allocation2 + $0x88] sm:$0xff] }
 0x1ae   : > { %v6428_v31 = vpack.c.bf16 %v440_v1, %v436_v60  ;;  %v10572_v60 = vld [vmem:[#allocation20_spill] sm:$0xff]  ;;  %2925 = vmatmul.mubr.f32.gmra.mrb[18].mxu1 %v8364_v59  ;;  %2114 = vmatmul.mubr.f32.gmra.mrb[22].mxu0 %v8807_v15  ;;  %v8849_v59 = vld [vmem:[%s10346_s2 + $0x120] sm:$0xff] }
 0x1af   : > { %v444_v50 = vsel %vm433_vm1, %v10571_v55, %v10570_v35  ;;  %v542_v3 = vmul.f32 %v8280_v2, %v10572_v60  ;;  %v547_v1 = vmul.f32 %v8295_v21, %v10572_v60  ;;  %v1172_v35 = vmul.f32 %v10573_v44, %v8811_v10  ;;  %431 = vrot.lane.b32.xlu0 %v372_v18, %s7368_s6 }
 0x1b0   : > { %6429 = vmatpush3.bf16.msra.mxu1 %v6428_v31  ;;  %v10574_v55 = vunpack.i.h.bf16 %v8340_v57  ;;  %2118 = vmatprep.mubr.f32.mxu0 %v8822_v6  ;;  %v8859_v57 = vld [vmem:[%s10346_s2 + $0x140] sm:$0xff] }
 0x1b1   : > { %7010 = vrot.lane.b32.xlu1 %v7009_v23, %s7368_s6  ;;  %6431 = vmatprep.subr.bf16.mxu1 %v6430_v58  ;;  %v7019_v18 = vpack.i.bf16 %v547_v1, %v542_v3  ;;  %v7014_v5 = vpack.i.bf16 %v1172_v35, %v1167_v32  ;;  %v1182_v58 = vmul.f32 %v10573_v44, %v8853_v7 }
 0x1b2   : > { %v448_v52 = vsel %vm433_vm1, %v10574_v55, %v8813_v12  ;;  %v552_v55 = vmul.f32 %v8322_v29, %v10572_v60  ;;  %v557_v12 = vmul.f32 %v8324_v51, %v10572_v60  ;;  %2929 = vmatprep.mubr.f32.mxu1 %v8397_v25  ;;  %2119 = vmatmul.mubr.f32.gmra.mrb[24].mxu0 %v8849_v59  ;;  %v8882_v25 = vld [vmem:[%s10346_s2 + $0x158] sm:$0xff] }
 0x1b3   : > { %v6432_v31 = vpack.c.bf16 %v448_v52, %v444_v50  ;;  %v1177_v52 = vmul.f32 %v10573_v44, %v8851_v0  ;;  %7020 = vrot.lane.b32.xlu0 %v7019_v18, %s7374_s29  ;;  %2123 = vmatprep.mubr.f32.mxu0 %v8859_v57  ;;  %v8876_v50 = vld [vmem:[%s10346_s2 + $0x138] sm:$0xff]  ;;  %v727_v3 = vmul.f32 %v8280_v2, %v8538_v56 }
 0x1b4   : > { %2930 = vmatmul.mubr.f32.gmra.mrb[20].mxu1 %v8414_v49  ;;  %v7029_v60 = vpack.i.bf16 %v557_v12, %v552_v55  ;;  %v732_v1 = vmul.f32 %v8295_v21, %v8538_v56  ;;  %v1355_v44 = vmul.f32 %v8491_v41, %v8811_v10  ;;  %v8900_v49 = vld [vmem:[%s10346_s2 + $0x150] sm:$0xff]  ;;  %v737_v32 = vmul.f32 %v8322_v29, %v8538_v56 }
 0x1b5   : > { %6433 = vmatpush3.bf16.msra.mxu1 %v6432_v31  ;;  %7015 = vrot.lane.b32.xlu1 %v7014_v5, %s7375_s30  ;;  %v7024_v23 = vpack.i.bf16 %v1182_v58, %v1177_v52  ;;  %v1350_v5 = vmul.f32 %v8491_v41, %v8809_v28  ;;  %v742_v35 = vmul.f32 %v8324_v51, %v8538_v56 }
 0x1b6   : > { %2934 = vmatprep.mubr.f32.mxu1 %v8447_v4  ;;  %2124 = vmatmul.mubr.f32.gmra.mrb[26].mxu0 %v8876_v50  ;;  %v8906_v4 = vld [vmem:[%s10346_s2 + $0x170] sm:$0xff]  ;;  %v7039_v12 = vpack.i.bf16 %v732_v1, %v727_v3  ;;  %v1360_v18 = vmul.f32 %v8491_v41, %v8851_v0  ;;  %v1365_v55 = vmul.f32 %v8491_v41, %v8853_v7  ;;  %v2720_v1 = vld [vmem:[%s7432_s26 + $0x48] sm:$0xff] }
 0x1b7   : > { %7030 = vrot.lane.b32.xlu0 %v7029_v60, %s7374_s29  ;;  %2128 = vmatprep.mubr.f32.mxu0 %v8882_v25  ;;  %v7034_v31 = vpack.i.bf16 %v1355_v44, %v1350_v5  ;;  %v7049_v41 = vpack.i.bf16 %v742_v35, %v737_v32  ;;  %v912_v56 = vmul.f32 %v8280_v2, %v8655_v63  ;;  %v8951_v2 = vld [vmem:[%s10346_s2 + $0x28] sm:$0xff] }
 0x1b8   : > { %2935 = vmatmul.mubr.f32.gmra.mrb[22].mxu1 %v8469_v8  ;;  %v8924_v8 = vld [vmem:[%s10346_s2 + $0x168] sm:$0xff]  ;;  %v917_v52 = vmul.f32 %v8295_v21, %v8655_v63  ;;  %v7044_v58 = vpack.i.bf16 %v1365_v55, %v1360_v18  ;;  %v1533_v60 = vmul.f32 %v8601_v53, %v8809_v28  ;;  %v1538_v3 = vmul.f32 %v8601_v53, %v8811_v10  ;;  %v8957_v21 = vld [vmem:[%s10346_s2 + $0x40] sm:$0xff]  ;;  %v9070_v55 = vld [vmem:[%s10347_s3 + $0x10] sm:$0xff] }
 0x1b9   : > { %7025 = vrot.lane.b32.xlu1 %v7024_v23, %s7375_s30  ;;  %2939 = vmatprep.mubr.f32.mxu1 %v8496_v14  ;;  %v8930_v14 = vld [vmem:[%s10346_s2 + $0x10] sm:$0xff]  ;;  %v922_v23 = vmul.f32 %v8322_v29, %v8655_v63  ;;  %v927_v5 = vmul.f32 %v8324_v51, %v8655_v63  ;;  %v1543_v32 = vmul.f32 %v8601_v53, %v8851_v0  ;;  %v8977_v29 = vld [vmem:[%s10346_s2 + $0x58] sm:$0xff] }
 0x1ba   : > { %2129 = vmatmul.mubr.f32.gmra.mrb[28].mxu0 %v8900_v49  ;;  %v1548_v35 = vmul.f32 %v8601_v53, %v8853_v7  ;;  %v8983_v51 = vld [vmem:[%s10346_s2 + $0x70] sm:$0xff]  ;;  %v1731_v53 = vmul.f32 %v8737_v39, %v8853_v7  ;;  %v1721_v18 = vmul.f32 %v8737_v39, %v8811_v10  ;;  %v9011_v10 = vld [vmem:[%s10346_s2 + $0xa0] sm:$0xff]  ;;  %v9052_v7 = vld [vmem:[%s10346_s2 + $0xe8] sm:$0xff] }
 0x1bb   : > { %7040 = vrot.lane.b32.xlu0 %v7039_v12, %s7372_s22  ;;  %2133 = vmatprep.mubr.f32.mxu0 %v8906_v4  ;;  %v7054_v12 = vpack.i.bf16 %v1538_v3, %v1533_v60  ;;  %v9136_v60 = vld [vmem:[%s10346_s2 + $0x178] sm:$0xff] }
 0x1bc   : > { %2940 = vmatmul.mubr.f32.gmra.mrb[24].mxu1 %v8515_v19  ;;  %v2721_v19 = vld [vmem:[%s7432_s26 + $0x68] sm:$0xff]  ;;  %v7064_v63 = vpack.i.bf16 %v1548_v35, %v1543_v32  ;;  %v9154_v3 = vld [vmem:[%s10347_s3 + $0x38] sm:$0xff]  ;;  %v10586_v35 = vld [vmem:[#allocation21_spill] sm:$0xff] }
 0x1bd   : > { %7035 = vrot.lane.b32.xlu1 %v7034_v31, %s7373_s25  ;;  %2944 = vmatprep.mubr.f32.mxu1 %v8534_v46  ;;  %v7059_v46 = vpack.i.bf16 %v917_v52, %v912_v56  ;;  %v6422_v44 = vpack.c.bf16 %v2721_v19, %v2720_v1  ;;  %v1716_v31 = vmul.f32 %v8737_v39, %v8809_v28  ;;  %v9024_v28 = vld [vmem:[%s10346_s2 + $0xb8] sm:$0xff]  ;;  %v9108_v52 = vld [vmem:[%s10346_s2 + $0x148] sm:$0xff] }
 0x1be   : > { %2134 = vmatmul.mubr.f32.gmra.mrb[30].mxu0 %v8924_v8  ;;  %v9098_v56 = vld [vmem:[%s10347_s3 + $0x18] sm:$0xff]  ;;  %v9164_v1 = vld [vmem:[%s10345_s1 + $0x8] sm:$0xff] }
 0x1bf   : > { %7050 = vrot.lane.b32.xlu0 %v7049_v41, %s7372_s22  ;;  %6140 = vmatprep.mubr.msk.f32.mxu0 %vm1945_vm4, %v8930_v14  ;;  %v9080_v41 = vld [vmem:[%s10346_s2 + $0x118] sm:$0xff]  ;;  %10576 = vst [vmem:[#allocation6_spill] sm:$0xff] %v9164_v1  ;;  %v10585_v32 = vld [vmem:[#allocation18_spill] sm:$0xff] }
 0x1c0   : > { %2945 = vmatmul.mubr.f32.gmra.mrb[26].mxu1 %v8563_v16  ;;  %v7069_v16 = vpack.i.bf16 %v927_v5, %v922_v23  ;;  %v10577_v19 = vld [vmem:[#allocation12_spill] sm:$0xff]  ;;  %v10579_v23 = vld [vmem:[#allocation14_spill] sm:$0xff] }
 0x1c1   : > { %7045 = vrot.lane.b32.xlu1 %v7044_v58, %s7373_s25  ;;  %2949 = vmatprep.mubr.f32.mxu1 %v8572_v27  ;;  %v1726_v27 = vmul.f32 %v8737_v39, %v8851_v0  ;;  %v9042_v0 = vld [vmem:[%s10347_s3] sm:$0xff]  ;;  %v9126_v58 = vld [vmem:[%s10347_s3 + $0x28] sm:$0xff] }
 0x1c2   : > { %6141 = vmatmul.mubr.msk.f32.vlgmr.msra.gmra.mrb[32].mxu0 %vm1945_vm4, %v8951_v2  ;;  %v9206_v5 = vld [vmem:[%s10346_s2 + $0x8] sm:$0xff] }
 0x1c3   : > { %7060 = vrot.lane.b32.xlu0 %v7059_v46, %s7370_s12  ;;  %6143 = vmatprep.mubr.msk.f32.mxu0 %vm1945_vm4, %v8957_v21  ;;  %v7079_v39 = vpack.i.bf16 %v1731_v53, %v1726_v27  ;;  %v9195_v46 = vld [vmem:[%s10347_s3 + $0x58] sm:$0xff]  ;;  %10580 = vst [vmem:[#allocation24_spill] sm:$0xff] %v9206_v5  ;;  %v10587_v27 = vld [vmem:[#allocation22_spill] sm:$0xff] }
 0x1c4   : > { %6421 = vmatpush3.bf16.msra.mxu0 %v8785_v37  ;;  %2950 = vmatmul.mubr.f32.gmra.mrb[28].mxu1 %v8607_v45  ;;  %v2722_v37 = vld [vmem:[%s7432_s26 + $0x88] sm:$0xf] }
 0x1c5   : > { %7055 = vrot.lane.b32.xlu1 %v7054_v12, %s7371_s15  ;;  %6423 = vmatprep.subr.bf16.mxu0 %v6422_v44  ;;  %v9005_v45 = vld [vmem:[%s10346_s2 + $0x88] sm:$0xff]  ;;  %v10584_v12 = vld [vmem:[#allocation17_spill] sm:$0xff] }
 0x1c6   : > { %6144 = vmatmul.mubr.msk.f32.gmra.mrb[34].mxu0 %vm1945_vm4, %v8977_v29  ;;  %2954 = vmatprep.mubr.f32.mxu1 %v8621_v54  ;;  %v7074_v54 = vpack.i.bf16 %v1721_v18, %v1716_v31 }
 0x1c7   : > { %7070 = vrot.lane.b32.xlu0 %v7069_v16, %s7370_s12  ;;  %6146 = vmatprep.mubr.msk.f32.mxu0 %vm1945_vm4, %v8983_v51 }
 0x1c8   : > { %6425 = vmatpush3.bf16.msra.mxu0 %v6422_v44  ;;  %2955 = vmatmul.mubr.f32.gmra.mrb[30].mxu1 %v8651_v11  ;;  %v9030_v11 = vld [vmem:[%s10346_s2 + $0xd0] sm:$0xff]  ;;  %v10582_v44 = vld [vmem:[#allocation16_spill] sm:$0xff] }
 0x1c9   : > { %7065 = vrot.lane.b32.xlu1 %v7064_v63, %s7371_s15  ;;  %6172 = vmatprep.subr.msk.mxu0 %vm2333_vm9, %v2722_v37 }
 0x1ca   : > { %6147 = vmatmul.mubr.msk.f32.gmra.mrb[36].mxu0 %vm1945_vm4, %v9005_v45  ;;  %2959 = vmatprep.mubr.f32.mxu1 %v8661_v62  ;;  %v9036_v62 = vld [vmem:[%s10347_s3 + $0x8] sm:$0xff] }
 0x1cb   : > { %7080 = vrot.lane.b32.xlu0 %v7079_v39, %s7369_s7  ;;  %6149 = vmatprep.mubr.msk.f32.mxu0 %vm1945_vm4, %v9011_v10  ;;  %v10588_v39 = vunpack.i.l.bf16 %v8326_v42 }
 0x1cc   : > { %6173 = vmatpush3.msk.msra.mxu0 %vm2333_vm9, %v2722_v37  ;;  %2960 = vmatmul.mubr.f32.gmra.mrb[32].mxu1 %v8687_v61  ;;  %v9058_v61 = vld [vmem:[%s10346_s2 + $0x100] sm:$0xff] }
 0x1cd   : > { %7075 = vrot.lane.b32.xlu1 %v7074_v54, %s7369_s7  ;;  %2964 = vmatprep.mubr.f32.mxu1 %v8698_v24  ;;  %v9064_v24 = vld [vmem:[%s10347_s3 + $0x20] sm:$0xff] }
 0x1ce   : > { %6150 = vmatmul.mubr.msk.f32.gmra.mrb[38].mxu0 %vm1945_vm4, %v9024_v28 }
 0x1cf   : > { %6152 = vmatprep.mubr.msk.f32.mxu0 %vm1945_vm4, %v9030_v11  ;;  %2505 = vperm.xlu0 %7085, %v9036_v62  }
 0x1d0   : > { %2965 = vmatmul.mubr.f32.gmra.mrb[34].mxu1 %v8733_v36  ;;  %v9086_v36 = vld [vmem:[%s10346_s2 + $0x130] sm:$0xff] }
 0x1d1   : > { %2500 = vperm.xlu1 %7084, %v9042_v0   ;;  %2969 = vmatprep.mubr.f32.mxu1 %v8742_v48  ;;  %v9092_v48 = vld [vmem:[%s10347_s3 + $0x30] sm:$0xff] }
 0x1d2   : > { %6153 = vmatmul.mubr.msk.f32.gmra.mrb[40].mxu0 %vm1945_vm4, %v9052_v7 }
 0x1d3   : > { %6155 = vmatprep.mubr.msk.f32.mxu0 %vm1945_vm4, %v9058_v61  ;;  %2520 = vperm.xlu0 %7085, %v9064_v24  }
 0x1d4   : > { %2970 = vmatmul.mubr.f32.gmra.mrb[36].mxu1 %v8768_v20  ;;  %v9114_v20 = vld [vmem:[%s10346_s2 + $0x160] sm:$0xff] }
 0x1d5   : > { %2510 = vperm.xlu1 %7084, %v9070_v55   ;;  %2974 = vmatprep.mubr.f32.mxu1 %v8782_v17  ;;  %v9120_v17 = vld [vmem:[%s10347_s3 + $0x40] sm:$0xff] }
 0x1d6   : > { %6156 = vmatmul.mubr.msk.f32.gmra.mrb[42].mxu0 %vm1945_vm4, %v9080_v41 }
 0x1d7   : > { %6158 = vmatprep.mubr.msk.f32.mxu0 %vm1945_vm4, %v9086_v36  ;;  %2530 = vperm.xlu0 %7085, %v9092_v48  }
 0x1d8   : > { %2975 = vmatmul.mubr.f32.gmra.mrb[38].mxu1 %v8807_v15  ;;  %v9142_v15 = vld [vmem:[%s10345_s1] sm:$0xff] }
 0x1d9   : > { %2515 = vperm.xlu1 %7084, %v9098_v56   ;;  %2979 = vmatprep.mubr.f32.mxu1 %v8822_v6  ;;  %10575 = vst [vmem:[#allocation23_spill] sm:$0xff] %v9142_v15  ;;  %v9148_v6 = vld [vmem:[%s10347_s3 + $0x50] sm:$0xff] }
 0x1da   : > { %6159 = vmatmul.mubr.msk.f32.gmra.mrb[44].mxu0 %vm1945_vm4, %v9108_v52 }
 0x1db   : > { %6161 = vmatprep.mubr.msk.f32.mxu0 %vm1945_vm4, %v9114_v20  ;;  %2540 = vperm.xlu0 %7085, %v9120_v17  }
 0x1dc   : > { %2980 = vmatmul.mubr.f32.gmra.mrb[40].mxu1 %v8849_v59  ;;  %v9171_v59 = vld [vmem:[%s10347_s3 + $0x60] sm:$0xff] }
 0x1dd   : > { %2525 = vperm.xlu1 %7084, %v9126_v58   ;;  %2984 = vmatprep.mubr.f32.mxu1 %v8859_v57  ;;  %v9177_v57 = vld [vmem:[%s10347_s3 + $0x48] sm:$0xff] }
 0x1de   : > { %6162 = vmatmul.mubr.msk.f32.gmra.mrb[46].mxu0 %vm1945_vm4, %v9136_v60 }
 0x1df   : > { %6174 = vmatprep.mubr.msk.f32.mxu0 %vm2284_vm10, %v9142_v15  ;;  %2550 = vperm.xlu0 %7085, %v9148_v6  }
 0x1e0   : > { %2985 = vmatmul.mubr.f32.gmra.mrb[42].mxu1 %v8876_v50  ;;  %v9189_v50 = vld [vmem:[%s10347_s3 + $0x70] sm:$0xff] }
 0x1e1   : > { %2535 = vperm.xlu1 %7084, %v9154_v3   ;;  %2989 = vmatprep.mubr.f32.mxu1 %v8882_v25  ;;  %v10578_v25 = vld [vmem:[#allocation13_spill] sm:$0xff] }
 0x1e2   : > { %6175 = vmatmul.mubr.msk.f32.vlgmr.msra.gmra.mrb[32].mxu0 %vm2284_vm10, %v9164_v1 }
 0x1e3   : > { %6177 = vmatprep.mubr.msk.f32.mxu0 %vm2284_vm10, %v10577_v19  ;;  %2560 = vperm.xlu0 %7085, %v9171_v59   ;;  %v10589_v19 = vunpack.i.h.bf16 %v8326_v42 }
 0x1e4   : > { %2990 = vmatmul.mubr.f32.gmra.mrb[44].mxu1 %v8900_v49  ;;  %v9213_v49 = vld [vmem:[%s10347_s3 + $0x68] sm:$0xff] }
 0x1e5   : > { %2545 = vperm.xlu1 %7084, %v9177_v57   ;;  %2994 = vmatprep.mubr.f32.mxu1 %v8906_v4  ;;  %v10581_v4 = vld [vmem:[#allocation15_spill] sm:$0xff] }
 0x1e6   : > { %6178 = vmatmul.mubr.msk.f32.gmra.mrb[34].mxu0 %vm2284_vm10, %v10578_v25 }
 0x1e7   : > { %6180 = vmatprep.mubr.msk.f32.mxu0 %vm2284_vm10, %v10579_v23  ;;  %2570 = vperm.xlu0 %7085, %v9189_v50   ;;  %v10590_v23 = vunpack.i.h.bf16 %v8392_v43 }
 0x1e8   : > { %2995 = vmatmul.mubr.f32.gmra.mrb[46].mxu1 %v8924_v8  ;;  %v9225_v8 = vld [vmem:[%s10347_s3 + $0x78] sm:$0xff] }
 0x1e9   : > { %2555 = vperm.xlu1 %7084, %v9195_v46   ;;  %3778 = vmatprep.mubr.f32.mxu1 %v9206_v5  ;;  %10583 = vst [vmem:[#allocation9_spill] sm:$0xff] %v9225_v8 }
 0x1ea   : > { %6181 = vmatmul.mubr.msk.f32.gmra.mrb[36].mxu0 %vm2284_vm10, %v10581_v4 }
 0x1eb   : > { %6183 = vmatprep.mubr.msk.f32.mxu0 %vm2284_vm10, %v10582_v44  ;;  %3359 = vperm.xlu0 %7085, %v9042_v0   ;;  %v10591_v44 = vunpack.i.l.bf16 %v8392_v43 }
 0x1ed   : > { %2565 = vperm.xlu1 %7084, %v9213_v49  }
 0x1ee   : > { %6184 = vmatmul.mubr.msk.f32.gmra.mrb[38].mxu0 %vm2284_vm10, %v10584_v12 }
 0x1ef   : > { %6186 = vmatprep.mubr.msk.f32.mxu0 %vm2284_vm10, %v10585_v32  ;;  %3369 = vperm.xlu0 %7085, %v9070_v55  }
 0x1f1   : > { %2575 = vperm.xlu1 %7084, %v9225_v8  }
 0x1f2   : > { %6187 = vmatmul.mubr.msk.f32.gmra.mrb[40].mxu0 %vm2284_vm10, %v10586_v35  ;;  %v9235_v16 = vpop.permute.xlu1 %6940 }
 0x1f3   : > { %6189 = vmatprep.mubr.msk.f32.mxu0 %vm2284_vm10, %v10587_v27  ;;  %3379 = vperm.xlu0 %7085, %v9064_v24   ;;  %v10473_v53 = vunpack.i.h.bf16 %v9235_v16  ;;  %v10474_v63 = vunpack.i.l.bf16 %v9235_v16  ;;  %v9242_v31 = vpop.permute.xlu0 %6945 }
 0x1f4   : > { %v10467_v18 = vunpack.i.h.bf16 %v9242_v31  ;;  %v10472_v37 = vunpack.i.l.bf16 %v9242_v31 }
 0x1f5   : > { %3364 = vperm.xlu1 %7084, %v9036_v62   ;;  %v1245_v54 = vsel %vm899_vm8, %v10588_v39, %v10474_v63  ;;  %v1249_v25 = vsel %vm899_vm8, %v10589_v19, %v10473_v53 }
 0x1f6   : > { %6190 = vmatmul.mubr.msk.f32.gmra.mrb[42].mxu0 %vm2284_vm10, %v8348_v47  ;;  %v625_v4 = vsel %vm618_vm7, %v10590_v23, %v10467_v18  ;;  %v621_v12 = vsel %vm618_vm7, %v10591_v44, %v10472_v37  ;;  %v9269_v32 = vpop.permute.xlu1 %6950  ;;  %v6434_v42 = vpack.c.bf16 %v1249_v25, %v1245_v54  ;;  %v10593_v25 = vunpack.i.h.bf16 %v8386_v33 }
 0x1f7   : > { %6192 = vmatprep.mubr.msk.f32.mxu0 %vm2284_vm10, %v8357_v26  ;;  %3389 = vperm.xlu0 %7085, %v9092_v48   ;;  %v6436_v47 = vpack.c.bf16 %v625_v4, %v621_v12  ;;  %v10464_v35 = vunpack.i.h.bf16 %v9269_v32  ;;  %v10466_v27 = vunpack.i.l.bf16 %v9269_v32  ;;  %v9276_v39 = vpop.permute.xlu0 %6955  ;;  %v10592_v26 = vunpack.i.l.bf16 %v8386_v33 }
 0x1f8   : > { %v10461_v43 = vunpack.i.h.bf16 %v9276_v39  ;;  %v10462_v19 = vunpack.i.l.bf16 %v9276_v39  ;;  %6435 = vmatprep.subr.bf16.mxu1 %v6434_v42  ;;  %v10594_v4 = vunpack.i.h.bf16 %v8451_v30  ;;  %v10595_v12 = vunpack.i.l.bf16 %v8451_v30 }
 0x1f9   : > { %3374 = vperm.xlu1 %7084, %v9098_v56   ;;  %6437 = vmatpush3.bf16.msra.mxu1 %v6436_v47  ;;  %v1253_v54 = vsel %vm899_vm8, %v10592_v26, %v10466_v27  ;;  %v1257_v23 = vsel %vm899_vm8, %v10593_v25, %v10464_v35 }
 0x1fa   : > { %6193 = vmatmul.mubr.msk.f32.gmra.mrb[44].mxu0 %vm2284_vm10, %v8408_v13  ;;  %v633_v44 = vsel %vm618_vm7, %v10594_v4, %v10461_v43  ;;  %v629_v42 = vsel %vm618_vm7, %v10595_v12, %v10462_v19  ;;  %v6438_v47 = vpack.c.bf16 %v1257_v23, %v1253_v54  ;;  %v10598_v12 = vunpack.i.l.bf16 %v8528_v9 }
 0x1fb   : > { %6195 = vmatprep.mubr.msk.f32.mxu0 %vm2284_vm10, %v8429_v40  ;;  %3399 = vperm.xlu0 %7085, %v9120_v17   ;;  %v6440_v33 = vpack.c.bf16 %v633_v44, %v629_v42 }
 0x1fc   : > { %6439 = vmatprep.subr.bf16.mxu1 %v6438_v47 }
 0x1fd   : > { %3384 = vperm.xlu1 %7084, %v9126_v58   ;;  %6441 = vmatpush3.bf16.msra.mxu1 %v6440_v33  ;;  %v10600_v33 = vunpack.i.h.bf16 %v8498_v22 }
 0x1fe   : > { %6196 = vmatmul.mubr.msk.f32.gmra.mrb[46].mxu0 %vm2284_vm10, %v8463_v38  ;;  %v10596_v38 = vunpack.i.l.bf16 %v8441_v34 }
 0x1ff   : > { %6206 = vmatprep.mubr.msk.f32.mxu0 %vm1945_vm4, %v8930_v14  ;;  %3409 = vperm.xlu0 %7085, %v9148_v6   ;;  %v10597_v6 = vunpack.i.h.bf16 %v8441_v34 }
 0x201   : > { %3394 = vperm.xlu1 %7084, %v9154_v3  }
 0x203   : > { %v9313_v13 = vpop.permute.xlu1 %6960  ;;  %3419 = vperm.xlu0 %7085, %v9171_v59  }
 0x204   : > { %v10453_v40 = vunpack.i.h.bf16 %v9313_v13  ;;  %v10456_v30 = vunpack.i.l.bf16 %v9313_v13 }
 0x205   : > { %3404 = vperm.xlu1 %7084, %v9177_v57  }
 0x206   : > { %v1428_v14 = vsel %vm714_vm6, %v10596_v38, %v10456_v30  ;;  %v1432_v26 = vsel %vm714_vm6, %v10597_v6, %v10453_v40  ;;  %v10609_v30 = vld [vmem:[#allocation28_spill] sm:$0xff] }
 0x207   : > { %v9329_v54 = vpop.permute.xlu1 %6970  ;;  %v6442_v59 = vpack.c.bf16 %v1432_v26, %v1428_v14  ;;  %3429 = vperm.xlu0 %7085, %v9189_v50   ;;  %v10599_v50 = vunpack.i.h.bf16 %v8528_v9  ;;  %v10601_v14 = vunpack.i.l.bf16 %v8498_v22  ;;  %v10602_v22 = vld [vmem:[#allocation26_spill] sm:$0xff] }
 0x208   : > { %v10451_v25 = vunpack.i.h.bf16 %v9329_v54  ;;  %v10452_v23 = vunpack.i.l.bf16 %v9329_v54 }
 0x209   : > { %3414 = vperm.xlu1 %7084, %v9195_v46   ;;  %v9335_v4 = vpop.permute.xlu0 %6965  ;;  %6443 = vmatprep.subr.bf16.mxu1 %v6442_v59 }
 0x20a   : > { %v10457_v44 = vunpack.i.h.bf16 %v9335_v4  ;;  %v10460_v34 = vunpack.i.l.bf16 %v9335_v4  ;;  %v1436_v42 = vsel %vm714_vm6, %v10598_v12, %v10452_v23  ;;  %v1440_v47 = vsel %vm714_vm6, %v10599_v50, %v10451_v25 }
 0x20b   : > { %4218 = vperm.xlu0 %7085, %v9042_v0   ;;  %v6446_v50 = vpack.c.bf16 %v1440_v47, %v1436_v42 }
 0x20c   : > { %v810_v38 = vsel %vm803_vm5, %v10600_v33, %v10457_v44  ;;  %v806_v6 = vsel %vm803_vm5, %v10601_v14, %v10460_v34  ;;  %v10603_v33 = vunpack.i.h.bf16 %v10602_v22 }
 0x20d   : > { %3424 = vperm.xlu1 %7084, %v9213_v49   ;;  %v6444_v26 = vpack.c.bf16 %v810_v38, %v806_v6  ;;  %v9361_v9 = vpop.permute.xlu0 %6975  ;;  %v10604_v38 = vunpack.i.l.bf16 %v10602_v22 }
 0x20e   : > { %v10454_v59 = vunpack.i.h.bf16 %v9361_v9  ;;  %v10455_v12 = vunpack.i.l.bf16 %v9361_v9 }
 0x20f   : > { %6445 = vmatpush3.bf16.msra.mxu1 %v6444_v26  ;;  %v9365_v25 = vpop.permute.xlu1 %6980  ;;  %4228 = vperm.xlu0 %7085, %v9070_v55   ;;  %v10605_v26 = vld [vmem:[#allocation25_spill] sm:$0xff] }
 0x210   : > { %v818_v14 = vsel %vm803_vm5, %v10603_v33, %v10454_v59  ;;  %v814_v6 = vsel %vm803_vm5, %v10604_v38, %v10455_v12  ;;  %v10458_v23 = vunpack.i.h.bf16 %v9365_v25  ;;  %v10459_v42 = vunpack.i.l.bf16 %v9365_v25  ;;  %6447 = vmatprep.subr.bf16.mxu1 %v6446_v50 }
 0x211   : > { %3434 = vperm.xlu1 %7084, %v9225_v8   ;;  %v6448_v47 = vpack.c.bf16 %v818_v14, %v814_v6  ;;  %v10606_v40 = vunpack.i.l.bf16 %v10605_v26  ;;  %v10607_v22 = vunpack.i.h.bf16 %v10605_v26  ;;  %v10608_v6 = vld [vmem:[#allocation5_spill] sm:$0xff] }
 0x212   : > { %v1071_v44 = vrot.slane %v10609_v30, %v10608_v6  ;;  %v1040_v26 = vld [vmem:[#allocation2 + $0x20] sm:$0xff] }
 0x213   : > { %v1611_v33 = vsel %vm529_vm3, %v10606_v40, %v10459_v42  ;;  %v1615_v38 = vsel %vm529_vm3, %v10607_v22, %v10458_v23  ;;  %6449 = vmatpush3.bf16.msra.mxu1 %v6448_v47  ;;  %v9391_v59 = vpop.permute.xlu1 %6990  ;;  %4238 = vperm.xlu0 %7085, %v9064_v24   ;;  %v1044_v22 = vld [vmem:[#allocation2 + $0x50] sm:$0xff] }
 0x214   : > { %v6450_v12 = vpack.c.bf16 %v1615_v38, %v1611_v33  ;;  %v10465_v50 = vunpack.i.h.bf16 %v9391_v59  ;;  %v10463_v14 = vunpack.i.l.bf16 %v9391_v59  ;;  %v9399_v40 = vpop.permute.xlu0 %6985  ;;  %v10610_v38 = vld [vmem:[#allocation29_spill] sm:$0xff]  ;;  %v1083_v35 = vmul.f32 %v1071_v44, %v1044_v22 }
 0x215   : > { %4223 = vperm.xlu1 %7084, %v9036_v62   ;;  %v10468_v47 = vunpack.i.h.bf16 %v9399_v40  ;;  %v10471_v33 = vunpack.i.l.bf16 %v9399_v40  ;;  %v10611_v23 = vunpack.i.l.bf16 %v10610_v38  ;;  %v10612_v30 = vunpack.i.h.bf16 %v10610_v38 }
 0x216   : > { %6451 = vmatprep.subr.bf16.mxu1 %v6450_v12  ;;  %v10613_v12 = vld [vmem:[#allocation27_spill] sm:$0xff] }
 0x217   : > { %v1619_v42 = vsel %vm529_vm3, %v10611_v23, %v10463_v14  ;;  %v1623_v6 = vsel %vm529_vm3, %v10612_v30, %v10465_v50  ;;  %4248 = vperm.xlu0 %7085, %v9092_v48   ;;  %v10614_v34 = vunpack.i.h.bf16 %v10613_v12  ;;  %v10615_v19 = vunpack.i.l.bf16 %v10613_v12 }
 0x218   : > { %v1079_v14 = vmul.f32 %v1071_v44, %v1040_v26  ;;  %v9425_v30 = vpop.permute.xlu0 %6995  ;;  %v6454_v18 = vpack.c.bf16 %v1623_v6, %v1619_v42 }
 0x219   : > { %v995_v43 = vsel %vm988_vm2, %v10614_v34, %v10468_v47  ;;  %v991_v23 = vsel %vm988_vm2, %v10615_v19, %v10471_v33  ;;  %4233 = vperm.xlu1 %7084, %v9098_v56   ;;  %v10469_v50 = vunpack.i.h.bf16 %v9425_v30  ;;  %v10470_v27 = vunpack.i.l.bf16 %v9425_v30  ;;  %v10616_v34 = vld [vmem:[#allocation31_spill] sm:$0xff] }
 0x21a   : > { %v6452_v38 = vpack.c.bf16 %v995_v43, %v991_v23  ;;  %v10617_v12 = vunpack.i.h.bf16 %v10616_v34  ;;  %v10618_v43 = vunpack.i.l.bf16 %v10616_v34  ;;  %v6474_v22 = vpack.c.bf16 %v1083_v35, %v1079_v14  ;;  %v1052_v23 = vld [vmem:[#allocation2 + $0xb0] sm:$0xff] }
 0x21b   : > { %5077 = vperm.xlu0 %7085, %v9042_v0   ;;  %v1048_v0 = vld [vmem:[#allocation2 + $0x80] sm:$0xff]  ;;  %v10621_v35 = vld [vmem:[#allocation7_spill] sm:$0xff] }
 0x21c   : > { %6453 = vmatpush3.bf16.msra.mxu1 %v6452_v38  ;;  %v1003_v19 = vsel %vm988_vm2, %v10617_v12, %v10469_v50  ;;  %v999_v26 = vsel %vm988_vm2, %v10618_v43, %v10470_v27  ;;  %v6692_v14 = vunpack.i.l.bf16 %v10621_v35  ;;  %v1087_v43 = vmul.f32 %v1071_v44, %v1048_v0  ;;  %v10623_v27 = vld [vmem:[#allocation30_spill] sm:$0xff] }
 0x21d   : > { %6455 = vmatprep.subr.bf16.mxu1 %v6454_v18  ;;  %4243 = vperm.xlu1 %7084, %v9126_v58   ;;  %v6456_v42 = vpack.c.bf16 %v1003_v19, %v999_v26  ;;  %v9441_v6 = vpop.permute.xlu0 %7005  ;;  %v9452_v18 = vld [vmem:[%s10346_s2] sm:$0xff]  ;;  %v1091_v26 = vmul.f32 %v1071_v44, %v1052_v23  ;;  %v10624_v33 = vunpack.i.l.bf16 %v10623_v27  ;;  %v10625_v35 = vunpack.i.h.bf16 %v10623_v27  ;;  %v3578_v27 = vld [vmem:[%s7432_s26 + $0x30] sm:$0xff] }
 0x21e   : > { %10619 = vst [vmem:[#allocation20_spill] sm:$0xff] %v9441_v6  ;;  %v9443_v38 = vpop.permute.xlu1 %7000  ;;  %v10477_v47 = vunpack.i.h.bf16 %v9441_v6  ;;  %v10478_v12 = vunpack.i.l.bf16 %v9441_v6  ;;  %10620 = vst [vmem:[#allocation19_spill] sm:$0xff] %v9452_v18  ;;  %v9459_v19 = vld [vmem:[%s10346_s2 + $0x20] sm:$0xff] }
 0x21f   : > { %v10476_v50 = vunpack.i.h.bf16 %v9443_v38  ;;  %v10475_v34 = vunpack.i.l.bf16 %v9443_v38  ;;  %5087 = vperm.xlu0 %7085, %v9070_v55   ;;  %10622 = vst [vmem:[#allocation12_spill] sm:$0xff] %v9459_v19 }
 0x220   : > { %6457 = vmatpush3.bf16.msra.mxu1 %v6456_v42 }
 0x221   : > { %6475 = vmatprep.subr.bf16.mxu1 %v6474_v22  ;;  %4253 = vperm.xlu1 %7084, %v9154_v3   ;;  %v432_v42 = vpop.permute.xlu0 %431  ;;  %v1794_v55 = vsel %vm344_vm0, %v10624_v33, %v10475_v34  ;;  %v1798_v37 = vsel %vm344_vm0, %v10625_v35, %v10476_v50  ;;  %v10626_v22 = vld [vmem:[#allocation32_spill] sm:$0xff]  ;;  %v3577_v34 = vld [vmem:[%s7432_s26 + $0x10] sm:$0xff] }
 0x222   : > { %v10627_v0 = vunpack.i.l.bf16 %v10626_v22  ;;  %v10628_v23 = vunpack.i.h.bf16 %v10626_v22  ;;  %v6458_v33 = vpack.c.bf16 %v1798_v37, %v1794_v55  ;;  %v9495_v37 = vld [vmem:[%s10346_s2 + $0x38] sm:$0xff]  ;;  %v6466_v5 = vpack.c.bf16 %v3578_v27, %v3577_v34 }
 0x223   : > { %v7011_v63 = vpop.permute.xlu1 %7010  ;;  %3779 = vmatmul.mubr.f32.vlgmr.msra.gmra.mrb[48].mxu1 %v9452_v18  ;;  %5097 = vperm.xlu0 %7085, %v9064_v24   ;;  %v10629_v55 = vld [vmem:[#allocation8_spill] sm:$0xff]  ;;  %v6478_v24 = vpack.c.bf16 %v1091_v26, %v1087_v43  ;;  %v10635_v43 = vunpack.i.l.bf16 %v9235_v16  ;;  %v10636_v26 = vunpack.i.h.bf16 %v9235_v16  ;;  %v10638_v27 = vunpack.i.h.bf16 %v9242_v31  ;;  %v9542_v16 = vld [vmem:[%s10346_s2 + $0x48] sm:$0xff] }
 0x224   : > { %v1802_v44 = vsel %vm344_vm0, %v10627_v0, %v10478_v12  ;;  %v1806_v53 = vsel %vm344_vm0, %v10628_v23, %v10477_v47  ;;  %v7013_v35 = vunpack.i.h.bf16 %v7011_v63  ;;  %v7012_v50 = vunpack.i.l.bf16 %v7011_v63  ;;  %3783 = vmatprep.mubr.f32.mxu1 %v9459_v19  ;;  %v9489_v0 = vld [vmem:[%s10346_s2 + $0x18] sm:$0xff]  ;;  %6459 = vmatprep.subr.bf16.mxu0 %v6458_v33  ;;  %v10631_v47 = vld [vmem:[#allocation10_spill] sm:$0xff] }
 0x225   : > { %v6462_v22 = vpack.c.bf16 %v1806_v53, %v1802_v44  ;;  %5082 = vperm.xlu1 %7084, %v9036_v62   ;;  %v10630_v63 = vunpack.i.h.bf16 %v10629_v55  ;;  %v10632_v12 = vunpack.i.l.bf16 %v10631_v47  ;;  %6461 = vmatpush3.bf16.msra.mxu0 %v6458_v33  ;;  %v7021_v18 = vpop.permute.xlu0 %7020  ;;  %v3579_v53 = vld [vmem:[%s7432_s26 + $0x50] sm:$0xff]  ;;  %v10633_v8 = vunpack.i.h.bf16 %v10631_v47 }
 0x226   : > { %v3580_v44 = vld [vmem:[%s7432_s26 + $0x70] sm:$0xff]  ;;  %v7023_v6 = vunpack.i.h.bf16 %v7021_v18  ;;  %v7022_v55 = vunpack.i.l.bf16 %v7021_v18 }
 0x227   : > { %v437_v23 = vsel %vm433_vm1, %v10630_v63, %v6692_v14  ;;  %v441_v19 = vsel %vm433_vm1, %v10632_v12, %v7012_v50  ;;  %v445_v15 = vsel %vm433_vm1, %v10633_v8, %v7013_v35  ;;  %v7016_v62 = vpop.permute.xlu1 %7015  ;;  %6463 = vmatprep.subr.bf16.mxu0 %v6462_v22  ;;  %3784 = vmatmul.mubr.f32.gmra.mrb[50].mxu1 %v9489_v0  ;;  %v9514_v50 = vld [vmem:[%s10346_s2 + $0x30] sm:$0xff] }
 0x228   : > { %v6476_v1 = vpack.c.bf16 %v441_v19, %v437_v23  ;;  %v7018_v14 = vunpack.i.h.bf16 %v7016_v62  ;;  %v7017_v63 = vunpack.i.l.bf16 %v7016_v62  ;;  %3788 = vmatprep.mubr.f32.mxu1 %v9495_v37  ;;  %5107 = vperm.xlu0 %7085, %v9092_v48   ;;  %v10634_v47 = vld [vmem:[#allocation11_spill] sm:$0xff]  ;;  %v6470_v34 = vpack.c.bf16 %v3580_v44, %v3579_v53 }
 0x229   : > { %v449_v8 = vsel %vm433_vm1, %v10634_v47, %v432_v42  ;;  %v9522_v12 = vld [vmem:[%s10346_s2 + $0x50] sm:$0xff]  ;;  %5092 = vperm.xlu1 %7084, %v9098_v56   ;;  %6465 = vmatpush3.bf16.msra.mxu0 %v6462_v22  ;;  %v7031_v19 = vpop.permute.xlu0 %7030  ;;  %v10637_v42 = vunpack.i.l.bf16 %v9242_v31  ;;  %v626_v56 = vsel %vm618_vm7, %v10638_v27, %v7023_v6  ;;  %v9550_v31 = vld [vmem:[%s10346_s2 + $0x68] sm:$0xff]  ;;  %v10639_v44 = vunpack.i.l.bf16 %v9269_v32 }
 0x22a   : > { %6477 = vmatpush3.bf16.msra.mxu1 %v6476_v1  ;;  %v6480_v18 = vpack.c.bf16 %v449_v8, %v445_v15  ;;  %v1246_v48 = vsel %vm899_vm8, %v10635_v43, %v7017_v63  ;;  %v1250_v1 = vsel %vm899_vm8, %v10636_v26, %v7018_v14  ;;  %6467 = vmatprep.subr.bf16.mxu0 %v6466_v5  ;;  %v7032_v53 = vunpack.i.l.bf16 %v7031_v19  ;;  %v9571_v26 = vld [vmem:[%s10346_s2 + $0x60] sm:$0xff] }
 0x22b   : > { %6479 = vmatprep.subr.bf16.mxu1 %v6478_v24  ;;  %v622_v33 = vsel %vm618_vm7, %v10637_v42, %v7022_v55  ;;  %v7026_v15 = vpop.permute.xlu1 %7025  ;;  %3789 = vmatmul.mubr.f32.gmra.mrb[52].mxu1 %v9514_v50  ;;  %v6482_v35 = vpack.c.bf16 %v1250_v1, %v1246_v48  ;;  %v7033_v24 = vunpack.i.h.bf16 %v7031_v19  ;;  %v10642_v19 = vunpack.i.h.bf16 %v9276_v39  ;;  %v3581_v42 = vld [vmem:[%s7432_s26 + $0x90] sm:$0xf] }
 0x22c   : > { %v7028_v22 = vunpack.i.h.bf16 %v7026_v15  ;;  %v7027_v23 = vunpack.i.l.bf16 %v7026_v15  ;;  %3793 = vmatprep.mubr.f32.mxu1 %v9522_v12  ;;  %4258 = vperm.xlu0 %7085, %v9120_v17   ;;  %v10640_v17 = vunpack.i.h.bf16 %v9269_v32  ;;  %v10645_v15 = vunpack.i.l.bf16 %v9313_v13 }
 0x22d   : > { %6207 = vmatmul.mubr.msk.f32.vlgmr.msra.gmra.mrb[48].mxu0 %vm1945_vm4, %v8951_v2  ;;  %v7041_v6 = vpop.permute.xlu0 %7040  ;;  %v6484_v2 = vpack.c.bf16 %v626_v56, %v622_v33  ;;  %v634_v43 = vsel %vm618_vm7, %v10642_v19, %v7033_v24  ;;  %v10644_v33 = vunpack.i.h.bf16 %v9335_v4  ;;  %5102 = vperm.xlu1 %7084, %v9126_v58   ;;  %v10651_v58 = vunpack.i.l.bf16 %v9365_v25 }
 0x22e   : > { %6481 = vmatpush3.bf16.msra.mxu1 %v6480_v18  ;;  %6209 = vmatprep.mubr.msk.f32.mxu0 %vm1945_vm4, %v8957_v21  ;;  %v1254_v62 = vsel %vm899_vm8, %v10639_v44, %v7027_v23  ;;  %v1258_v55 = vsel %vm899_vm8, %v10640_v17, %v7028_v22  ;;  %v7043_v63 = vunpack.i.h.bf16 %v7041_v6  ;;  %v7042_v47 = vunpack.i.l.bf16 %v7041_v6 }
 0x22f   : > { %6483 = vmatprep.subr.bf16.mxu1 %v6482_v35  ;;  %v7036_v14 = vpop.permute.xlu1 %7035  ;;  %3794 = vmatmul.mubr.f32.gmra.mrb[54].mxu1 %v9542_v16  ;;  %v6486_v8 = vpack.c.bf16 %v1258_v55, %v1254_v62  ;;  %v10641_v18 = vunpack.i.l.bf16 %v9276_v39  ;;  %v9581_v39 = vld [vmem:[%s10346_s2 + $0x80] sm:$0xff]  ;;  %v10646_v35 = vunpack.i.h.bf16 %v9313_v13  ;;  %v10647_v17 = vunpack.i.l.bf16 %v9361_v9 }
 0x230   : > { %6469 = vmatpush3.bf16.msra.mxu0 %v6466_v5  ;;  %v7038_v32 = vunpack.i.h.bf16 %v7036_v14  ;;  %v7037_v48 = vunpack.i.l.bf16 %v7036_v14  ;;  %3798 = vmatprep.mubr.f32.mxu1 %v9550_v31  ;;  %v10643_v5 = vunpack.i.l.bf16 %v9335_v4  ;;  %v811_v27 = vsel %vm803_vm5, %v10644_v33, %v7043_v63 }
 0x231   : > { %v630_v21 = vsel %vm618_vm7, %v10641_v18, %v7032_v53  ;;  %6471 = vmatprep.subr.bf16.mxu0 %v6470_v34  ;;  %6210 = vmatmul.mubr.msk.f32.gmra.mrb[50].mxu0 %vm1945_vm4, %v8977_v29  ;;  %v7051_v56 = vpop.permute.xlu0 %7050  ;;  %v10648_v14 = vunpack.i.l.bf16 %v9329_v54 }
 0x232   : > { %v807_v1 = vsel %vm803_vm5, %v10643_v5, %v7042_v47  ;;  %6485 = vmatpush3.bf16.msra.mxu1 %v6484_v2  ;;  %6212 = vmatprep.mubr.msk.f32.mxu0 %vm1945_vm4, %v8983_v51  ;;  %v1429_v29 = vsel %vm714_vm6, %v10645_v15, %v7037_v48  ;;  %v1433_v22 = vsel %vm714_vm6, %v10646_v35, %v7038_v32  ;;  %v7053_v53 = vunpack.i.h.bf16 %v7051_v56  ;;  %v9600_v51 = vld [vmem:[%s10346_s2 + $0x78] sm:$0xff]  ;;  %v9643_v5 = vld [vmem:[%s10346_s2 + $0xb0] sm:$0xff] }
 0x233   : > { %6487 = vmatprep.subr.bf16.mxu1 %v6486_v8  ;;  %v6488_v23 = vpack.c.bf16 %v634_v43, %v630_v21  ;;  %v7046_v24 = vpop.permute.xlu1 %7045  ;;  %v7052_v6 = vunpack.i.l.bf16 %v7051_v56  ;;  %3799 = vmatmul.mubr.f32.gmra.mrb[56].mxu1 %v9571_v26  ;;  %v6490_v4 = vpack.c.bf16 %v1433_v22, %v1429_v29  ;;  %v6492_v13 = vpack.c.bf16 %v811_v27, %v807_v1 }
 0x234   : > { %6473 = vmatpush3.bf16.msra.mxu0 %v6470_v34  ;;  %v7048_v44 = vunpack.i.h.bf16 %v7046_v24  ;;  %v7047_v62 = vunpack.i.l.bf16 %v7046_v24  ;;  %3803 = vmatprep.mubr.f32.mxu1 %v9581_v39  ;;  %v9608_v34 = vld [vmem:[%s10346_s2 + $0x98] sm:$0xff]  ;;  %v10650_v8 = vunpack.i.h.bf16 %v9361_v9  ;;  %v9636_v9 = vld [vmem:[%s10347_s3 + $0x50] sm:$0xff]  ;;  %v10652_v27 = vunpack.i.h.bf16 %v9365_v25 }
 0x235   : > { %6238 = vmatprep.subr.msk.mxu0 %vm2333_vm9, %v3581_v42  ;;  %6213 = vmatmul.mubr.msk.f32.gmra.mrb[52].mxu0 %vm1945_vm4, %v9005_v45  ;;  %v815_v55 = vsel %vm803_vm5, %v10647_v17, %v7052_v6  ;;  %v7061_v2 = vpop.permute.xlu0 %7060  ;;  %v10649_v45 = vunpack.i.h.bf16 %v9329_v54  ;;  %v9630_v54 = vld [vmem:[%s10346_s2 + $0x90] sm:$0xff]  ;;  %v10653_v56 = vunpack.i.l.bf16 %v9399_v40  ;;  %v10654_v29 = vunpack.i.h.bf16 %v9399_v40  ;;  %v9665_v6 = vld [vmem:[%s10346_s2 + $0xa8] sm:$0xff]  ;;  %v9671_v40 = vld [vmem:[%s10347_s3 + $0x60] sm:$0xff] }
 0x236   : > { %6489 = vmatpush3.bf16.msra.mxu1 %v6488_v23  ;;  %6215 = vmatprep.mubr.msk.f32.mxu0 %vm1945_vm4, %v9011_v10  ;;  %v1437_v63 = vsel %vm714_vm6, %v10648_v14, %v7047_v62  ;;  %v819_v18 = vsel %vm803_vm5, %v10650_v8, %v7053_v53  ;;  %v7063_v19 = vunpack.i.h.bf16 %v7061_v2  ;;  %v7062_v43 = vunpack.i.l.bf16 %v7061_v2  ;;  %v9706_v8 = vld [vmem:[%s10347_s3 + $0x70] sm:$0xff] }
 0x237   : > { %6491 = vmatprep.subr.bf16.mxu1 %v6490_v4  ;;  %v1441_v47 = vsel %vm714_vm6, %v10649_v45, %v7048_v44  ;;  %v7056_v21 = vpop.permute.xlu1 %7055  ;;  %3804 = vmatmul.mubr.f32.gmra.mrb[58].mxu1 %v9600_v51  ;;  %v6496_v1 = vpack.c.bf16 %v819_v18, %v815_v55  ;;  %v9678_v4 = vld [vmem:[%s10346_s2 + $0xc8] sm:$0xff]  ;;  %v10656_v62 = vunpack.i.h.bf16 %v9391_v59  ;;  %v10657_v2 = vunpack.i.l.bf16 %v9425_v30 }
 0x238   : > { %v6494_v32 = vpack.c.bf16 %v1441_v47, %v1437_v63  ;;  %6239 = vmatpush3.msk.msra.mxu0 %vm2333_vm9, %v3581_v42  ;;  %v7058_v10 = vunpack.i.h.bf16 %v7056_v21  ;;  %v7057_v48 = vunpack.i.l.bf16 %v7056_v21  ;;  %3808 = vmatprep.mubr.f32.mxu1 %v9608_v34  ;;  %v992_v15 = vsel %vm988_vm2, %v10653_v56, %v7062_v43 }
 0x239   : > { %6216 = vmatmul.mubr.msk.f32.gmra.mrb[54].mxu0 %vm1945_vm4, %v9024_v28  ;;  %v7071_v42 = vpop.permute.xlu0 %7070  ;;  %v996_v35 = vsel %vm988_vm2, %v10654_v29, %v7063_v19  ;;  %4268 = vperm.xlu0 %7085, %v9636_v9   ;;  %v10659_v18 = vunpack.i.l.bf16 %v9443_v38 }
 0x23a   : > { %6493 = vmatpush3.bf16.msra.mxu1 %v6492_v13  ;;  %6218 = vmatprep.mubr.msk.f32.mxu0 %vm1945_vm4, %v9030_v11  ;;  %v1612_v33 = vsel %vm529_vm3, %v10651_v58, %v7057_v48  ;;  %v1616_v28 = vsel %vm529_vm3, %v10652_v27, %v7058_v10  ;;  %v7073_v53 = vunpack.i.h.bf16 %v7071_v42  ;;  %v7072_v25 = vunpack.i.l.bf16 %v7071_v42  ;;  %v10661_v27 = vld [vmem:[#allocation20_spill] sm:$0xff] }
 0x23b   : > { %6495 = vmatprep.subr.bf16.mxu1 %v6494_v32  ;;  %v7066_v22 = vpop.permute.xlu1 %7065  ;;  %3809 = vmatmul.mubr.f32.gmra.mrb[60].mxu1 %v9630_v54  ;;  %v6498_v11 = vpack.c.bf16 %v1616_v28, %v1612_v33  ;;  %v6500_v17 = vpack.c.bf16 %v996_v35, %v992_v15  ;;  %v9761_v33 = vld [vmem:[%s10346_s2 + $0xf0] sm:$0xff]  ;;  %v10662_v28 = vunpack.i.l.bf16 %v10661_v27  ;;  %v10663_v15 = vunpack.i.h.bf16 %v10661_v27 }
 0x23c   : > { %v7068_v23 = vunpack.i.h.bf16 %v7066_v22  ;;  %v7067_v24 = vunpack.i.l.bf16 %v7066_v22  ;;  %3813 = vmatprep.mubr.f32.mxu1 %v9643_v5  ;;  %5112 = vperm.xlu1 %7084, %v9154_v3   ;;  %v10655_v3 = vunpack.i.l.bf16 %v9391_v59  ;;  %v1000_v14 = vsel %vm988_vm2, %v10657_v2, %v7072_v25  ;;  %v9700_v59 = vld [vmem:[%s10346_s2 + $0xc0] sm:$0xff]  ;;  %v10664_v35 = vld [vmem:[#allocation23_spill] sm:$0xff] }
 0x23d   : > { %6219 = vmatmul.mubr.msk.f32.gmra.mrb[56].mxu0 %vm1945_vm4, %v9052_v7  ;;  %4278 = vperm.xlu0 %7085, %v9671_v40   ;;  %v7081_v10 = vpop.permute.xlu0 %7080  ;;  %v9836_v2 = vld [vmem:[%s10346_s2 + $0x120] sm:$0xff] }
 0x23e   : > { %6497 = vmatpush3.bf16.msra.mxu1 %v6496_v1  ;;  %6221 = vmatprep.mubr.msk.f32.mxu0 %vm1945_vm4, %v9058_v61  ;;  %v1620_v44 = vsel %vm529_vm3, %v10655_v3, %v7067_v24  ;;  %v1624_v13 = vsel %vm529_vm3, %v10656_v62, %v7068_v23  ;;  %v10658_v61 = vunpack.i.h.bf16 %v9425_v30  ;;  %v9713_v30 = vld [vmem:[%s10346_s2 + $0xe0] sm:$0xff]  ;;  %v7083_v1 = vunpack.i.h.bf16 %v7081_v10  ;;  %v4436_v23 = vld [vmem:[%s7432_s26 + $0x18] sm:$0xff]  ;;  %v10666_v3 = vld [vmem:[#allocation6_spill] sm:$0xff] }
 0x23f   : > { %6499 = vmatprep.subr.bf16.mxu1 %v6498_v11  ;;  %v7076_v7 = vpop.permute.xlu1 %7075  ;;  %3814 = vmatmul.mubr.f32.gmra.mrb[62].mxu1 %v9665_v6  ;;  %v6502_v55 = vpack.c.bf16 %v1624_v13, %v1620_v44  ;;  %v7082_v42 = vunpack.i.l.bf16 %v7081_v10  ;;  %v9793_v11 = vld [vmem:[%s10346_s2 + $0x108] sm:$0xff]  ;;  %v4437_v24 = vld [vmem:[%s7432_s26 + $0x38] sm:$0xff] }
 0x240   : > { %v1004_v63 = vsel %vm988_vm2, %v10658_v61, %v7073_v53  ;;  %v7078_v45 = vunpack.i.h.bf16 %v7076_v7  ;;  %v7077_v47 = vunpack.i.l.bf16 %v7076_v7  ;;  %3818 = vmatprep.mubr.f32.mxu1 %v9678_v4  ;;  %4263 = vperm.xlu1 %7084, %v9177_v57   ;;  %v10660_v57 = vunpack.i.h.bf16 %v9443_v38  ;;  %v9723_v43 = vpop.f32.mrb[0].mxu1  ;;  %v9735_v38 = vld [vmem:[%s10346_s2 + $0xd8] sm:$0xff]  ;;  %v10665_v53 = vld [vmem:[#allocation9_spill] sm:$0xff]  ;;  %v9805_v44 = vld [vmem:[%s10346_s2 + $0x128] sm:$0xff] }
 0x241   : > { %6222 = vmatmul.mubr.msk.f32.gmra.mrb[58].mxu0 %vm1945_vm4, %v9080_v41  ;;  %v6504_v41 = vpack.c.bf16 %v1004_v63, %v1000_v14  ;;  %v9728_v48 = vpop.f32.mrb[1].mxu1  ;;  %4288 = vperm.xlu0 %7085, %v9706_v8   ;;  %v1803_v56 = vsel %vm344_vm0, %v10662_v28, %v7082_v42  ;;  %v1807_v29 = vsel %vm344_vm0, %v10663_v15, %v7083_v1  ;;  %v5068_v62 = vld [vmem:[%s10347_s3 + $0x48] sm:$0xff]  ;;  %v9817_v13 = vld [vmem:[%s10345_s1 + $0x18] sm:$0xff]  ;;  %v9843_v14 = vld [vmem:[%s10346_s2 + $0x140] sm:$0xff] }
 0x242   : > { %6501 = vmatpush3.bf16.msra.mxu1 %v6500_v17  ;;  %v1795_v21 = vsel %vm344_vm0, %v10659_v18, %v7077_v47  ;;  %v1799_v19 = vsel %vm344_vm0, %v10660_v57, %v7078_v45  ;;  %6224 = vmatprep.mubr.msk.f32.mxu0 %vm1945_vm4, %v9086_v36  ;;  %v9743_v36 = vld [vmem:[%s10346_s2 + $0xf8] sm:$0xff]  ;;  %v9798_v25 = vpack.c.bf16 %v1807_v29, %v1803_v56  ;;  %v9855_v63 = vld [vmem:[%s10345_s1 + $0x28] sm:$0xff]  ;;  %v9861_v45 = vld [vmem:[%s10345_s1 + $0x30] sm:$0xff] }
 0x243   : > { %6503 = vmatprep.subr.bf16.mxu1 %v6502_v55  ;;  %v9725_v32 = vpack.c.bf16 %v1799_v19, %v1795_v21  ;;  %3819 = vmatmul.mubr.f32.gmra.mrb[64].mxu1 %v9700_v59  ;;  %v9828_v7 = vpack.c.bf16 %v4437_v24, %v4436_v23  ;;  %v5070_v61 = vld [vmem:[%s10347_s3 + $0x58] sm:$0xff]  ;;  %v5072_v19 = vld [vmem:[%s10347_s3 + $0x68] sm:$0xff]  ;;  %v9896_v1 = vld [vmem:[%s10345_s1 + $0x40] sm:$0xff] }
 0x244   : > { %3823 = vmatprep.mubr.f32.mxu1 %v9713_v30  ;;  %4273 = vperm.xlu1 %7084, %v9195_v46   ;;  %v9747_v58 = vpop.f32.mrb[2].mxu1  ;;  %v5067_v46 = vld [vmem:[%s10347_s3 + $0x40] sm:$0xff]  ;;  %v9870_v47 = vld [vmem:[%s10346_s2 + $0x138] sm:$0xff]  ;;  %v9913_v28 = vld [vmem:[%s10346_s2 + $0x170] sm:$0xff] }
 0x245   : > { %6225 = vmatmul.mubr.msk.f32.gmra.mrb[60].mxu0 %vm1945_vm4, %v9108_v52  ;;  %6507 = vmatprep.subr.bf16.mxu0 %v9725_v32  ;;  %v9755_v52 = vpop.f32.mrb[3].mxu1  ;;  %10667 = vst [vmem:[#allocation13_spill] sm:$0xff] %v9870_v47  ;;  %v9879_v21 = vld [vmem:[%s10346_s2 + $0x158] sm:$0xff]  ;;  %10670 = vst [vmem:[#allocation16_spill] sm:$0xff] %v9913_v28 }
 0x246   : > { %6505 = vmatpush3.bf16.msra.mxu1 %v6504_v41  ;;  %6227 = vmatprep.mubr.msk.f32.mxu0 %vm1945_vm4, %v9114_v20  ;;  %v9769_v20 = vld [vmem:[%s10346_s2 + $0x110] sm:$0xff]  ;;  %10668 = vst [vmem:[#allocation14_spill] sm:$0xff] %v9879_v21  ;;  %v9890_v41 = vld [vmem:[%s10345_s1 + $0x38] sm:$0xff] }
 0x247   : > { %6522 = vmatprep.subr.bf16.mxu1 %v9725_v32  ;;  %3824 = vmatmul.mubr.f32.gmra.mrb[66].mxu1 %v9735_v38  ;;  %v5074_v29 = vld [vmem:[%s10347_s3 + $0x78] sm:$0xff] }
 0x248   : > { %3828 = vmatprep.mubr.f32.mxu1 %v9743_v36  ;;  %4283 = vperm.xlu1 %7084, %v9213_v49   ;;  %v9779_v49 = vpop.f32.mrb[4].mxu1 }
 0x249   : > { %6228 = vmatmul.mubr.msk.f32.gmra.mrb[62].mxu0 %vm1945_vm4, %v9136_v60  ;;  %5117 = vperm.xlu0 %7085, %v5067_v46   ;;  %v9785_v60 = vld [vmem:[%s10345_s1 + $0x10] sm:$0xff]  ;;  %v9787_v22 = vpop.f32.mrb[5].mxu1 }
 0x24a   : > { %6240 = vmatprep.mubr.msk.f32.mxu0 %vm2284_vm10, %v10664_v35  ;;  %v9926_v35 = vld [vmem:[%s10345_s1 + $0x48] sm:$0xff] }
 0x24b   : > { %3829 = vmatmul.mubr.f32.gmra.mrb[68].mxu1 %v9761_v33 }
 0x24c   : > { %3833 = vmatprep.mubr.f32.mxu1 %v9769_v20  ;;  %4293 = vperm.xlu1 %7084, %v10665_v53   ;;  %v9819_v17 = vpop.f32.mrb[6].mxu1  ;;  %v9938_v53 = vld [vmem:[%s10346_s2 + $0x168] sm:$0xff] }
 0x24d   : > { %6241 = vmatmul.mubr.msk.f32.vlgmr.msra.gmra.mrb[48].mxu0 %vm2284_vm10, %v10666_v3  ;;  %5127 = vperm.xlu0 %7085, %v9636_v9   ;;  %v9826_v9 = vld [vmem:[%s10345_s1 + $0x20] sm:$0xff]  ;;  %v9830_v55 = vpop.f32.mrb[7].mxu1  ;;  %10671 = vst [vmem:[#allocation17_spill] sm:$0xff] %v9938_v53 }
 0x24e   : > { %6509 = vmatpush3.bf16.msra.mxu0 %v9725_v32  ;;  %6243 = vmatprep.mubr.msk.f32.mxu0 %vm2284_vm10, %v9785_v60 }
 0x24f   : > { %6511 = vmatprep.subr.bf16.mxu0 %v9798_v25  ;;  %3834 = vmatmul.mubr.f32.gmra.mrb[70].mxu1 %v9793_v11 }
 0x250   : > { %3838 = vmatprep.mubr.f32.mxu1 %v9805_v44  ;;  %5122 = vperm.xlu1 %7084, %v5068_v62  }
 0x251   : > { %6244 = vmatmul.mubr.msk.f32.gmra.mrb[50].mxu0 %vm2284_vm10, %v9817_v13  ;;  %5137 = vperm.xlu0 %7085, %v9671_v40   ;;  %v9864_v40 = vpop.f32.mrb[8].mxu1 }
 0x252   : > { %6513 = vmatpush3.bf16.msra.mxu0 %v9798_v25  ;;  %6246 = vmatprep.mubr.msk.f32.mxu0 %vm2284_vm10, %v9826_v9  ;;  %v9872_v18 = vpop.f32.mrb[9].mxu1 }
 0x253   : > { %3839 = vmatmul.mubr.f32.gmra.mrb[72].mxu1 %v9836_v2  ;;  %6515 = vmatprep.subr.bf16.mxu0 %v9828_v7  ;;  %v5614_v57 = vpop.f32.mrb[0].mxu0 }
 0x254   : > { %3843 = vmatprep.mubr.f32.mxu1 %v9843_v14  ;;  %5132 = vperm.xlu1 %7084, %v5070_v61   ;;  %v5615_v10 = vpop.f32.mrb[1].mxu0 }
 0x255   : > { %6247 = vmatmul.mubr.msk.f32.gmra.mrb[52].mxu0 %vm2284_vm10, %v9855_v63  ;;  %5147 = vperm.xlu0 %7085, %v9706_v8   ;;  %v5616_v42 = vadd.f32 %v5615_v10, %v5614_v57  ;;  %v9898_v46 = vpop.f32.mrb[10].mxu1  ;;  %v9904_v8 = vld [vmem:[%s10346_s2 + $0x150] sm:$0xff] }
 0x256   : > { %6249 = vmatprep.mubr.msk.f32.mxu0 %vm2284_vm10, %v9861_v45  ;;  %10669 = vst [vmem:[#allocation15_spill] sm:$0xff] %v9904_v8  ;;  %v9906_v27 = vpop.f32.mrb[11].mxu1 }
 0x257   : > { %3844 = vmatmul.mubr.f32.gmra.mrb[74].mxu1 %v9870_v47  ;;  %v5617_v56 = vpop.f32.mrb[2].mxu0  ;;  %v9916_v15 = vadd.f32 %v5616_v42, %v9728_v48  ;;  %v9932_v48 = vld [vmem:[%s10345_s1 + $0x50] sm:$0xff]  ;;  %v9960_v42 = vld [vmem:[%s10345_s1 + $0x60] sm:$0xff] }
 0x258   : > { %3848 = vmatprep.mubr.f32.mxu1 %v9879_v21  ;;  %5142 = vperm.xlu1 %7084, %v5072_v19   ;;  %v5618_v23 = vpop.f32.mrb[3].mxu0  ;;  %v9954_v19 = vld [vmem:[%s10345_s1 + $0x58] sm:$0xff]  ;;  %10672 = vst [vmem:[#allocation18_spill] sm:$0xff] %v9960_v42 }
 0x259   : > { %6250 = vmatmul.mubr.msk.f32.gmra.mrb[54].mxu0 %vm2284_vm10, %v9890_v41  ;;  %v5619_v24 = vadd.f32 %v5618_v23, %v5617_v56 }
 0x25a   : > { %6252 = vmatprep.mubr.msk.f32.mxu0 %vm2284_vm10, %v9896_v1  ;;  %v9940_v3 = vpop.f32.mrb[12].mxu1 }
 0x25b   : > { %3849 = vmatmul.mubr.f32.gmra.mrb[76].mxu1 %v9904_v8  ;;  %v5620_v62 = vpop.f32.mrb[4].mxu0  ;;  %v9945_v61 = vadd.f32 %v9723_v43, %v5619_v24  ;;  %v9947_v57 = vpop.f32.mrb[13].mxu1  ;;  %v9985_v8 = vld [vmem:[%s10345_s1 + $0x70] sm:$0xff] }
 0x25c   : > { %3853 = vmatprep.mubr.f32.mxu1 %v9913_v28  ;;  %5152 = vperm.xlu1 %7084, %v5074_v29   ;;  %v5621_v10 = vpop.f32.mrb[5].mxu0  ;;  %v9962_v43 = vpop.permute.xlu1 %2500  ;;  %v10673_v29 = vld [vmem:[#allocation24_spill] sm:$0xff]  ;;  %10676 = vst [vmem:[#allocation22_spill] sm:$0xff] %v9985_v8 }
 0x25d   : > { %6253 = vmatmul.mubr.msk.f32.gmra.mrb[56].mxu0 %vm2284_vm10, %v9926_v35  ;;  %v5622_v56 = vadd.f32 %v5621_v10, %v5620_v62  ;;  %v9979_v62 = vld [vmem:[%s10345_s1 + $0x68] sm:$0xff] }
 0x25e   : > { %6255 = vmatprep.mubr.msk.f32.mxu0 %vm2284_vm10, %v9932_v48  ;;  %v9965_v23 = vpop.f32.mrb[14].mxu1  ;;  %10674 = vst [vmem:[#allocation21_spill] sm:$0xff] %v9979_v62 }
 0x25f   : > { %3854 = vmatmul.mubr.f32.gmra.mrb[78].mxu1 %v9938_v53  ;;  %v5623_v24 = vpop.f32.mrb[6].mxu0  ;;  %v9970_v28 = vadd.f32 %v5622_v56, %v9755_v52  ;;  %v9972_v53 = vpop.f32.mrb[15].mxu1  ;;  %v10677_v56 = vld [vmem:[#allocation12_spill] sm:$0xff] }
 0x260   : > { %4637 = vmatprep.mubr.f32.mxu1 %v10673_v29  ;;  %v5624_v10 = vpop.f32.mrb[7].mxu0  ;;  %v10675_v29 = vld [vmem:[#allocation19_spill] sm:$0xff]  ;;  %v9992_v21 = vpop.permute.xlu1 %2510 }
 0x261   : > { %6256 = vmatmul.mubr.msk.f32.gmra.mrb[58].mxu0 %vm2284_vm10, %v9954_v19  ;;  %v5625_v52 = vadd.f32 %v5624_v10, %v5623_v24  ;;  %v4443_v10 = vld [vmem:[%s10346_s2 + $0x10] sm:$0xff] }
 0x262   : > { %6258 = vmatprep.mubr.msk.f32.mxu0 %vm2284_vm10, %v9960_v42 }
 0x263   : > { %4638 = vmatmul.mubr.f32.vlgmr.msra.gmra.mrb[80].mxu1 %v10675_v29  ;;  %v5626_v29 = vpop.f32.mrb[8].mxu0  ;;  %v9995_v47 = vadd.f32 %v9747_v58, %v5625_v52  ;;  %v4438_v58 = vld [vmem:[%s7432_s26 + $0x58] sm:$0xff] }
 0x264   : > { %6524 = vmatpush3.bf16.msra.mxu1 %v9725_v32  ;;  %4642 = vmatprep.mubr.f32.mxu1 %v10677_v56  ;;  %v10002_v32 = vld [vmem:[%s10345_s1 + $0x78] sm:$0xff]  ;;  %v5627_v24 = vpop.f32.mrb[9].mxu0 }
 0x265   : > { %6259 = vmatmul.mubr.msk.f32.gmra.mrb[60].mxu0 %vm2284_vm10, %v9979_v62  ;;  %6523 = vmatprep.subr.bf16.mxu1 %v9798_v25  ;;  %v5628_v56 = vadd.f32 %v5627_v24, %v5626_v29  ;;  %v4439_v52 = vld [vmem:[%s7432_s26 + $0x78] sm:$0xff]  ;;  %v10023_v29 = vpop.permute.xlu1 %2515 }
 0x266   : > { %6261 = vmatprep.mubr.msk.f32.mxu0 %vm2284_vm10, %v9985_v8  ;;  %v2506_v8 = vpop.permute.xlu0 %2505 }
 0x267   : > { %4643 = vmatmul.mubr.f32.gmra.mrb[82].mxu1 %v9489_v0  ;;  %v6531_v62 = vadd.f32 %v5628_v56, %v9787_v22  ;;  %v4446_v0 = vld [vmem:[%s10346_s2 + $0x28] sm:$0xff]  ;;  %v5629_v42 = vpop.f32.mrb[10].mxu0 }
 0x268   : > { %6525 = vmatpush3.bf16.msra.mxu1 %v9798_v25  ;;  %4647 = vmatprep.mubr.f32.mxu1 %v9495_v37  ;;  %v4449_v37 = vld [vmem:[%s10346_s2 + $0x40] sm:$0xff]  ;;  %v6518_v25 = vpack.c.bf16 %v4439_v52, %v4438_v58  ;;  %v5630_v24 = vpop.f32.mrb[11].mxu0  ;;  %v4440_v52 = vld [vmem:[%s7432_s26 + $0x98] sm:$0xf] }
 0x269   : > { %6262 = vmatmul.mubr.msk.f32.gmra.mrb[62].mxu0 %vm2284_vm10, %v10002_v32  ;;  %v5631_v22 = vadd.f32 %v5630_v24, %v5629_v42 }
 0x26a   : > { %6272 = vmatprep.mubr.msk.f32.mxu0 %vm1945_vm4, %v4443_v10  ;;  %v2521_v58 = vpop.permute.xlu0 %2520 }
 0x26b   : > { %4648 = vmatmul.mubr.f32.gmra.mrb[84].mxu1 %v9514_v50  ;;  %v4452_v50 = vld [vmem:[%s10346_s2 + $0x58] sm:$0xff]  ;;  %v5632_v10 = vpop.f32.mrb[12].mxu0  ;;  %v6530_v56 = vadd.f32 %v9779_v49, %v5631_v22 }
 0x26c   : > { %4652 = vmatprep.mubr.f32.mxu1 %v9522_v12  ;;  %v4455_v12 = vld [vmem:[%s10346_s2 + $0x70] sm:$0xff]  ;;  %v5633_v42 = vpop.f32.mrb[13].mxu0 }
 0x26d   : > { %6273 = vmatmul.mubr.msk.f32.vlgmr.msra.gmra.mrb[64].mxu0 %vm1945_vm4, %v4446_v0  ;;  %v5634_v0 = vadd.f32 %v5633_v42, %v5632_v10 }
 0x26e   : > { %6275 = vmatprep.mubr.msk.f32.mxu0 %vm1945_vm4, %v4449_v37  ;;  %6517 = vmatpush3.bf16.msra.mxu0 %v9828_v7  ;;  %v2526_v37 = vpop.permute.xlu1 %2525  ;;  %v2582_v7 = vadd.f32 %v6531_v62, %v2521_v58  ;;  %v2578_v62 = vadd.f32 %v9916_v15, %v9962_v43  ;;  %v2579_v43 = vadd.f32 %v9945_v61, %v2506_v8 }
 0x26f   : > { %4653 = vmatmul.mubr.f32.gmra.mrb[86].mxu1 %v9542_v16  ;;  %6519 = vmatprep.subr.bf16.mxu0 %v6518_v25  ;;  %v4458_v16 = vld [vmem:[%s10346_s2 + $0x88] sm:$0xff]  ;;  %v5635_v49 = vpop.f32.mrb[14].mxu0  ;;  %v6533_v24 = vadd.f32 %v5634_v0, %v9830_v55 }
 0x270   : > { %4657 = vmatprep.mubr.f32.mxu1 %v9550_v31  ;;  %v4461_v31 = vld [vmem:[%s10346_s2 + $0xa0] sm:$0xff]  ;;  %v5636_v22 = vpop.f32.mrb[15].mxu0  ;;  %v5430_v15 = vmul.f32 -1.442695, %v2578_v62  ;;  %v5431_v8 = vmul.f32 -1.442695, %v2579_v43 }
 0x271   : > { %6276 = vmatmul.mubr.msk.f32.gmra.mrb[66].mxu0 %vm1945_vm4, %v4452_v50  ;;  %v2583_v50 = vadd.f32 %v6530_v56, %v2526_v37  ;;  %v5637_v10 = vadd.f32 %v5636_v22, %v5635_v49 }
 0x272   : > { %6278 = vmatprep.mubr.msk.f32.mxu0 %vm1945_vm4, %v4455_v12  ;;  %6521 = vmatpush3.bf16.msra.mxu0 %v6518_v25  ;;  %v5434_v25 = vmul.f32 -1.442695, %v2582_v7  ;;  %v2531_v12 = vpop.permute.xlu0 %2530  ;;  %v2536_v61 = vpop.permute.xlu1 %2535 }
 0x273   : > { %4658 = vmatmul.mubr.f32.gmra.mrb[88].mxu1 %v9571_v26  ;;  %6304 = vmatprep.subr.msk.mxu0 %vm2333_vm9, %v4440_v52  ;;  %v4464_v26 = vld [vmem:[%s10346_s2 + $0xb8] sm:$0xff]  ;;  %v5638_v55 = vpop.f32.mrb[16].mxu0  ;;  %v6532_v58 = vadd.f32 %v9819_v17, %v5637_v10  ;;  %v5435_v42 = vmul.f32 -1.442695, %v2583_v50  ;;  %v2584_v37 = vadd.f32 %v6533_v24, %v2531_v12  ;;  %v2581_v10 = vadd.f32 %v9995_v47, %v10023_v29 }
 0x274   : > { %4662 = vmatprep.mubr.f32.mxu1 %v9581_v39  ;;  %v4467_v39 = vld [vmem:[%s10346_s2 + $0xd0] sm:$0xff]  ;;  %v5639_v56 = vpop.f32.mrb[17].mxu0  ;;  %7086 = vpow2.f32 %v5434_v25 }
 0x275   : > { %6279 = vmatmul.mubr.msk.f32.gmra.mrb[68].mxu0 %vm1945_vm4, %v4458_v16  ;;  %v5640_v0 = vadd.f32 %v5639_v56, %v5638_v55  ;;  %7088 = vpow2.f32 %v5430_v15  ;;  %v2580_v16 = vadd.f32 %v9970_v28, %v9992_v21  ;;  %v5436_v49 = vmul.f32 -1.442695, %v2584_v37 }
 0x276   : > { %6281 = vmatprep.mubr.msk.f32.mxu0 %vm1945_vm4, %v4461_v31  ;;  %6305 = vmatpush3.msk.msra.mxu0 %vm2333_vm9, %v4440_v52  ;;  %7090 = vpow2.f32 %v5435_v42  ;;  %v4421_v31 = vld [vmem:[%s10345_s1 + $0x8] sm:$0xff]  ;;  %v2585_v21 = vadd.f32 %v6532_v58, %v2536_v61  ;;  %v2546_v55 = vpop.permute.xlu1 %2545  ;;  %v5433_v12 = vmul.f32 -1.442695, %v2581_v10 }
 0x277   : > { %4663 = vmatmul.mubr.f32.gmra.mrb[90].mxu1 %v9600_v51  ;;  %v4470_v51 = vld [vmem:[%s10346_s2 + $0xe8] sm:$0xff]  ;;  %v5641_v17 = vpop.f32.mrb[18].mxu0  ;;  %v6535_v52 = vadd.f32 %v5640_v0, %v9872_v18  ;;  %v2541_v18 = vpop.permute.xlu0 %2540  ;;  %7092 = vpow2.f32 %v5431_v8  ;;  %v5432_v25 = vmul.f32 -1.442695, %v2580_v16 }
 0x278   : > { %4667 = vmatprep.mubr.f32.mxu1 %v9608_v34  ;;  %v4420_v34 = vld [vmem:[%s10345_s1] sm:$0xff]  ;;  %v5642_v7 = vpop.f32.mrb[19].mxu0  ;;  %7094 = vpow2.f32 %v5436_v49  ;;  %v5437_v47 = vmul.f32 -1.442695, %v2585_v21 }
 0x279   : > { %6282 = vmatmul.mubr.msk.f32.gmra.mrb[70].mxu0 %vm1945_vm4, %v4464_v26  ;;  %v5643_v24 = vadd.f32 %v5642_v7, %v5641_v17  ;;  %v2586_v43 = vadd.f32 %v6535_v52, %v2541_v18  ;;  %7096 = vpow2.f32 %v5432_v25 }
 0x27a   : > { %6284 = vmatprep.mubr.msk.f32.mxu0 %vm1945_vm4, %v4467_v39  ;;  %7098 = vpow2.f32 %v5437_v47 }
 0x27b   : > { %4668 = vmatmul.mubr.f32.gmra.mrb[92].mxu1 %v9630_v54  ;;  %v6534_v22 = vadd.f32 %v9864_v40, %v5643_v24  ;;  %v5438_v52 = vmul.f32 -1.442695, %v2586_v43  ;;  %7100 = vpow2.f32 %v5433_v12 }
 0x27c   : > { %4672 = vmatprep.mubr.f32.mxu1 %v9643_v5  ;;  %v5644_v62 = vpop.f32.mrb[20].mxu0 }
 0x27d   : > { %6285 = vmatmul.mubr.msk.f32.gmra.mrb[72].mxu0 %vm1945_vm4, %v4470_v51  ;;  %v5735_v54 = vpop.f32.mrb[16].mxu1  ;;  %v5645_v28 = vpop.f32.mrb[21].mxu0  ;;  %v2587_v51 = vadd.f32 %v6534_v22, %v2546_v55 }
 0x27e   : > { %6306 = vmatprep.mubr.msk.f32.mxu0 %vm2284_vm10, %v4420_v34  ;;  %v5736_v5 = vpop.f32.mrb[17].mxu1  ;;  %v5646_v26 = vadd.f32 %v5645_v28, %v5644_v62  ;;  %v7087_v15 = vpop.eup %7086 }
 0x27f   : > { %4673 = vmatmul.mubr.f32.gmra.mrb[94].mxu1 %v9665_v6  ;;  %v10086_v50 = vadd.f32 %v5736_v5, %v5735_v54  ;;  %v7089_v0 = vpop.eup %7088 }
 0x280   : > { %4677 = vmatprep.mubr.f32.mxu1 %v9678_v4  ;;  %v6537_v58 = vadd.f32 %v5646_v26, %v9906_v27  ;;  %v2551_v4 = vpop.permute.xlu0 %2550  ;;  %v2630_v27 = vadd.f32 1.0, %v7087_v15  ;;  %v2606_v34 = vadd.f32 1.0, %v7089_v0 }
 0x281   : > { %6307 = vmatmul.mubr.msk.f32.vlgmr.msra.gmra.mrb[64].mxu0 %vm2284_vm10, %v4421_v31  ;;  %v5738_v40 = vpop.f32.mrb[18].mxu1  ;;  %v5647_v6 = vpop.f32.mrb[22].mxu0 }
 0x282   : > { %6309 = vmatprep.mubr.msk.f32.mxu0 %vm2284_vm10, %v9785_v60  ;;  %v5739_v39 = vpop.f32.mrb[19].mxu1  ;;  %v5648_v29 = vpop.f32.mrb[23].mxu0  ;;  %7102 = vrcp.f32 %v2630_v27  ;;  %v2588_v54 = vadd.f32 %v6537_v58, %v2551_v4  ;;  %v2670_v4 = vld [vmem:[#allocation3] sm:$0xff] }
 0x283   : > { %4678 = vmatmul.mubr.f32.gmra.mrb[96].mxu1 %v9700_v59  ;;  %v10096_v56 = vadd.f32 %v5739_v39, %v5738_v40  ;;  %v5649_v42 = vadd.f32 %v5648_v29, %v5647_v6  ;;  %v7091_v60 = vpop.eup %7090  ;;  %7104 = vpow2.f32 %v5438_v52  ;;  %v10679_v52 = vld [vmem:[#allocation13_spill] sm:$0xff] }
 0x284   : > { %4682 = vmatprep.mubr.f32.mxu1 %v9713_v30  ;;  %v2556_v30 = vpop.permute.xlu1 %2555  ;;  %v7093_v61 = vpop.eup %7092  ;;  %v2631_v7 = vadd.f32 1.0, %v7091_v60  ;;  %7106 = vrcp.f32 %v2606_v34  ;;  %v5440_v25 = vmul.f32 -1.442695, %v2588_v54  ;;  %v2671_v34 = vld [vmem:[#allocation3 + $0x20] sm:$0xff]  ;;  %v10683_v54 = vld [vmem:[#allocation15_spill] sm:$0xff] }
 0x285   : > { %6310 = vmatmul.mubr.msk.f32.gmra.mrb[66].mxu0 %vm2284_vm10, %v9817_v13  ;;  %v5650_v59 = vpop.f32.mrb[24].mxu0  ;;  %v6536_v37 = vadd.f32 %v9898_v46, %v5649_v42  ;;  %v7095_v16 = vpop.eup %7094 }
 0x286   : > { %6312 = vmatprep.mubr.msk.f32.mxu0 %vm2284_vm10, %v9826_v9  ;;  %v5651_v17 = vpop.f32.mrb[25].mxu0  ;;  %v2561_v9 = vpop.permute.xlu0 %2560  ;;  %7108 = vrcp.f32 %v2631_v7  ;;  %v10681_v7 = vld [vmem:[#allocation21_spill] sm:$0xff] }
 0x287   : > { %4683 = vmatmul.mubr.f32.gmra.mrb[98].mxu1 %v9735_v38  ;;  %v5652_v13 = vadd.f32 %v5651_v17, %v5650_v59  ;;  %v5741_v8 = vpop.f32.mrb[20].mxu1  ;;  %v7097_v21 = vpop.eup %7096 }
 0x288   : > { %4687 = vmatprep.mubr.f32.mxu1 %v9743_v36  ;;  %v5742_v46 = vpop.f32.mrb[21].mxu1  ;;  %v5439_v36 = vmul.f32 -1.442695, %v2587_v51  ;;  %v7099_v6 = vpop.eup %7098 }
 0x289   : > { %6313 = vmatmul.mubr.msk.f32.gmra.mrb[68].mxu0 %vm2284_vm10, %v9855_v63  ;;  %v5653_v38 = vpop.f32.mrb[26].mxu0  ;;  %v6539_v49 = vadd.f32 %v5652_v13, %v9947_v57  ;;  %v10111_v24 = vadd.f32 %v5742_v46, %v5741_v8  ;;  %v2607_v63 = vadd.f32 1.0, %v7093_v61  ;;  %v2566_v57 = vpop.permute.xlu1 %2565  ;;  %v10680_v8 = vld [vmem:[#allocation14_spill] sm:$0xff] }
 0x28a   : > { %6315 = vmatprep.mubr.msk.f32.mxu0 %vm2284_vm10, %v9861_v45  ;;  %v5654_v18 = vpop.f32.mrb[27].mxu0  ;;  %v2632_v45 = vadd.f32 1.0, %v7095_v16  ;;  %v7101_v39 = vpop.eup %7100  ;;  %v10682_v16 = vld [vmem:[#allocation22_spill] sm:$0xff] }
 0x28b   : > { %4688 = vmatmul.mubr.f32.gmra.mrb[100].mxu1 %v9761_v33  ;;  %v5655_v31 = vadd.f32 %v5654_v18, %v5653_v38  ;;  %v2590_v62 = vadd.f32 %v6539_v49, %v2561_v9  ;;  %v5744_v22 = vpop.f32.mrb[22].mxu1 }
 0x28c   : > { %4692 = vmatprep.mubr.f32.mxu1 %v9769_v20  ;;  %v5745_v5 = vpop.f32.mrb[23].mxu1  ;;  %v2589_v20 = vadd.f32 %v6536_v37, %v2556_v30  ;;  %v7103_v43 = vpop.eup %7102  ;;  %v10678_v37 = vld [vmem:[#allocation18_spill] sm:$0xff] }
 0x28d   : > { %6316 = vmatmul.mubr.msk.f32.gmra.mrb[70].mxu0 %vm2284_vm10, %v9890_v41  ;;  %v5656_v33 = vpop.f32.mrb[28].mxu0  ;;  %v6538_v28 = vadd.f32 %v9940_v3, %v5655_v31  ;;  %7110 = vtanh.f32 %v2590_v62  ;;  %v10120_v10 = vadd.f32 %v5745_v5, %v5744_v22  ;;  %v2571_v3 = vpop.permute.xlu0 %2570  ;;  %v2674_v17 = vmul.f32 %v7103_v43, %v2670_v4  ;;  %v2672_v62 = vld [vmem:[#allocation3 + $0x40] sm:$0xff] }
 0x28e   : > { %6318 = vmatprep.mubr.msk.f32.mxu0 %vm2284_vm10, %v9896_v1  ;;  %7112 = vpow2.f32 %v5439_v36  ;;  %v5657_v26 = vpop.f32.mrb[29].mxu0  ;;  %v2608_v1 = vadd.f32 1.0, %v7097_v21  ;;  %v7105_v60 = vpop.eup %7104  ;;  %v4473_v21 = vld [vmem:[%s10346_s2 + $0x100] sm:$0xff] }
 0x28f   : > { %4693 = vmatmul.mubr.f32.gmra.mrb[102].mxu1 %v9793_v11  ;;  %7114 = vrcp.f32 %v2607_v63  ;;  %v5658_v41 = vadd.f32 %v5657_v26, %v5656_v33  ;;  %v2591_v55 = vadd.f32 %v6538_v28, %v2566_v57  ;;  %v5747_v40 = vpop.f32.mrb[24].mxu1  ;;  %v2576_v27 = vpop.permute.xlu1 %2575  ;;  %v2654_v13 = vadd.f32 1.0, %v7105_v60 }
 0x290   : > { %4697 = vmatprep.mubr.f32.mxu1 %v9805_v44  ;;  %7116 = vrcp.f32 %v2632_v45  ;;  %v5748_v58 = vpop.f32.mrb[25].mxu1  ;;  %v5441_v44 = vmul.f32 -1.442695, %v2589_v20  ;;  %v7107_v59 = vpop.eup %7106  ;;  %v10684_v45 = vld [vmem:[#allocation16_spill] sm:$0xff] }
 0x291   : > { %6319 = vmatmul.mubr.msk.f32.gmra.mrb[72].mxu0 %vm2284_vm10, %v9926_v35  ;;  %v5659_v15 = vpop.f32.mrb[30].mxu0  ;;  %7118 = vtanh.f32 %v2591_v55  ;;  %v6541_v11 = vadd.f32 %v5658_v41, %v9972_v53  ;;  %v10129_v47 = vadd.f32 %v5748_v58, %v5747_v40  ;;  %v2633_v35 = vadd.f32 1.0, %v7099_v6  ;;  %v10685_v41 = vld [vmem:[#allocation17_spill] sm:$0xff]  ;;  %v4479_v58 = vld [vmem:[%s10346_s2 + $0x130] sm:$0xff] }
 0x292   : > { %6321 = vmatprep.mubr.msk.f32.mxu0 %vm2284_vm10, %v9932_v48  ;;  %7120 = vpow2.f32 %v5440_v25  ;;  %v5660_v29 = vpop.f32.mrb[31].mxu0  ;;  %v2609_v53 = vadd.f32 1.0, %v7101_v39 }
 0x293   : > { %4698 = vmatmul.mubr.f32.gmra.mrb[104].mxu1 %v9836_v2  ;;  %v5661_v12 = vadd.f32 %v5660_v29, %v5659_v15  ;;  %v2592_v42 = vadd.f32 %v6541_v11, %v2571_v3  ;;  %v5750_v0 = vpop.f32.mrb[26].mxu1  ;;  %7122 = vrcp.f32 %v2608_v1  ;;  %v4476_v1 = vld [vmem:[%s10346_s2 + $0x118] sm:$0xff]  ;;  %v2673_v11 = vld [vmem:[#allocation3 + $0x60] sm:$0xff] }
 0x294   : > { %4702 = vmatprep.mubr.f32.mxu1 %v9843_v14  ;;  %v5751_v48 = vpop.f32.mrb[27].mxu1  ;;  %v7109_v14 = vpop.eup %7108 }
 0x295   : > { %6322 = vmatmul.mubr.msk.f32.gmra.mrb[74].mxu0 %vm2284_vm10, %v9954_v19  ;;  %v6540_v2 = vadd.f32 %v9965_v23, %v5661_v12  ;;  %7124 = vtanh.f32 %v2592_v42  ;;  %v10138_v51 = vadd.f32 %v5751_v48, %v5750_v0  ;;  %v2675_v36 = vmul.f32 %v7109_v14, %v2671_v34  ;;  %v4482_v42 = vld [vmem:[%s10346_s2 + $0x148] sm:$0xff] }
 0x296   : > { %6324 = vmatprep.mubr.msk.f32.mxu0 %vm2284_vm10, %v10678_v37  ;;  %7126 = vpow2.f32 %v5441_v44 }
 0x297   : > { %4703 = vmatmul.mubr.f32.gmra.mrb[106].mxu1 %v10679_v52  ;;  %v7111_v30 = vpop.eup %7110  ;;  %7128 = vrcp.f32 %v2633_v35  ;;  %v2593_v19 = vadd.f32 %v6540_v2, %v2576_v27  ;;  %v5753_v9 = vpop.f32.mrb[28].mxu1  ;;  %v4488_v52 = vld [vmem:[%s10346_s2 + $0x178] sm:$0xff] }
 0x298   : > { %4707 = vmatprep.mubr.f32.mxu1 %v10680_v8  ;;  %v7113_v61 = vpop.eup %7112  ;;  %7130 = vrcp.f32 %v2609_v53  ;;  %v2678_v23 = vmul.f32 %v7111_v30, %v7107_v59  ;;  %v5754_v38 = vpop.f32.mrb[29].mxu1  ;;  %v4485_v53 = vld [vmem:[%s10346_s2 + $0x160] sm:$0xff] }
 0x299   : > { %6325 = vmatmul.mubr.msk.f32.gmra.mrb[76].mxu0 %vm2284_vm10, %v10681_v7  ;;  %v7115_v46 = vpop.eup %7114  ;;  %7132 = vtanh.f32 %v2593_v19  ;;  %v10147_v63 = vadd.f32 %v5754_v38, %v5753_v9  ;;  %v2655_v22 = vadd.f32 1.0, %v7113_v61  ;;  %v3360_v30 = vpop.permute.xlu0 %3359 }
 0x29a   : > { %6327 = vmatprep.mubr.msk.f32.mxu0 %vm2284_vm10, %v10682_v16  ;;  %v7117_v49 = vpop.eup %7116  ;;  %v2682_v18 = vadd.f32 %v2678_v23, %v2674_v17  ;;  %7134 = vrcp.f32 %v2654_v13  ;;  %v3365_v61 = vpop.permute.xlu1 %3364 }
 0x29b   : > { %4708 = vmatmul.mubr.f32.gmra.mrb[108].mxu1 %v10683_v54  ;;  %v7119_v31 = vpop.eup %7118  ;;  %v5756_v33 = vpop.f32.mrb[30].mxu1  ;;  %v2676_v25 = vmul.f32 %v7117_v49, %v2672_v62 }
 0x29c   : > { %4712 = vmatprep.mubr.f32.mxu1 %v10684_v45  ;;  %v7121_v57 = vpop.eup %7120  ;;  %v2679_v5 = vmul.f32 %v7119_v31, %v7115_v46  ;;  %2686 = vst [vmem:[#allocation3] sm:$0xff] %v2682_v18  ;;  %7136 = vtanh.f32 %v2682_v18  ;;  %v5757_v28 = vpop.f32.mrb[31].mxu1 }
 0x29d   : > { %6328 = vmatmul.mubr.msk.f32.gmra.mrb[78].mxu0 %vm2284_vm10, %v10002_v32  ;;  %v7123_v20 = vpop.eup %7122  ;;  %v10156_v55 = vadd.f32 %v5757_v28, %v5756_v33  ;;  %7138 = vrcp.f32 %v2655_v22  ;;  %v2656_v6 = vadd.f32 1.0, %v7121_v57  ;;  %v3370_v49 = vpop.permute.xlu0 %3369 }
 0x29e   : > { %v2683_v26 = vadd.f32 %v2679_v5, %v2675_v36  ;;  %v3375_v54 = vpop.permute.xlu1 %3374 }
 0x29f   : > { %4713 = vmatmul.mubr.f32.gmra.mrb[110].mxu1 %v10685_v41  ;;  %v7125_v40 = vpop.eup %7124  ;;  %v5759_v39 = vpop.f32.mrb[32].mxu1 }
 0x2a0   : > { %6287 = vmatprep.mubr.msk.f32.mxu1 %vm1945_vm4, %v4473_v21  ;;  %v7127_v3 = vpop.eup %7126  ;;  %2687 = vst [vmem:[#allocation3 + $0x20] sm:$0xff] %v2683_v26  ;;  %7140 = vtanh.f32 %v2683_v26  ;;  %v2680_v32 = vmul.f32 %v7125_v40, %v7123_v20  ;;  %v5760_v44 = vpop.f32.mrb[33].mxu1 }
 0x2a1   : > { %v7129_v15 = vpop.eup %7128  ;;  %v10166_v4 = vadd.f32 %v5760_v44, %v5759_v39  ;;  %v2657_v12 = vadd.f32 1.0, %v7127_v3  ;;  %7142 = vrcp.f32 %v2656_v6  ;;  %v3380_v21 = vpop.permute.xlu0 %3379 }
 0x2a2   : > { %v7131_v29 = vpop.eup %7130  ;;  %v2684_v43 = vadd.f32 %v2680_v32, %v2676_v25  ;;  %v2677_v0 = vmul.f32 %v7129_v15, %v2673_v11  ;;  %v3385_v25 = vpop.permute.xlu1 %3384 }
 0x2a3   : > { %6288 = vmatmul.mubr.msk.f32.vlgmr.msra.gmra.mrb[112].mxu1 %vm1945_vm4, %v4476_v1  ;;  %v7133_v35 = vpop.eup %7132  ;;  %v5762_v27 = vpop.f32.mrb[34].mxu1 }
 0x2a4   : > { %6290 = vmatprep.mubr.msk.f32.mxu1 %vm1945_vm4, %v4479_v58  ;;  %v2681_v60 = vmul.f32 %v7133_v35, %v7131_v29  ;;  %2688 = vst [vmem:[#allocation3 + $0x40] sm:$0xff] %v2684_v43  ;;  %7144 = vtanh.f32 %v2684_v43  ;;  %v7135_v48 = vpop.eup %7134  ;;  %v5763_v59 = vpop.f32.mrb[35].mxu1 }
 0x2a5   : > { %v10176_v14 = vadd.f32 %v5763_v59, %v5762_v27  ;;  %7146 = vrcp.f32 %v2657_v12 }
 0x2a6   : > { %v7137_v2 = vpop.eup %7136  ;;  %v2685_v37 = vadd.f32 %v2681_v60, %v2677_v0  ;;  %v3395_v12 = vpop.permute.xlu1 %3394 }
 0x2a7   : > { %6291 = vmatmul.mubr.msk.f32.gmra.mrb[114].mxu1 %vm1945_vm4, %v4482_v42  ;;  %v2694_v17 = vmul.f32 %v7137_v2, %v7135_v48  ;;  %v5765_v34 = vpop.f32.mrb[36].mxu1  ;;  %v7139_v13 = vpop.eup %7138 }
 0x2a8   : > { %6293 = vmatprep.mubr.msk.f32.mxu1 %vm1945_vm4, %v4485_v53  ;;  %2689 = vst [vmem:[#allocation3 + $0x60] sm:$0xff] %v2685_v37  ;;  %7148 = vtanh.f32 %v2685_v37  ;;  %v5766_v19 = vpop.f32.mrb[37].mxu1 }
 0x2a9   : > { %2698 = vst [vmem:[#allocation2 + $0x8] sm:$0xff] %v2694_v17  ;;  %v10183_v23 = vadd.f32 %v5766_v19, %v5765_v34 }
 0x2aa   : > { %v7141_v8 = vpop.eup %7140 }
 0x2ab   : > { %6294 = vmatmul.mubr.msk.f32.gmra.mrb[116].mxu1 %vm1945_vm4, %v4488_v52  ;;  %v2695_v7 = vmul.f32 %v7141_v8, %v7139_v13  ;;  %v5768_v9 = vpop.f32.mrb[38].mxu1  ;;  %v7143_v46 = vpop.eup %7142 }
 0x2ac   : > { %v5769_v16 = vpop.f32.mrb[39].mxu1  ;;  %v3405_v8 = vpop.permute.xlu1 %3404 }
 0x2ad   : > { %2699 = vst [vmem:[#allocation2 + $0x38] sm:$0xff] %v2695_v7  ;;  %v10185_v36 = vadd.f32 %v5769_v16, %v5768_v9 }
 0x2ae   : > { %v7145_v38 = vpop.eup %7144 }
 0x2af   : > { %v2696_v18 = vmul.f32 %v7145_v38, %v7143_v46  ;;  %v5771_v31 = vpop.f32.mrb[40].mxu1  ;;  %v7147_v62 = vpop.eup %7146 }
 0x2b0   : > { %v5772_v22 = vpop.f32.mrb[41].mxu1 }
 0x2b1   : > { %2700 = vst [vmem:[#allocation2 + $0x68] sm:$0xff] %v2696_v18  ;;  %v10187_v57 = vadd.f32 %v5772_v22, %v5771_v31 }
 0x2b2   : > { %v7149_v45 = vpop.eup %7148 }
 0x2b3   : > { %v2697_v5 = vmul.f32 %v7149_v45, %v7147_v62  ;;  %v5774_v33 = vpop.f32.mrb[42].mxu1 }
 0x2b4   : > { %v5775_v20 = vpop.f32.mrb[43].mxu1 }
 0x2b5   : > { %2701 = vst [vmem:[#allocation2 + $0x98] sm:$0xff] %v2697_v5  ;;  %v6176_v28 = vpop.f32.mrb[32].mxu0  ;;  %v10190_v40 = vadd.f32 %v5775_v20, %v5774_v33 }
 0x2b6   : > { %v6542_v26 = vadd.f32 %v6176_v28, %v10096_v56  ;;  %v3262_v41 = vpop.f32.mrb[33].mxu0  ;;  %v3390_v56 = vpop.permute.xlu0 %3389 }
 0x2b7   : > { %v6543_v6 = vadd.f32 %v10086_v50, %v3262_v41  ;;  %v5777_v3 = vpop.f32.mrb[44].mxu1 }
 0x2b8   : > { %v3438_v1 = vadd.f32 %v6542_v26, %v3365_v61  ;;  %v5778_v39 = vpop.f32.mrb[45].mxu1 }
 0x2b9   : > { %v3437_v32 = vadd.f32 %v6543_v6, %v3360_v30  ;;  %v6179_v58 = vpop.f32.mrb[34].mxu0  ;;  %v10194_v29 = vadd.f32 %v5778_v39, %v5777_v3 }
 0x2ba   : > { %v5476_v15 = vmul.f32 -1.442695, %v3438_v1  ;;  %v6544_v11 = vadd.f32 %v6179_v58, %v10120_v10  ;;  %v3272_v44 = vpop.f32.mrb[35].mxu0  ;;  %v3400_v34 = vpop.permute.xlu0 %3399 }
 0x2bb   : > { %v5475_v43 = vmul.f32 -1.442695, %v3437_v32  ;;  %v6545_v35 = vadd.f32 %v10111_v24, %v3272_v44  ;;  %v5780_v0 = vpop.f32.mrb[46].mxu1 }
 0x2bc   : > { %7150 = vpow2.f32 %v5476_v15  ;;  %v3440_v42 = vadd.f32 %v6544_v11, %v3375_v54  ;;  %v5781_v53 = vpop.f32.mrb[47].mxu1 }
 0x2bd   : > { %7152 = vpow2.f32 %v5475_v43  ;;  %v3439_v50 = vadd.f32 %v6545_v35, %v3370_v49  ;;  %v6182_v60 = vpop.f32.mrb[36].mxu0  ;;  %v10198_v10 = vadd.f32 %v5781_v53, %v5780_v0 }
 0x2be   : > { %v5478_v27 = vmul.f32 -1.442695, %v3440_v42  ;;  %v6546_v48 = vadd.f32 %v6182_v60, %v10138_v51  ;;  %v3282_v59 = vpop.f32.mrb[37].mxu0  ;;  %v3410_v45 = vpop.permute.xlu0 %3409 }
 0x2bf   : > { %v5477_v2 = vmul.f32 -1.442695, %v3439_v50  ;;  %v6547_v37 = vadd.f32 %v10129_v47, %v3282_v59 }
 0x2c0   : > { %7154 = vpow2.f32 %v5478_v27  ;;  %v3442_v24 = vadd.f32 %v6546_v48, %v3385_v25 }
 0x2c1   : > { %7156 = vpow2.f32 %v5477_v2  ;;  %v3441_v17 = vadd.f32 %v6547_v37, %v3380_v21  ;;  %v6185_v52 = vpop.f32.mrb[38].mxu0 }
 0x2c2   : > { %v5480_v30 = vmul.f32 -1.442695, %v3442_v24  ;;  %v6548_v13 = vadd.f32 %v6185_v52, %v10156_v55  ;;  %v3292_v19 = vpop.f32.mrb[39].mxu0  ;;  %v3420_v15 = vpop.permute.xlu0 %3419 }
 0x2c3   : > { %v5479_v61 = vmul.f32 -1.442695, %v3441_v17  ;;  %v6549_v51 = vadd.f32 %v10147_v63, %v3292_v19  ;;  %v3415_v63 = vpop.permute.xlu1 %3414 }
 0x2c4   : > { %7158 = vpow2.f32 %v5480_v30  ;;  %v3444_v7 = vadd.f32 %v6548_v13, %v3395_v12 }
 0x2c5   : > { %7160 = vpow2.f32 %v5479_v61  ;;  %v3443_v9 = vadd.f32 %v6549_v51, %v3390_v56  ;;  %v6188_v46 = vpop.f32.mrb[40].mxu0  ;;  %v3529_v61 = vld [vmem:[#allocation3 + $0x8] sm:$0xff] }
 0x2c6   : > { %v7151_v47 = vpop.eup %7150  ;;  %v5482_v16 = vmul.f32 -1.442695, %v3444_v7  ;;  %v6550_v38 = vadd.f32 %v6188_v46, %v10176_v14  ;;  %v3302_v49 = vpop.f32.mrb[41].mxu0  ;;  %v3530_v7 = vld [vmem:[#allocation3 + $0x28] sm:$0xff] }
 0x2c7   : > { %v7153_v18 = vpop.eup %7152  ;;  %v3466_v54 = vadd.f32 1.0, %v7151_v47  ;;  %v5481_v31 = vmul.f32 -1.442695, %v3443_v9  ;;  %v6551_v55 = vadd.f32 %v10166_v4, %v3302_v49  ;;  %v3425_v35 = vpop.permute.xlu1 %3424 }
 0x2c8   : > { %v3465_v62 = vadd.f32 1.0, %v7153_v18  ;;  %7162 = vpow2.f32 %v5482_v16  ;;  %v3446_v22 = vadd.f32 %v6550_v38, %v3405_v8  ;;  %v3430_v37 = vpop.permute.xlu0 %3429 }
 0x2c9   : > { %7164 = vrcp.f32 %v3466_v54  ;;  %v3445_v5 = vadd.f32 %v6551_v55, %v3400_v34  ;;  %v6191_v21 = vpop.f32.mrb[42].mxu0  ;;  %v3532_v55 = vld [vmem:[#allocation3 + $0x68] sm:$0xff] }
 0x2ca   : > { %v7155_v33 = vpop.eup %7154  ;;  %7166 = vrcp.f32 %v3465_v62  ;;  %v5484_v28 = vmul.f32 -1.442695, %v3446_v22  ;;  %v6552_v20 = vadd.f32 %v6191_v21, %v10185_v36  ;;  %v3312_v14 = vpop.f32.mrb[43].mxu0  ;;  %v3531_v62 = vld [vmem:[#allocation3 + $0x48] sm:$0xff] }
 0x2cb   : > { %v7157_v25 = vpop.eup %7156  ;;  %v3468_v26 = vadd.f32 1.0, %v7155_v33  ;;  %7168 = vpow2.f32 %v5481_v31  ;;  %v5483_v41 = vmul.f32 -1.442695, %v3445_v5  ;;  %v6553_v4 = vadd.f32 %v10183_v23, %v3312_v14  ;;  %v3435_v24 = vpop.permute.xlu1 %3434 }
 0x2cc   : > { %v3467_v6 = vadd.f32 1.0, %v7157_v25  ;;  %7170 = vpow2.f32 %v5484_v28  ;;  %v3448_v1 = vadd.f32 %v6552_v20, %v3415_v63 }
 0x2cd   : > { %7172 = vrcp.f32 %v3468_v26  ;;  %v3447_v3 = vadd.f32 %v6553_v4, %v3410_v45  ;;  %v6194_v32 = vpop.f32.mrb[44].mxu0 }
 0x2ce   : > { %v7159_v58 = vpop.eup %7158  ;;  %7174 = vrcp.f32 %v3467_v6  ;;  %v5486_v39 = vmul.f32 -1.442695, %v3448_v1  ;;  %v3322_v11 = vpop.f32.mrb[45].mxu0  ;;  %v6554_v36 = vadd.f32 %v6194_v32, %v10190_v40 }
 0x2cf   : > { %v7161_v44 = vpop.eup %7160  ;;  %v3490_v43 = vadd.f32 1.0, %v7159_v58  ;;  %7176 = vpow2.f32 %v5483_v41  ;;  %v5485_v56 = vmul.f32 -1.442695, %v3447_v3  ;;  %v6555_v23 = vadd.f32 %v10187_v57, %v3322_v11 }
 0x2d0   : > { %v3489_v12 = vadd.f32 1.0, %v7161_v44  ;;  %7178 = vpow2.f32 %v5486_v39  ;;  %v3450_v60 = vadd.f32 %v6554_v36, %v3425_v35 }
 0x2d1   : > { %7180 = vrcp.f32 %v3490_v43  ;;  %v3449_v42 = vadd.f32 %v6555_v23, %v3420_v15  ;;  %v6197_v0 = vpop.f32.mrb[46].mxu0 }
 0x2d2   : > { %v7163_v50 = vpop.eup %7162  ;;  %7182 = vrcp.f32 %v3489_v12  ;;  %v3332_v53 = vpop.f32.mrb[47].mxu0  ;;  %v6556_v27 = vadd.f32 %v6197_v0, %v10198_v10 }
 0x2d3   : > { %v7165_v48 = vpop.eup %7164  ;;  %v3492_v40 = vadd.f32 1.0, %v7163_v50  ;;  %7184 = vpow2.f32 %v5485_v56  ;;  %v6557_v59 = vadd.f32 %v10194_v29, %v3332_v53 }
 0x2d4   : > { %v7167_v2 = vpop.eup %7166  ;;  %7186 = vtanh.f32 %v3449_v42  ;;  %v3452_v34 = vadd.f32 %v6556_v27, %v3435_v24  ;;  %v4219_v27 = vpop.permute.xlu0 %4218 }
 0x2d5   : > { %v7169_v57 = vpop.eup %7168  ;;  %7188 = vrcp.f32 %v3492_v40  ;;  %v3451_v17 = vadd.f32 %v6557_v59, %v3430_v37 }
 0x2d6   : > { %v7171_v52 = vpop.eup %7170  ;;  %v3491_v30 = vadd.f32 1.0, %v7169_v57  ;;  %7190 = vtanh.f32 %v3450_v60  ;;  %v4224_v60 = vpop.permute.xlu1 %4223 }
 0x2d7   : > { %v7173_v13 = vpop.eup %7172  ;;  %7192 = vtanh.f32 %v3451_v17  ;;  %v3514_v38 = vadd.f32 1.0, %v7171_v52 }
 0x2d8   : > { %v7175_v19 = vpop.eup %7174  ;;  %7194 = vrcp.f32 %v3491_v30  ;;  %v4229_v24 = vpop.permute.xlu0 %4228 }
 0x2d9   : > { %v7177_v10 = vpop.eup %7176  ;;  %7196 = vtanh.f32 %v3452_v34 }
 0x2da   : > { %v7179_v8 = vpop.eup %7178  ;;  %v3513_v47 = vadd.f32 1.0, %v7177_v10 }
 0x2db   : > { %v7181_v29 = vpop.eup %7180  ;;  %v3516_v33 = vadd.f32 1.0, %v7179_v8 }
 0x2dc   : > { %v7183_v51 = vpop.eup %7182  ;;  %v3534_v18 = vmul.f32 %v7181_v29, %v3530_v7  ;;  %7198 = vrcp.f32 %v3513_v47 }
 0x2dd   : > { %v7185_v9 = vpop.eup %7184  ;;  %v3533_v46 = vmul.f32 %v7183_v51, %v3529_v61  ;;  %7200 = vrcp.f32 %v3514_v38 }
 0x2de   : > { %v7187_v16 = vpop.eup %7186  ;;  %v3515_v22 = vadd.f32 1.0, %v7185_v9 }
 0x2df   : > { %v7189_v49 = vpop.eup %7188  ;;  %v3537_v54 = vmul.f32 %v7187_v16, %v7167_v2  ;;  %v4234_v2 = vpop.permute.xlu1 %4233 }
 0x2e0   : > { %v7191_v31 = vpop.eup %7190  ;;  %v3536_v20 = vmul.f32 %v7189_v49, %v3532_v55 }
 0x2e1   : > { %v7193_v45 = vpop.eup %7192  ;;  %v3541_v63 = vadd.f32 %v3537_v54, %v3533_v46  ;;  %v3538_v5 = vmul.f32 %v7191_v31, %v7165_v48 }
 0x2e2   : > { %v7195_v21 = vpop.eup %7194  ;;  %v3539_v28 = vmul.f32 %v7193_v45, %v7175_v19  ;;  %v4239_v19 = vpop.permute.xlu0 %4238 }
 0x2e3   : > { %v3535_v14 = vmul.f32 %v7195_v21, %v3531_v62  ;;  %3545 = vst [vmem:[#allocation3 + $0x8] sm:$0xff] %v3541_v63  ;;  %7202 = vtanh.f32 %v3541_v63  ;;  %v3542_v25 = vadd.f32 %v3538_v5, %v3534_v18  ;;  %v7197_v26 = vpop.eup %7196  ;;  %v4244_v34 = vpop.permute.xlu1 %4243 }
 0x2e4   : > { %7204 = vrcp.f32 %v3515_v22  ;;  %v3540_v4 = vmul.f32 %v7197_v26, %v7173_v13 }
 0x2e5   : > { %3546 = vst [vmem:[#allocation3 + $0x28] sm:$0xff] %v3542_v25  ;;  %7206 = vtanh.f32 %v3542_v25  ;;  %v3543_v41 = vadd.f32 %v3539_v28, %v3535_v14 }
 0x2e6   : > { %7208 = vrcp.f32 %v3516_v33  ;;  %v3544_v6 = vadd.f32 %v3540_v4, %v3536_v20  ;;  %v7199_v1 = vpop.eup %7198  ;;  %v10213_v9 = vpop.permute.xlu0 %4248 }
 0x2e7   : > { %3547 = vst [vmem:[#allocation3 + $0x48] sm:$0xff] %v3543_v41  ;;  %7210 = vtanh.f32 %v3543_v41  ;;  %v7201_v3 = vpop.eup %7200  ;;  %v10211_v29 = vpop.permute.xlu1 %4253 }
 0x2e8   : > { %3548 = vst [vmem:[#allocation3 + $0x68] sm:$0xff] %v3544_v6  ;;  %7212 = vtanh.f32 %v3544_v6 }
 0x2ea   : > { %v10217_v18 = vpop.permute.xlu0 %5077 }
 0x2eb   : > { %v10215_v38 = vpop.permute.xlu1 %5082 }
 0x2ed   : > { %v7203_v32 = vpop.eup %7202 }
 0x2ee   : > { %v7205_v58 = vpop.eup %7204  ;;  %v3553_v39 = vmul.f32 %v7203_v32, %v7199_v1  ;;  %v10223_v63 = vpop.permute.xlu0 %5087 }
 0x2ef   : > { %v7207_v15 = vpop.eup %7206  ;;  %v10221_v62 = vpop.permute.xlu1 %5092 }
 0x2f0   : > { %v7209_v11 = vpop.eup %7208  ;;  %3557 = vst [vmem:[#allocation2 + $0x10] sm:$0xff] %v3553_v39  ;;  %v3554_v36 = vmul.f32 %v7207_v15, %v7201_v3 }
 0x2f1   : > { %v7211_v44 = vpop.eup %7210 }
 0x2f2   : > { %3558 = vst [vmem:[#allocation2 + $0x40] sm:$0xff] %v3554_v36  ;;  %v3555_v43 = vmul.f32 %v7211_v44, %v7205_v58  ;;  %v7213_v35 = vpop.eup %7212  ;;  %v10229_v41 = vpop.permute.xlu0 %5097 }
 0x2f3   : > { %v3556_v56 = vmul.f32 %v7213_v35, %v7209_v11  ;;  %v10225_v28 = vpop.permute.xlu1 %5102 }
 0x2f4   : > { %3559 = vst [vmem:[#allocation2 + $0x70] sm:$0xff] %v3555_v43 }
 0x2f5   : > { %3560 = vst [vmem:[#allocation2 + $0xa0] sm:$0xff] %v3556_v56 }
 0x2f6   : > { %v5856_v23 = vpop.f32.mrb[48].mxu1 }
 0x2f7   : > { %v5857_v12 = vpop.f32.mrb[49].mxu1  ;;  %v10233_v44 = vpop.permute.xlu1 %5112 }
 0x2f8   : > { %v5858_v42 = vadd.f32 %v5857_v12, %v5856_v23 }
 0x2fa   : > { %v5859_v0 = vpop.f32.mrb[50].mxu1 }
 0x2fb   : > { %v5860_v50 = vpop.f32.mrb[51].mxu1 }
 0x2fc   : > { %v5861_v53 = vadd.f32 %v5860_v50, %v5859_v0  ;;  %v10235_v0 = vpop.permute.xlu0 %5107 }
 0x2fe   : > { %v5862_v48 = vpop.f32.mrb[52].mxu1 }
 0x2ff   : > { %v5863_v40 = vpop.f32.mrb[53].mxu1 }
 0x300   : > { %v5864_v59 = vadd.f32 %v5863_v40, %v5862_v48 }
 0x302   : > { %v5865_v37 = vpop.f32.mrb[54].mxu1 }
 0x303   : > { %v5866_v57 = vpop.f32.mrb[55].mxu1 }
 0x304   : > { %v5867_v17 = vadd.f32 %v5866_v57, %v5865_v37 }
 0x306   : > { %v5868_v52 = vpop.f32.mrb[56].mxu1 }
 0x307   : > { %v5869_v30 = vpop.f32.mrb[57].mxu1 }
 0x308   : > { %v5870_v13 = vadd.f32 %v5869_v30, %v5868_v52 }
 0x30a   : > { %v5871_v10 = vpop.f32.mrb[58].mxu1 }
 0x30b   : > { %v5872_v8 = vpop.f32.mrb[59].mxu1 }
 0x30c   : > { %v5873_v61 = vadd.f32 %v5872_v8, %v5871_v10 }
 0x30e   : > { %v5874_v51 = vpop.f32.mrb[60].mxu1 }
 0x30f   : > { %v5875_v7 = vpop.f32.mrb[61].mxu1 }
 0x310   : > { %v5876_v46 = vadd.f32 %v5875_v7, %v5874_v51  ;;  %v4259_v7 = vpop.permute.xlu0 %4258 }
 0x312   : > { %v5877_v47 = vpop.f32.mrb[62].mxu1 }
 0x313   : > { %v5878_v16 = vpop.f32.mrb[63].mxu1 }
 0x314   : > { %v5879_v49 = vadd.f32 %v5878_v16, %v5877_v47 }
 0x316   : > { %v5880_v54 = vpop.f32.mrb[64].mxu1 }
 0x317   : > { %v5881_v31 = vpop.f32.mrb[65].mxu1 }
 0x318   : > { %v10219_v55 = vadd.f32 %v5881_v31, %v5880_v54 }
 0x31a   : > { %v5883_v22 = vpop.f32.mrb[66].mxu1 }
 0x31b   : > { %v5884_v45 = vpop.f32.mrb[67].mxu1 }
 0x31c   : > { %v5885_v5 = vadd.f32 %v5884_v45, %v5883_v22 }
 0x31e   : > { %v5886_v21 = vpop.f32.mrb[68].mxu1 }
 0x31f   : > { %v5887_v33 = vpop.f32.mrb[69].mxu1 }
 0x320   : > { %v6242_v20 = vpop.f32.mrb[48].mxu0  ;;  %v10227_v14 = vadd.f32 %v5887_v33, %v5886_v21 }
 0x321   : > { %v6558_v25 = vadd.f32 %v6242_v20, %v5861_v53  ;;  %v4121_v26 = vpop.f32.mrb[49].mxu0 }
 0x322   : > { %v6559_v4 = vadd.f32 %v5858_v42, %v4121_v26  ;;  %v5889_v6 = vpop.f32.mrb[70].mxu1 }
 0x323   : > { %v4297_v1 = vadd.f32 %v6558_v25, %v4224_v60  ;;  %v5890_v3 = vpop.f32.mrb[71].mxu1 }
 0x324   : > { %v4296_v32 = vadd.f32 %v6559_v4, %v4219_v27  ;;  %v6245_v58 = vpop.f32.mrb[50].mxu0  ;;  %v10231_v39 = vadd.f32 %v5890_v3, %v5889_v6 }
 0x325   : > { %v5521_v15 = vmul.f32 -1.442695, %v4297_v1  ;;  %v6560_v11 = vadd.f32 %v6245_v58, %v5867_v17  ;;  %v4131_v36 = vpop.f32.mrb[51].mxu0 }
 0x326   : > { %v5520_v43 = vmul.f32 -1.442695, %v4296_v32  ;;  %v6561_v35 = vadd.f32 %v5864_v59, %v4131_v36  ;;  %v5892_v56 = vpop.f32.mrb[72].mxu1  ;;  %v4264_v59 = vpop.permute.xlu1 %4263 }
 0x327   : > { %7214 = vpow2.f32 %v5521_v15  ;;  %v4299_v23 = vadd.f32 %v6560_v11, %v4234_v2  ;;  %v5893_v12 = vpop.f32.mrb[73].mxu1 }
 0x328   : > { %7216 = vpow2.f32 %v5520_v43  ;;  %v6248_v42 = vpop.f32.mrb[52].mxu0  ;;  %v10237_v50 = vadd.f32 %v5893_v12, %v5892_v56  ;;  %v4298_v48 = vadd.f32 %v6561_v35, %v4229_v24 }
 0x329   : > { %v5523_v60 = vmul.f32 -1.442695, %v4299_v23  ;;  %v6562_v53 = vadd.f32 %v6248_v42, %v5873_v61  ;;  %v4141_v27 = vpop.f32.mrb[53].mxu0 }
 0x32a   : > { %v6563_v40 = vadd.f32 %v5870_v13, %v4141_v27  ;;  %v5895_v37 = vpop.f32.mrb[74].mxu1  ;;  %v5522_v47 = vmul.f32 -1.442695, %v4298_v48  ;;  %v4274_v20 = vpop.permute.xlu1 %4273 }
 0x32b   : > { %7218 = vpow2.f32 %v5523_v60  ;;  %v4301_v57 = vadd.f32 %v6562_v53, %v4244_v34  ;;  %v5896_v17 = vpop.f32.mrb[75].mxu1 }
 0x32c   : > { %v4300_v52 = vadd.f32 %v6563_v40, %v4239_v19  ;;  %v6251_v30 = vpop.f32.mrb[54].mxu0  ;;  %v5897_v2 = vadd.f32 %v5896_v17, %v5895_v37 }
 0x32d   : > { %v5525_v10 = vmul.f32 -1.442695, %v4301_v57  ;;  %v6564_v8 = vadd.f32 %v6251_v30, %v5879_v49  ;;  %v4151_v51 = vpop.f32.mrb[55].mxu0 }
 0x32e   : > { %v5524_v16 = vmul.f32 -1.442695, %v4300_v52  ;;  %v6565_v54 = vadd.f32 %v5876_v46, %v4151_v51  ;;  %v5898_v31 = vpop.f32.mrb[76].mxu1  ;;  %v4284_v42 = vpop.permute.xlu1 %4283 }
 0x32f   : > { %7220 = vpow2.f32 %v5525_v10  ;;  %v4303_v24 = vadd.f32 %v6564_v8, %v10211_v29  ;;  %v5899_v13 = vpop.f32.mrb[77].mxu1 }
 0x330   : > { %7222 = vpow2.f32 %v5524_v16  ;;  %v4302_v34 = vadd.f32 %v6565_v54, %v10213_v9  ;;  %v6254_v61 = vpop.f32.mrb[56].mxu0  ;;  %v10241_v22 = vadd.f32 %v5899_v13, %v5898_v31  ;;  %v4269_v9 = vpop.permute.xlu0 %4268 }
 0x331   : > { %v7215_v19 = vpop.eup %7214  ;;  %v5527_v45 = vmul.f32 -1.442695, %v4303_v24  ;;  %v6566_v21 = vadd.f32 %v6254_v61, %v5885_v5  ;;  %v4161_v49 = vpop.f32.mrb[57].mxu0  ;;  %7224 = vpow2.f32 %v5522_v47 }
 0x332   : > { %v7217_v33 = vpop.eup %7216  ;;  %v4325_v25 = vadd.f32 1.0, %v7215_v19  ;;  %v5526_v46 = vmul.f32 -1.442695, %v4302_v34  ;;  %v6567_v26 = vadd.f32 %v10219_v55, %v4161_v49  ;;  %v5901_v4 = vpop.f32.mrb[78].mxu1 }
 0x333   : > { %v4324_v29 = vadd.f32 1.0, %v7217_v33  ;;  %7226 = vpow2.f32 %v5527_v45  ;;  %v4305_v6 = vadd.f32 %v6566_v21, %v4264_v59  ;;  %v5902_v1 = vpop.f32.mrb[79].mxu1  ;;  %v4294_v13 = vpop.permute.xlu1 %4293 }
 0x334   : > { %v4304_v3 = vadd.f32 %v6567_v26, %v4259_v7  ;;  %v6257_v32 = vpop.f32.mrb[58].mxu0  ;;  %v5903_v58 = vadd.f32 %v5902_v1, %v5901_v4  ;;  %7228 = vrcp.f32 %v4325_v25  ;;  %v4279_v17 = vpop.permute.xlu0 %4278 }
 0x335   : > { %v7219_v15 = vpop.eup %7218  ;;  %v5529_v5 = vmul.f32 -1.442695, %v4305_v6  ;;  %v6568_v11 = vadd.f32 %v6257_v32, %v10231_v39  ;;  %v4171_v36 = vpop.f32.mrb[59].mxu0  ;;  %7230 = vpow2.f32 %v5526_v46 }
 0x336   : > { %v4327_v43 = vadd.f32 1.0, %v7219_v15  ;;  %v5528_v35 = vmul.f32 -1.442695, %v4304_v3  ;;  %v6569_v55 = vadd.f32 %v10227_v14, %v4171_v36  ;;  %v5977_v56 = vpop.f32.mrb[80].mxu1  ;;  %7232 = vrcp.f32 %v4324_v29  ;;  %v4388_v36 = vld [vmem:[#allocation3 + $0x10] sm:$0xff] }
 0x337   : > { %v4307_v23 = vadd.f32 %v6568_v11, %v4274_v20  ;;  %v5978_v12 = vpop.f32.mrb[81].mxu1  ;;  %7234 = vpow2.f32 %v5529_v5 }
 0x338   : > { %v4306_v60 = vadd.f32 %v6569_v55, %v4269_v9  ;;  %v6260_v53 = vpop.f32.mrb[60].mxu0  ;;  %v10246_v27 = vadd.f32 %v5978_v12, %v5977_v56  ;;  %7236 = vrcp.f32 %v4327_v43  ;;  %v4289_v33 = vpop.permute.xlu0 %4288  ;;  %v4391_v56 = vld [vmem:[#allocation3 + $0x70] sm:$0xff] }
 0x339   : > { %v7221_v48 = vpop.eup %7220  ;;  %v5531_v40 = vmul.f32 -1.442695, %v4307_v23  ;;  %v6570_v39 = vadd.f32 %v6260_v53, %v5897_v2  ;;  %v4181_v37 = vpop.f32.mrb[61].mxu0  ;;  %7238 = vpow2.f32 %v5528_v35 }
 0x33a   : > { %v7223_v57 = vpop.eup %7222  ;;  %v4349_v59 = vadd.f32 1.0, %v7221_v48  ;;  %v5530_v14 = vmul.f32 -1.442695, %v4306_v60  ;;  %v6571_v52 = vadd.f32 %v10237_v50, %v4181_v37  ;;  %v5980_v30 = vpop.f32.mrb[82].mxu1 }
 0x33b   : > { %v4348_v10 = vadd.f32 1.0, %v7223_v57  ;;  %7240 = vpow2.f32 %v5531_v40  ;;  %v4309_v8 = vadd.f32 %v6570_v39, %v4284_v42  ;;  %v5981_v51 = vpop.f32.mrb[83].mxu1  ;;  %v7225_v7 = vpop.eup %7224 }
 0x33c   : > { %7242 = vrcp.f32 %v4349_v59  ;;  %v6263_v47 = vpop.f32.mrb[62].mxu0  ;;  %v10249_v16 = vadd.f32 %v5981_v51, %v5980_v30  ;;  %v4308_v2 = vadd.f32 %v6571_v52, %v4279_v17  ;;  %v4326_v20 = vadd.f32 1.0, %v7225_v7  ;;  %v4390_v17 = vld [vmem:[#allocation3 + $0x50] sm:$0xff] }
 0x33d   : > { %v7227_v54 = vpop.eup %7226  ;;  %7244 = vrcp.f32 %v4348_v10  ;;  %v6572_v31 = vadd.f32 %v6263_v47, %v5903_v58  ;;  %v4191_v24 = vpop.f32.mrb[63].mxu0  ;;  %v4389_v58 = vld [vmem:[#allocation3 + $0x30] sm:$0xff] }
 0x33e   : > { %v4351_v34 = vadd.f32 1.0, %v7227_v54  ;;  %7246 = vpow2.f32 %v5530_v14  ;;  %v6573_v50 = vadd.f32 %v10241_v22, %v4191_v24  ;;  %v5983_v61 = vpop.f32.mrb[84].mxu1  ;;  %v7229_v19 = vpop.eup %7228 }
 0x33f   : > { %7248 = vtanh.f32 %v4309_v8  ;;  %v4311_v45 = vadd.f32 %v6572_v31, %v4294_v13  ;;  %v5984_v21 = vpop.f32.mrb[85].mxu1  ;;  %v7231_v49 = vpop.eup %7230 }
 0x340   : > { %7250 = vrcp.f32 %v4351_v34  ;;  %v10252_v25 = vadd.f32 %v5984_v21, %v5983_v61  ;;  %v7233_v46 = vpop.eup %7232  ;;  %v4350_v26 = vadd.f32 1.0, %v7231_v49  ;;  %v4310_v4 = vadd.f32 %v6573_v50, %v4289_v33 }
 0x341   : > { %7252 = vtanh.f32 %v4308_v2  ;;  %v7235_v29 = vpop.eup %7234 }
 0x342   : > { %7254 = vtanh.f32 %v4311_v45  ;;  %v5986_v6 = vpop.f32.mrb[86].mxu1  ;;  %v7237_v1 = vpop.eup %7236  ;;  %v4373_v23 = vadd.f32 1.0, %v7235_v29 }
 0x343   : > { %7256 = vrcp.f32 %v4350_v26  ;;  %v5987_v22 = vpop.f32.mrb[87].mxu1  ;;  %v7239_v9 = vpop.eup %7238 }
 0x344   : > { %7258 = vrcp.f32 %v4326_v20  ;;  %v10254_v3 = vadd.f32 %v5987_v22, %v5986_v6  ;;  %v4372_v60 = vadd.f32 1.0, %v7239_v9 }
 0x345   : > { %v7241_v32 = vpop.eup %7240  ;;  %7260 = vtanh.f32 %v4310_v4 }
 0x346   : > { %v7243_v15 = vpop.eup %7242  ;;  %v5989_v5 = vpop.f32.mrb[88].mxu1  ;;  %v4375_v59 = vadd.f32 1.0, %v7241_v32  ;;  %7262 = vrcp.f32 %v4373_v23 }
 0x347   : > { %v7245_v11 = vpop.eup %7244  ;;  %v5990_v43 = vpop.f32.mrb[89].mxu1  ;;  %v4393_v55 = vmul.f32 %v7243_v15, %v4389_v58  ;;  %7264 = vrcp.f32 %v4372_v60 }
 0x348   : > { %v7247_v35 = vpop.eup %7246  ;;  %v10256_v12 = vadd.f32 %v5990_v43, %v5989_v5  ;;  %v4392_v48 = vmul.f32 %v7245_v11, %v4388_v36 }
 0x349   : > { %v7249_v42 = vpop.eup %7248  ;;  %v4374_v13 = vadd.f32 1.0, %v7247_v35 }
 0x34a   : > { %v7251_v53 = vpop.eup %7250  ;;  %v4397_v40 = vmul.f32 %v7249_v42, %v7229_v19  ;;  %v5992_v39 = vpop.f32.mrb[90].mxu1 }
 0x34b   : > { %v7253_v37 = vpop.eup %7252  ;;  %v4395_v57 = vmul.f32 %v7251_v53, %v4391_v56  ;;  %v5993_v14 = vpop.f32.mrb[91].mxu1 }
 0x34c   : > { %v7255_v52 = vpop.eup %7254  ;;  %v4401_v30 = vadd.f32 %v4397_v40, %v4393_v55  ;;  %v4396_v10 = vmul.f32 %v7253_v37, %v7233_v46  ;;  %v5994_v8 = vadd.f32 %v5993_v14, %v5992_v39 }
 0x34d   : > { %v7257_v51 = vpop.eup %7256  ;;  %v4399_v7 = vmul.f32 %v7255_v52, %v7237_v1 }
 0x34e   : > { %v7259_v47 = vpop.eup %7258  ;;  %v4394_v54 = vmul.f32 %v7257_v51, %v4390_v17  ;;  %4405 = vst [vmem:[#allocation3 + $0x30] sm:$0xff] %v4401_v30  ;;  %7266 = vtanh.f32 %v4401_v30  ;;  %v4400_v2 = vadd.f32 %v4396_v10, %v4392_v48  ;;  %v5995_v31 = vpop.f32.mrb[92].mxu1 }
 0x34f   : > { %v7261_v24 = vpop.eup %7260  ;;  %7268 = vrcp.f32 %v4375_v59  ;;  %v4403_v34 = vadd.f32 %v4399_v7, %v4395_v57  ;;  %v5996_v50 = vpop.f32.mrb[93].mxu1 }
 0x350   : > { %4404 = vst [vmem:[#allocation3 + $0x10] sm:$0xff] %v4400_v2  ;;  %7270 = vtanh.f32 %v4400_v2  ;;  %v4398_v61 = vmul.f32 %v7261_v24, %v7259_v47  ;;  %v5997_v19 = vadd.f32 %v5996_v50, %v5995_v31  ;;  %v7263_v4 = vpop.eup %7262 }
 0x351   : > { %4407 = vst [vmem:[#allocation3 + $0x70] sm:$0xff] %v4403_v34  ;;  %7272 = vtanh.f32 %v4403_v34  ;;  %v7265_v1 = vpop.eup %7264 }
 0x352   : > { %v4402_v45 = vadd.f32 %v4398_v61, %v4394_v54  ;;  %v5998_v21 = vpop.f32.mrb[94].mxu1  ;;  %7274 = vrcp.f32 %v4374_v13 }
 0x353   : > { %v5999_v49 = vpop.f32.mrb[95].mxu1 }
 0x354   : > { %4406 = vst [vmem:[#allocation3 + $0x50] sm:$0xff] %v4402_v45  ;;  %7276 = vtanh.f32 %v4402_v45  ;;  %v6308_v33 = vpop.f32.mrb[64].mxu0  ;;  %v6000_v20 = vadd.f32 %v5999_v49, %v5998_v21 }
 0x355   : > { %v6574_v46 = vadd.f32 %v6308_v33, %v10249_v16  ;;  %v4980_v26 = vpop.f32.mrb[65].mxu0 }
 0x356   : > { %v6575_v29 = vadd.f32 %v10246_v27, %v4980_v26  ;;  %v6001_v6 = vpop.f32.mrb[96].mxu1 }
 0x357   : > { %v6002_v22 = vpop.f32.mrb[97].mxu1 }
 0x358   : > { %v7267_v9 = vpop.eup %7266  ;;  %v6311_v32 = vpop.f32.mrb[66].mxu0  ;;  %v6003_v58 = vadd.f32 %v6002_v22, %v6001_v6  ;;  %v5155_v17 = vadd.f32 %v6575_v29, %v10217_v18 }
 0x359   : > { %v7269_v15 = vpop.eup %7268  ;;  %v4413_v5 = vmul.f32 %v7267_v9, %v7263_v4  ;;  %v6576_v11 = vadd.f32 %v6311_v32, %v10254_v3  ;;  %v4990_v36 = vpop.f32.mrb[67].mxu0  ;;  %v5156_v3 = vadd.f32 %v6574_v46, %v10215_v38 }
 0x35a   : > { %v7271_v43 = vpop.eup %7270  ;;  %v6577_v35 = vadd.f32 %v10252_v25, %v4990_v36  ;;  %v6004_v55 = vpop.f32.mrb[98].mxu1  ;;  %v5565_v54 = vmul.f32 -1.442695, %v5155_v17 }
 0x35b   : > { %v7273_v16 = vpop.eup %7272  ;;  %4417 = vst [vmem:[#allocation2 + $0x48] sm:$0xff] %v4413_v5  ;;  %v4412_v56 = vmul.f32 %v7271_v43, %v7265_v1  ;;  %v6005_v23 = vpop.f32.mrb[99].mxu1  ;;  %v5158_v10 = vadd.f32 %v6576_v11, %v10221_v62  ;;  %v5566_v7 = vmul.f32 -1.442695, %v5156_v3 }
 0x35c   : > { %v4415_v27 = vmul.f32 %v7273_v16, %v7269_v15  ;;  %v6314_v42 = vpop.f32.mrb[68].mxu0  ;;  %v6006_v60 = vadd.f32 %v6005_v23, %v6004_v55  ;;  %v7275_v53 = vpop.eup %7274  ;;  %v5157_v38 = vadd.f32 %v6577_v35, %v10223_v63 }
 0x35d   : > { %4416 = vst [vmem:[#allocation2 + $0x18] sm:$0xff] %v4412_v56  ;;  %v6578_v48 = vadd.f32 %v6314_v42, %v5994_v8  ;;  %v5000_v40 = vpop.f32.mrb[69].mxu0  ;;  %v5568_v13 = vmul.f32 -1.442695, %v5158_v10  ;;  %7278 = vpow2.f32 %v5566_v7  ;;  %v5118_v36 = vpop.permute.xlu0 %5117 }
 0x35e   : > { %v7277_v39 = vpop.eup %7276  ;;  %4419 = vst [vmem:[#allocation2 + $0xa8] sm:$0xff] %v4415_v27  ;;  %v6579_v37 = vadd.f32 %v10256_v12, %v5000_v40  ;;  %v6007_v57 = vpop.f32.mrb[100].mxu1  ;;  %v5567_v62 = vmul.f32 -1.442695, %v5157_v38  ;;  %7280 = vpow2.f32 %v5565_v54 }
 0x35f   : > { %v4414_v25 = vmul.f32 %v7277_v39, %v7275_v53  ;;  %v6008_v59 = vpop.f32.mrb[101].mxu1  ;;  %v5160_v18 = vadd.f32 %v6578_v48, %v10225_v28  ;;  %7282 = vpow2.f32 %v5568_v13 }
 0x360   : > { %v5159_v14 = vadd.f32 %v6579_v37, %v10229_v41  ;;  %v6317_v52 = vpop.f32.mrb[70].mxu0  ;;  %v10266_v30 = vadd.f32 %v6008_v59, %v6007_v57  ;;  %7284 = vpow2.f32 %v5567_v62 }
 0x361   : > { %4418 = vst [vmem:[#allocation2 + $0x78] sm:$0xff] %v4414_v25  ;;  %v6580_v8 = vadd.f32 %v6317_v52, %v6000_v20  ;;  %v5010_v51 = vpop.f32.mrb[71].mxu0  ;;  %v5570_v63 = vmul.f32 -1.442695, %v5160_v18  ;;  %v5128_v57 = vpop.permute.xlu0 %5127 }
 0x362   : > { %v6581_v47 = vadd.f32 %v5997_v19, %v5010_v51  ;;  %v6010_v12 = vpop.f32.mrb[102].mxu1  ;;  %v5569_v33 = vmul.f32 -1.442695, %v5159_v14 }
 0x363   : > { %v6011_v2 = vpop.f32.mrb[103].mxu1  ;;  %7286 = vpow2.f32 %v5570_v63 }
 0x364   : > { %v5161_v31 = vadd.f32 %v6581_v47, %v10235_v0  ;;  %v6320_v41 = vpop.f32.mrb[72].mxu0  ;;  %v6012_v24 = vadd.f32 %v6011_v2, %v6010_v12  ;;  %v5162_v0 = vadd.f32 %v6580_v8, %v10233_v44  ;;  %7288 = vpow2.f32 %v5569_v33 }
 0x365   : > { %v6582_v34 = vadd.f32 %v6320_v41, %v6006_v60  ;;  %v5020_v50 = vpop.f32.mrb[73].mxu0  ;;  %v5138_v13 = vpop.permute.xlu0 %5137 }
 0x366   : > { %v6583_v61 = vadd.f32 %v6003_v58, %v5020_v50  ;;  %v6013_v45 = vpop.f32.mrb[104].mxu1  ;;  %v5572_v6 = vmul.f32 -1.442695, %v5162_v0  ;;  %v5571_v22 = vmul.f32 -1.442695, %v5161_v31  ;;  %v5123_v58 = vpop.permute.xlu1 %5122 }
 0x367   : > { %v6014_v21 = vpop.f32.mrb[105].mxu1  ;;  %v7279_v32 = vpop.eup %7278  ;;  %v5164_v44 = vadd.f32 %v6582_v34, %v5123_v58 }
 0x368   : > { %v10272_v19 = vadd.f32 %v6014_v21, %v6013_v45  ;;  %v6323_v49 = vpop.f32.mrb[74].mxu0  ;;  %v7281_v11 = vpop.eup %7280  ;;  %7290 = vpow2.f32 %v5572_v6  ;;  %v5184_v16 = vadd.f32 1.0, %v7279_v32  ;;  %v5163_v42 = vadd.f32 %v6583_v61, %v5118_v36 }
 0x369   : > { %v5030_v28 = vpop.f32.mrb[75].mxu0  ;;  %v7283_v55 = vpop.eup %7282  ;;  %7292 = vpow2.f32 %v5571_v22  ;;  %v5183_v27 = vadd.f32 1.0, %v7281_v11  ;;  %v5574_v53 = vmul.f32 -1.442695, %v5164_v44 }
 0x36a   : > { %v6016_v20 = vpop.f32.mrb[106].mxu1  ;;  %v7285_v23 = vpop.eup %7284  ;;  %v5186_v39 = vadd.f32 1.0, %v7283_v55  ;;  %7294 = vrcp.f32 %v5184_v16  ;;  %v5573_v14 = vmul.f32 -1.442695, %v5163_v42 }
 0x36b   : > { %v6017_v46 = vpop.f32.mrb[107].mxu1  ;;  %v5133_v40 = vpop.permute.xlu1 %5132  ;;  %v5185_v25 = vadd.f32 1.0, %v7285_v23  ;;  %7296 = vrcp.f32 %v5183_v27 }
 0x36c   : > { %v6018_v26 = vadd.f32 %v6017_v46, %v6016_v20  ;;  %v6326_v4 = vpop.f32.mrb[76].mxu0  ;;  %7298 = vpow2.f32 %v5574_v53  ;;  %v5148_v6 = vpop.permute.xlu0 %5147  ;;  %v5250_v53 = vld [vmem:[#allocation3 + $0x78] sm:$0xff] }
 0x36d   : > { %v5040_v29 = vpop.f32.mrb[77].mxu0  ;;  %v7287_v48 = vpop.eup %7286  ;;  %7300 = vrcp.f32 %v5186_v39  ;;  %v5249_v39 = vld [vmem:[#allocation3 + $0x58] sm:$0xff] }
 0x36e   : > { %v6019_v1 = vpop.f32.mrb[108].mxu1  ;;  %v7289_v37 = vpop.eup %7288  ;;  %v5208_v10 = vadd.f32 1.0, %v7287_v48  ;;  %7302 = vrcp.f32 %v5185_v25 }
 0x36f   : > { %v6020_v9 = vpop.f32.mrb[109].mxu1  ;;  %v5207_v51 = vadd.f32 1.0, %v7289_v37  ;;  %v5143_v18 = vpop.permute.xlu1 %5142  ;;  %7304 = vpow2.f32 %v5573_v14 }
 0x370   : > { %v10275_v15 = vadd.f32 %v6020_v9, %v6019_v1  ;;  %v10277_v5 = vpop.f32.mrb[78].mxu0  ;;  %7306 = vrcp.f32 %v5208_v10 }
 0x371   : > { %v10279_v43 = vpop.f32.mrb[79].mxu0  ;;  %7308 = vrcp.f32 %v5207_v51 }
 0x372   : > { %v6022_v35 = vpop.f32.mrb[110].mxu1  ;;  %v7291_v2 = vpop.eup %7290 }
 0x373   : > { %v6023_v56 = vpop.f32.mrb[111].mxu1  ;;  %v5210_v45 = vadd.f32 1.0, %v7291_v2 }
 0x374   : > { %v6024_v60 = vadd.f32 %v6023_v56, %v6022_v35  ;;  %v5247_v35 = vld [vmem:[#allocation3 + $0x18] sm:$0xff] }
 0x376   : > { %v6289_v3 = vpop.f32.mrb[112].mxu1 }
 0x377   : > { %v4840_v17 = vadd.f32 %v6289_v3, %v6012_v24  ;;  %v4834_v59 = vpop.f32.mrb[113].mxu1  ;;  %v7293_v24 = vpop.eup %7292 }
 0x378   : > { %v4835_v52 = vadd.f32 %v10266_v30, %v4834_v59  ;;  %v5209_v33 = vadd.f32 1.0, %v7293_v24 }
 0x379   : > { %v5036_v8 = vadd.f32 %v6323_v49, %v4840_v17 }
 0x37a   : > { %v5031_v7 = vadd.f32 %v5030_v28, %v4835_v52  ;;  %v6292_v38 = vpop.f32.mrb[114].mxu1 }
 0x37b   : > { %v5166_v47 = vadd.f32 %v5133_v40, %v5036_v8  ;;  %v4850_v12 = vadd.f32 %v6292_v38, %v6018_v26  ;;  %v4844_v54 = vpop.f32.mrb[115].mxu1  ;;  %v5153_v26 = vpop.permute.xlu1 %5152 }
 0x37c   : > { %v5165_v31 = vadd.f32 %v5128_v57, %v5031_v7  ;;  %v4845_v41 = vadd.f32 %v10272_v19, %v4844_v54  ;;  %v7295_v19 = vpop.eup %7294 }
 0x37d   : > { %v5576_v30 = vmul.f32 -1.442695, %v5166_v47  ;;  %v5046_v34 = vadd.f32 %v6326_v4, %v4850_v12  ;;  %v7297_v46 = vpop.eup %7296 }
 0x37e   : > { %v5575_v50 = vmul.f32 -1.442695, %v5165_v31  ;;  %v5041_v62 = vadd.f32 %v5040_v29, %v4845_v41  ;;  %v6295_v61 = vpop.f32.mrb[116].mxu1  ;;  %v7299_v29 = vpop.eup %7298 }
 0x37f   : > { %7310 = vpow2.f32 %v5576_v30  ;;  %v5168_v21 = vadd.f32 %v5143_v18, %v5046_v34  ;;  %v4860_v63 = vadd.f32 %v6295_v61, %v6024_v60  ;;  %v4854_v49 = vpop.f32.mrb[117].mxu1  ;;  %v7301_v22 = vpop.eup %7300  ;;  %v5232_v55 = vadd.f32 1.0, %v7299_v29  ;;  %v5285_v61 = vld [vmem:[#allocation2 + $0x18] sm:$0xff] (!%p5577_p6) }
 0x380   : > { %7312 = vpow2.f32 %v5575_v50  ;;  %v5167_v28 = vadd.f32 %v5138_v13, %v5041_v62  ;;  %v4855_v0 = vadd.f32 %v10275_v15, %v4854_v49  ;;  %v7303_v32 = vpop.eup %7302  ;;  %v5283_v50 = vld [vmem:[#allocation2 + $0x8] sm:$0xff] (!%p5577_p6)  ;;  %v5284_v62 = vld [vmem:[#allocation2 + $0x10] sm:$0xff] (!%p5577_p6)  ;;  %5301 = vst [vmem:[%s10349_s5 + $0x10] sm:$0xff] (!%p5577_p6), %v5285_v61 }
 0x381   : > { %7314 = vtanh.f32 %v5168_v21  ;;  %v5056_v20 = vadd.f32 %v10277_v5, %v4860_v63  ;;  %v7305_v58 = vpop.eup %7304  ;;  %v5248_v5 = vld [vmem:[#allocation3 + $0x38] sm:$0xff]  ;;  %5299 = vst [vmem:[%s10349_s5] sm:$0xff] (!%p5577_p6), %v5283_v50  ;;  %5300 = vst [vmem:[%s10349_s5 + $0x8] sm:$0xff] (!%p5577_p6), %v5284_v62  ;;  %v5288_v63 = vld [vmem:[#allocation2 + $0x40] sm:$0xff] (!%p5577_p6) }
 0x382   : > { %7316 = vtanh.f32 %v5167_v28  ;;  %v5051_v4 = vadd.f32 %v10279_v43, %v4855_v0  ;;  %v7307_v15 = vpop.eup %7306  ;;  %v5231_v43 = vadd.f32 1.0, %v7305_v58  ;;  %v5287_v21 = vld [vmem:[#allocation2 + $0x38] sm:$0xff] (!%p5577_p6)  ;;  %5304 = vst [vmem:[%s10349_s5 + $0x28] sm:$0xff] (!%p5577_p6), %v5288_v63  ;;  %v5289_v49 = vld [vmem:[#allocation2 + $0x48] sm:$0xff] (!%p5577_p6)  ;;  %v5292_v0 = vld [vmem:[#allocation2 + $0x70] sm:$0xff] (!%p5577_p6) }
 0x383   : > { %7318 = vrcp.f32 %v5210_v45  ;;  %v5170_v1 = vadd.f32 %v5153_v26, %v5056_v20  ;;  %v7309_v11 = vpop.eup %7308  ;;  %v5252_v23 = vmul.f32 %v7307_v15, %v5248_v5  ;;  %5303 = vst [vmem:[%s10349_s5 + $0x20] sm:$0xff] (!%p5577_p6), %v5287_v21  ;;  %v5291_v28 = vld [vmem:[#allocation2 + $0x68] sm:$0xff] (!%p5577_p6)  ;;  %5305 = vst [vmem:[%s10349_s5 + $0x30] sm:$0xff] (!%p5577_p6), %v5289_v49  ;;  %v5296_v26 = vld [vmem:[#allocation2 + $0xa0] sm:$0xff] (!%p5577_p6) }
 0x384   : > { %7320 = vrcp.f32 %v5209_v33  ;;  %v5169_v9 = vadd.f32 %v5148_v6, %v5051_v4  ;;  %v5251_v60 = vmul.f32 %v7309_v11, %v5247_v35  ;;  %5307 = vst [vmem:[%s10349_s5 + $0x40] sm:$0xff] (!%p5577_p6), %v5291_v28  ;;  %5308 = vst [vmem:[%s10349_s5 + $0x48] sm:$0xff] (!%p5577_p6), %v5292_v0  ;;  %v5297_v4 = vld [vmem:[#allocation2 + $0xa8] sm:$0xff] (!%p5577_p6) }
 0x385   : > { %7322 = vtanh.f32 %v5170_v1  ;;  %5312 = vst [vmem:[%s10349_s5 + $0x68] sm:$0xff] (!%p5577_p6), %v5296_v26  ;;  %5313 = vst [vmem:[%s10349_s5 + $0x70] sm:$0xff] (!%p5577_p6), %v5297_v4 }
 0x386   : > { %7324 = vtanh.f32 %v5169_v9 }
 0x387   : > { %7326 = vrcp.f32 %v5232_v55 }
 0x388   : > { %7328 = vrcp.f32 %v5231_v43 }
 0x389   : > { %v7311_v36 = vpop.eup %7310 }
 0x38a   : > { %v7313_v44 = vpop.eup %7312  ;;  %v5234_v3 = vadd.f32 1.0, %v7311_v36 }
 0x38b   : > { %v7315_v16 = vpop.eup %7314  ;;  %v5233_v25 = vadd.f32 1.0, %v7313_v44 }
 0x38c   : > { %v7317_v56 = vpop.eup %7316  ;;  %v5256_v27 = vmul.f32 %v7315_v16, %v7295_v19  ;;  %v5293_v19 = vld [vmem:[#allocation2 + $0x78] sm:$0xff] (!%p5577_p6) }
 0x38d   : > { %v7319_v42 = vpop.eup %7318  ;;  %v5255_v48 = vmul.f32 %v7317_v56, %v7297_v46  ;;  %5309 = vst [vmem:[%s10349_s5 + $0x50] sm:$0xff] (!%p5577_p6), %v5293_v19  ;;  %v5295_v46 = vld [vmem:[#allocation2 + $0x98] sm:$0xff] (!%p5577_p6) }
 0x38e   : > { %v7321_v40 = vpop.eup %7320  ;;  %v5260_v37 = vadd.f32 %v5256_v27, %v5252_v23  ;;  %v5254_v14 = vmul.f32 %v7319_v42, %v5250_v53  ;;  %5311 = vst [vmem:[%s10349_s5 + $0x60] sm:$0xff] (!%p5577_p6), %v5295_v46 }
 0x38f   : > { %v7323_v57 = vpop.eup %7322  ;;  %v5259_v17 = vadd.f32 %v5255_v48, %v5251_v60  ;;  %v5253_v10 = vmul.f32 %v7321_v40, %v5249_v39 }
 0x390   : > { %v7325_v59 = vpop.eup %7324  ;;  %5264 = vst [vmem:[#allocation3 + $0x38] sm:$0xff] %v5260_v37  ;;  %7330 = vtanh.f32 %v5260_v37  ;;  %v5258_v52 = vmul.f32 %v7323_v57, %v7301_v22 }
 0x391   : > { %5263 = vst [vmem:[#allocation3 + $0x18] sm:$0xff] %v5259_v17  ;;  %7332 = vtanh.f32 %v5259_v17  ;;  %v5257_v8 = vmul.f32 %v7325_v59, %v7303_v32  ;;  %v7327_v38 = vpop.eup %7326 }
 0x392   : > { %7334 = vrcp.f32 %v5234_v3  ;;  %v5262_v51 = vadd.f32 %v5258_v52, %v5254_v14  ;;  %v7329_v47 = vpop.eup %7328 }
 0x393   : > { %7336 = vrcp.f32 %v5233_v25  ;;  %v5261_v7 = vadd.f32 %v5257_v8, %v5253_v10 }
 0x394   : > { %5266 = vst [vmem:[#allocation3 + $0x78] sm:$0xff] %v5262_v51  ;;  %7338 = vtanh.f32 %v5262_v51 }
 0x395   : > { %5265 = vst [vmem:[#allocation3 + $0x58] sm:$0xff] %v5261_v7  ;;  %7340 = vtanh.f32 %v5261_v7 }
 0x39a   : > { %v7331_v12 = vpop.eup %7330 }
 0x39b   : > { %v7333_v54 = vpop.eup %7332  ;;  %v5272_v2 = vmul.f32 %v7331_v12, %v7327_v38 }
 0x39c   : > { %v7335_v18 = vpop.eup %7334  ;;  %v5271_v31 = vmul.f32 %v7333_v54, %v7329_v47  ;;  %5282 = sbr.rel (%p5577_p6) target bundleno = 939 (0x3ab), region = 48 }
 0x39d   : > { %v7337_v41 = vpop.eup %7336  ;;  %5276 = vst [vmem:[#allocation2 + $0x50] sm:$0xff] %v5272_v2 }
 0x39e   : > { %v7339_v24 = vpop.eup %7338  ;;  %5275 = vst [vmem:[#allocation2 + $0x20] sm:$0xff] %v5271_v31 }
 0x39f   : > { %v7341_v13 = vpop.eup %7340  ;;  %v5274_v30 = vmul.f32 %v7339_v24, %v7335_v18 }
 0x3a0   : > { %v5273_v34 = vmul.f32 %v7341_v13, %v7337_v41 }
 0x3a1   : > { %5278 = vst [vmem:[#allocation2 + $0xb0] sm:$0xff] %v5274_v30 }
 0x3a2   : > { %5277 = vst [vmem:[#allocation2 + $0x80] sm:$0xff] %v5273_v34 }
 0x3a4   : > { %v5290_v33 = vld [vmem:[#allocation2 + $0x50] sm:$0xff] }
 0x3a5   : > { %v5286_v45 = vld [vmem:[#allocation2 + $0x20] sm:$0xff]  ;;  %5306 = vst [vmem:[%s10349_s5 + $0x38] sm:$0xff] %v5290_v33 }
 0x3a6   : > { %5302 = vst [vmem:[%s10349_s5 + $0x18] sm:$0xff] %v5286_v45 }
 0x3a8   : > { %v5298_v29 = vld [vmem:[#allocation2 + $0xb0] sm:$0xff] }
 0x3a9   : > { %v5294_v20 = vld [vmem:[#allocation2 + $0x80] sm:$0xff]  ;;  %5314 = vst [vmem:[%s10349_s5 + $0x78] sm:$0xff] %v5298_v29 }
 0x3aa   : > { %5310 = vst [vmem:[%s10349_s5 + $0x58] sm:$0xff] %v5294_v20 }
 0x3ab PF: > { %s15_s20 = sadd.s32 1, %s7365_s20   ;;  %s10686_s18 = smov %s7361_s19 }
 0x3ac   : > { %p12_p7 = scmp.ge.s32.totalorder %s15_s20, 10   ;;  %s10687_s19 = smov %s10689_s21 }
 0x3ae   :  { %14 = sbr.rel (!%p12_p7) target bundleno = 2 (0x2), region = 86 }

</bundles_post_ra>
